<compile_context>
chip_gen: v7x
topology: tpu7x:2x2x1
jax: 0.10.0
libtpu: 0.0.40
codegen_flags: <defaults>
</compile_context>

<pallas_src>
import functools

import jax
import jax.numpy as jnp
from jax.experimental import pallas as pl
from jax.experimental.pallas import tpu as pltpu

K = 7          # conv kernel size
PAD = 3        # conv padding


def _spatial_attention_kernel(x_ref, xmask_ref, ymask_ref, w_ref, b_ref, o_ref,
                              *, H, W, c_chunk):
    # x_ref     : (bn, C, H*W)  VMEM, native dtype (lane-dense flat spatial)
    # xmask_ref : (K, H*W)      VMEM f32 {0,1}, column-validity per dx
    # ymask_ref : (K, H*W)      VMEM f32 {0,1}, row-validity per dy
    # w_ref     : (2*K*K,)      SMEM f32, conv weight flattened [c, ky, kx]
    # b_ref     : (1,)          SMEM f32, conv bias
    # o_ref     : (bn, H*W)     VMEM, dense 2-D output block
    bn, C, HW = x_ref.shape

    # ---- channel reduction, chunked over C to bound the live f32 slab -----
    cc0 = min(c_chunk, C)
    x0 = x_ref[:, 0:cc0, :].astype(jnp.float32)
    csum = jnp.sum(x0, axis=1)                      # (bn, HW)
    cmax = jnp.max(x0, axis=1)                      # (bn, HW)
    for c0 in range(cc0, C, c_chunk):
        cc = min(c_chunk, C - c0)
        xc = x_ref[:, c0:c0 + cc, :].astype(jnp.float32)
        csum = csum + jnp.sum(xc, axis=1)
        cmax = jnp.maximum(cmax, jnp.max(xc, axis=1))
    avg = csum * jnp.float32(1.0 / C)

    # ---- pass 1: the 7 column shifts, shared by all 7 rows ----------------
    # sa[kx][y, x] = avg[y, x+dx] * 1{0 <= x+dx < W}  (sm likewise for max).
    sa = []
    sm = []
    for kx in range(K):
        dx = kx - PAD
        r = (-dx) % HW                               # rolled[f] == m[(f+dx) % HW]
        a = avg if r == 0 else pltpu.roll(avg, shift=r, axis=1)
        m = cmax if r == 0 else pltpu.roll(cmax, shift=r, axis=1)
        xm = xmask_ref[kx:kx + 1, :]                 # (1, HW)
        sa.append(a * xm)
        sm.append(m * xm)

    # ---- pass 2: per dy, VPU-only weighted row sum, one roll, one mask ----
    acc = jnp.full((bn, HW), b_ref[0], dtype=jnp.float32)
    for ky in range(K):
        dy = ky - PAD
        row = sa[0] * w_ref[ky * K] + sm[0] * w_ref[K * K + ky * K]
        for kx in range(1, K):
            row = row + sa[kx] * w_ref[ky * K + kx]
            row = row + sm[kx] * w_ref[K * K + ky * K + kx]
        r = (-(dy * W)) % HW                         # shift by dy rows
        if r != 0:
            row = pltpu.roll(row, shift=r, axis=1)
        acc = acc + row * ymask_ref[ky:ky + 1, :]

    o_ref[...] = jax.nn.sigmoid(acc).astype(o_ref.dtype)


def spatial_attention(x, weight, bias, *, batch_block=None):
    """x: (N, C, H, W); weight: (1, 2, 7, 7); bias: (1,) -> (N, 1, H, W)."""
    N, C, H, W = x.shape
    HW = H * W
    itemsize = jnp.dtype(x.dtype).itemsize

    # --- generation-aware block sizing -------------------------------------
    try:
        kind = jax.devices()[0].device_kind.lower()
    except Exception:
        kind = ""
    is_v7 = "v7" in kind                       # 2 TensorCores, 64 MiB VMEM
    vmem_capacity = (64 << 20) if is_v7 else (128 << 20)

    # Cap the (single-buffered) input block at ~8 MiB so the double-buffered
    # pipeline fits comfortably on every generation.
    input_block_budget = min(vmem_capacity // 8, 8 << 20)
    bn_cap = (input_block_budget // max(1, C * HW * itemsize)) // 8 * 8
    bn_cap = max(8, min(64, bn_cap))
    if batch_block is not None:
        bn_cap = min(bn_cap, max(8, (batch_block // 8) * 8))

    # bn: multiple of 8 (dense sublanes); pad the batch instead of shrinking.
    # v7x: keep >=2 "parallel" programs once N >= 16 so both TCs get work.
    # v5e/v6e: single TC -> just take the largest block (fewer grid steps).
    want_split = is_v7 and N >= 16
    best = None
    for cand in (64, 32, 16, 8):
        if cand > bn_cap:
            continue
        npad = -(-N // cand) * cand
        if want_split and npad // cand < 2:
            continue
        if best is None or npad < best[1]:
            best = (cand, npad)
    if best is None:
        best = (8, -(-N // 8) * 8)
    bn, n_pad = best
    grid = (n_pad // bn,)

    # --- host-side prep -----------------------------------------------------
    x_flat = x.reshape(N, C, HW)
    if n_pad != N:
        x_flat = jnp.pad(x_flat, ((0, n_pad - N), (0, 0), (0, 0)))

    w_flat = weight.reshape(-1).astype(jnp.float32)     # (2*K*K,), [c, ky, kx]
    b = bias.reshape(-1).astype(jnp.float32)            # (1,)

    # Conv zero-padding masks as f32 multiplicands (no in-kernel iota/div/mod).
    cols = jnp.arange(W, dtype=jnp.int32)
    rows = jnp.arange(H, dtype=jnp.int32)
    xm = jnp.stack([((cols + (kx - PAD) >= 0) & (cols + (kx - PAD) < W))
                    for kx in range(K)]).astype(jnp.float32)        # (K, W)
    ym = jnp.stack([((rows + (ky - PAD) >= 0) & (rows + (ky - PAD) < H))
                    for ky in range(K)]).astype(jnp.float32)        # (K, H)
    xmask = jnp.broadcast_to(xm[:, None, :], (K, H, W)).reshape(K, HW)
    ymask = jnp.broadcast_to(ym[:, :, None], (K, H, W)).reshape(K, HW)

    # Channel chunk size: keep the live f32 chunk around <= 1 MiB.
    c_chunk = int(max(1, min(C, (1 << 20) // max(1, bn * HW * 4))))

    # Explicit VMEM limit: double-buffered in/out blocks + f32 working set.
    block_in_bytes = bn * C * HW * itemsize
    block_out_bytes = bn * HW * itemsize
    work_bytes = bn * HW * 4 * 24 + bn * c_chunk * HW * 4
    vmem_limit = 2 * block_in_bytes + 2 * block_out_bytes + work_bytes + (8 << 20)
    vmem_limit = int(min(max(vmem_limit, 32 << 20), (vmem_capacity * 3) // 4))

    flops = n_pad * HW * (2 * C + 4 * K * K + 2 * K + 16)
    bytes_accessed = (itemsize * (n_pad * C * HW + n_pad * HW)
                      + 4 * (2 * K * HW + 2 * K * K + 1))

    out = pl.pallas_call(
        functools.partial(_spatial_attention_kernel, H=H, W=W, c_chunk=c_chunk),
        out_shape=jax.ShapeDtypeStruct((n_pad, HW), x.dtype),
        grid=grid,
        in_specs=[
            pl.BlockSpec((bn, C, HW), lambda n: (n, 0, 0)),
            pl.BlockSpec((K, HW), lambda n: (0, 0)),
            pl.BlockSpec((K, HW), lambda n: (0, 0)),
            pl.BlockSpec(memory_space=pltpu.MemorySpace.SMEM),
            pl.BlockSpec(memory_space=pltpu.MemorySpace.SMEM),
        ],
        out_specs=pl.BlockSpec((bn, HW), lambda n: (n, 0)),
        compiler_params=pltpu.CompilerParams(
            dimension_semantics=("parallel",),
            vmem_limit_bytes=vmem_limit),
        cost_estimate=pl.CostEstimate(
            flops=flops, transcendentals=n_pad * HW,
            bytes_accessed=bytes_accessed),
    )(x_flat, xmask, ymask, w_flat, b)

    return out[:N].reshape(N, 1, H, W)


def spatial_attention_reference(x, weight, bias):
    avg = jnp.mean(x, axis=1, keepdims=True)
    mx = jnp.max(x, axis=1, keepdims=True)
    out = jnp.concatenate([avg, mx], axis=1)
    conv = jax.lax.conv_general_dilated(
        out, weight, window_strides=(1, 1), padding=((PAD, PAD), (PAD, PAD)),
        dimension_numbers=("NCHW", "OIHW", "NCHW"))
    return jax.nn.sigmoid(conv + bias.reshape(1, -1, 1, 1))


if __name__ == "__main__":
    key = jax.random.PRNGKey(0)
    kx, kw, kb = jax.random.split(key, 3)

    N, C, H, W = 2, 4, 16, 16
    x = jax.random.normal(kx, (N, C, H, W), dtype=jnp.float32)

    # Deterministic synthetic parameters (shapes match nn.Conv2d(2, 1, 7, 1, 3)).
    weight = 0.1 * jax.random.normal(kw, (1, 2, K, K), dtype=jnp.float32)
    bias = 0.1 * jax.random.normal(kb, (1,), dtype=jnp.float32)

    out = spatial_attention(x, weight, bias)
    out = jax.block_until_ready(out)

    ref = spatial_attention_reference(x, weight, bias)
    assert out.shape == (N, 1, H, W), out.shape
    assert jnp.allclose(out, ref, atol=1e-5, rtol=1e-5), (
        float(jnp.max(jnp.abs(out - ref))))

    print("KERNEL_OK")
</pallas_src>

<mosaic_0001>
module attributes {stable_mosaic.version = 11 : i64} {
  func.func @_spatial_attention_kernel(%arg0: i32, %arg1: memref<8x4x256xf32, #tpu.memory_space<vmem>>, %arg2: memref<7x256xf32, #tpu.memory_space<vmem>>, %arg3: memref<7x256xf32, #tpu.memory_space<vmem>>, %arg4: memref<98xf32, #tpu.memory_space<smem>>, %arg5: memref<1xf32, #tpu.memory_space<smem>>, %arg6: memref<8x256xf32, #tpu.memory_space<vmem>>) attributes {dimension_semantics = [#tpu.dimension_semantics<parallel>], iteration_bounds = array<i64: 1>, scalar_prefetch = 0 : i64, scratch_operands = 0 : i64, tpu.core_type = #tpu.core_type<tc>, window_params = [{transform_indices = @transform_0, window_bounds = array<i64: 8, 4, 256>}, {pipeline_mode = #tpu.pipeline_mode<synchronous>, transform_indices = @transform_1, window_bounds = array<i64: 7, 256>}, {pipeline_mode = #tpu.pipeline_mode<synchronous>, transform_indices = @transform_2, window_bounds = array<i64: 7, 256>}, {transform_indices = @transform_3, window_bounds = array<i64: 98>}, {transform_indices = @transform_4, window_bounds = array<i64: 1>}, {transform_indices = @transform_5, window_bounds = array<i64: 8, 256>}]} {
    %c0 = arith.constant 0 : index
    %c0_0 = arith.constant 0 : index
    %c0_1 = arith.constant 0 : index
    %0 = vector.load %arg1[%c0, %c0_0, %c0_1] : memref<8x4x256xf32, #tpu.memory_space<vmem>>, vector<8x4x256xf32>
    %cst = arith.constant dense<0.000000e+00> : vector<8x256xf32>
    %1 = vector.multi_reduction <add>, %0, %cst [1] : vector<8x4x256xf32> to vector<8x256xf32>
    %cst_2 = arith.constant dense<0xFF800000> : vector<8x256xf32>
    %2 = vector.multi_reduction <maximumf>, %0, %cst_2 [1] : vector<8x4x256xf32> to vector<8x256xf32>
    %cst_3 = arith.constant 2.500000e-01 : f32
    %3 = vector.broadcast %cst_3 : f32 to vector<8x256xf32>
    %4 = arith.mulf %1, %3 : vector<8x256xf32>
    %c3_i32 = arith.constant 3 : i32
    %5 = tpu.dynamic_rotate %4 by %c3_i32 dim 1 : vector<8x256xf32>, i32 -> vector<8x256xf32>
    %c3_i32_4 = arith.constant 3 : i32
    %6 = tpu.dynamic_rotate %2 by %c3_i32_4 dim 1 : vector<8x256xf32>, i32 -> vector<8x256xf32>
    %c0_5 = arith.constant 0 : index
    %c0_6 = arith.constant 0 : index
    %7 = vector.load %arg2[%c0_5, %c0_6] : memref<7x256xf32, #tpu.memory_space<vmem>>, vector<1x256xf32>
    %8 = vector.broadcast %7 : vector<1x256xf32> to vector<8x256xf32>
    %9 = arith.mulf %5, %8 : vector<8x256xf32>
    %10 = vector.broadcast %7 : vector<1x256xf32> to vector<8x256xf32>
    %11 = arith.mulf %6, %10 : vector<8x256xf32>
    %c2_i32 = arith.constant 2 : i32
    %12 = tpu.dynamic_rotate %4 by %c2_i32 dim 1 : vector<8x256xf32>, i32 -> vector<8x256xf32>
    %c2_i32_7 = arith.constant 2 : i32
    %13 = tpu.dynamic_rotate %2 by %c2_i32_7 dim 1 : vector<8x256xf32>, i32 -> vector<8x256xf32>
    %c1 = arith.constant 1 : index
    %c0_8 = arith.constant 0 : index
    %14 = vector.load %arg2[%c1, %c0_8] : memref<7x256xf32, #tpu.memory_space<vmem>>, vector<1x256xf32>
    %15 = vector.broadcast %14 : vector<1x256xf32> to vector<8x256xf32>
    %16 = arith.mulf %12, %15 : vector<8x256xf32>
    %17 = vector.broadcast %14 : vector<1x256xf32> to vector<8x256xf32>
    %18 = arith.mulf %13, %17 : vector<8x256xf32>
    %c1_i32 = arith.constant 1 : i32
    %19 = tpu.dynamic_rotate %4 by %c1_i32 dim 1 : vector<8x256xf32>, i32 -> vector<8x256xf32>
    %c1_i32_9 = arith.constant 1 : i32
    %20 = tpu.dynamic_rotate %2 by %c1_i32_9 dim 1 : vector<8x256xf32>, i32 -> vector<8x256xf32>
    %c2 = arith.constant 2 : index
    %c0_10 = arith.constant 0 : index
    %21 = vector.load %arg2[%c2, %c0_10] : memref<7x256xf32, #tpu.memory_space<vmem>>, vector<1x256xf32>
    %22 = vector.broadcast %21 : vector<1x256xf32> to vector<8x256xf32>
    %23 = arith.mulf %19, %22 : vector<8x256xf32>
    %24 = vector.broadcast %21 : vector<1x256xf32> to vector<8x256xf32>
    %25 = arith.mulf %20, %24 : vector<8x256xf32>
    %c3 = arith.constant 3 : index
    %c0_11 = arith.constant 0 : index
    %26 = vector.load %arg2[%c3, %c0_11] : memref<7x256xf32, #tpu.memory_space<vmem>>, vector<1x256xf32>
    %27 = vector.broadcast %26 : vector<1x256xf32> to vector<8x256xf32>
    %28 = arith.mulf %4, %27 : vector<8x256xf32>
    %29 = vector.broadcast %26 : vector<1x256xf32> to vector<8x256xf32>
    %30 = arith.mulf %2, %29 : vector<8x256xf32>
    %c255_i32 = arith.constant 255 : i32
    %31 = tpu.dynamic_rotate %4 by %c255_i32 dim 1 : vector<8x256xf32>, i32 -> vector<8x256xf32>
    %c255_i32_12 = arith.constant 255 : i32
    %32 = tpu.dynamic_rotate %2 by %c255_i32_12 dim 1 : vector<8x256xf32>, i32 -> vector<8x256xf32>
    %c4 = arith.constant 4 : index
    %c0_13 = arith.constant 0 : index
    %33 = vector.load %arg2[%c4, %c0_13] : memref<7x256xf32, #tpu.memory_space<vmem>>, vector<1x256xf32>
    %34 = vector.broadcast %33 : vector<1x256xf32> to vector<8x256xf32>
    %35 = arith.mulf %31, %34 : vector<8x256xf32>
    %36 = vector.broadcast %33 : vector<1x256xf32> to vector<8x256xf32>
    %37 = arith.mulf %32, %36 : vector<8x256xf32>
    %c254_i32 = arith.constant 254 : i32
    %38 = tpu.dynamic_rotate %4 by %c254_i32 dim 1 : vector<8x256xf32>, i32 -> vector<8x256xf32>
    %c254_i32_14 = arith.constant 254 : i32
    %39 = tpu.dynamic_rotate %2 by %c254_i32_14 dim 1 : vector<8x256xf32>, i32 -> vector<8x256xf32>
    %c5 = arith.constant 5 : index
    %c0_15 = arith.constant 0 : index
    %40 = vector.load %arg2[%c5, %c0_15] : memref<7x256xf32, #tpu.memory_space<vmem>>, vector<1x256xf32>
    %41 = vector.broadcast %40 : vector<1x256xf32> to vector<8x256xf32>
    %42 = arith.mulf %38, %41 : vector<8x256xf32>
    %43 = vector.broadcast %40 : vector<1x256xf32> to vector<8x256xf32>
    %44 = arith.mulf %39, %43 : vector<8x256xf32>
    %c253_i32 = arith.constant 253 : i32
    %45 = tpu.dynamic_rotate %4 by %c253_i32 dim 1 : vector<8x256xf32>, i32 -> vector<8x256xf32>
    %c253_i32_16 = arith.constant 253 : i32
    %46 = tpu.dynamic_rotate %2 by %c253_i32_16 dim 1 : vector<8x256xf32>, i32 -> vector<8x256xf32>
    %c6 = arith.constant 6 : index
    %c0_17 = arith.constant 0 : index
    %47 = vector.load %arg2[%c6, %c0_17] : memref<7x256xf32, #tpu.memory_space<vmem>>, vector<1x256xf32>
    %48 = vector.broadcast %47 : vector<1x256xf32> to vector<8x256xf32>
    %49 = arith.mulf %45, %48 : vector<8x256xf32>
    %50 = vector.broadcast %47 : vector<1x256xf32> to vector<8x256xf32>
    %51 = arith.mulf %46, %50 : vector<8x256xf32>
    %c0_18 = arith.constant 0 : index
    %52 = memref.load %arg5[%c0_18] : memref<1xf32, #tpu.memory_space<smem>>
    %53 = vector.broadcast %52 : f32 to vector<8x256xf32>
    %c0_19 = arith.constant 0 : index
    %54 = memref.load %arg4[%c0_19] : memref<98xf32, #tpu.memory_space<smem>>
    %55 = vector.broadcast %54 : f32 to vector<8x256xf32>
    %56 = arith.mulf %9, %55 : vector<8x256xf32>
    %c49 = arith.constant 49 : index
    %57 = memref.load %arg4[%c49] : memref<98xf32, #tpu.memory_space<smem>>
    %58 = vector.broadcast %57 : f32 to vector<8x256xf32>
    %59 = arith.mulf %11, %58 : vector<8x256xf32>
    %60 = arith.addf %56, %59 : vector<8x256xf32>
    %c1_20 = arith.constant 1 : index
    %61 = memref.load %arg4[%c1_20] : memref<98xf32, #tpu.memory_space<smem>>
    %62 = vector.broadcast %61 : f32 to vector<8x256xf32>
    %63 = arith.mulf %16, %62 : vector<8x256xf32>
    %64 = arith.addf %60, %63 : vector<8x256xf32>
    %c50 = arith.constant 50 : index
    %65 = memref.load %arg4[%c50] : memref<98xf32, #tpu.memory_space<smem>>
    %66 = vector.broadcast %65 : f32 to vector<8x256xf32>
    %67 = arith.mulf %18, %66 : vector<8x256xf32>
    %68 = arith.addf %64, %67 : vector<8x256xf32>
    %c2_21 = arith.constant 2 : index
    %69 = memref.load %arg4[%c2_21] : memref<98xf32, #tpu.memory_space<smem>>
    %70 = vector.broadcast %69 : f32 to vector<8x256xf32>
    %71 = arith.mulf %23, %70 : vector<8x256xf32>
    %72 = arith.addf %68, %71 : vector<8x256xf32>
    %c51 = arith.constant 51 : index
    %73 = memref.load %arg4[%c51] : memref<98xf32, #tpu.memory_space<smem>>
    %74 = vector.broadcast %73 : f32 to vector<8x256xf32>
    %75 = arith.mulf %25, %74 : vector<8x256xf32>
    %76 = arith.addf %72, %75 : vector<8x256xf32>
    %c3_22 = arith.constant 3 : index
    %77 = memref.load %arg4[%c3_22] : memref<98xf32, #tpu.memory_space<smem>>
    %78 = vector.broadcast %77 : f32 to vector<8x256xf32>
    %79 = arith.mulf %28, %78 : vector<8x256xf32>
    %80 = arith.addf %76, %79 : vector<8x256xf32>
    %c52 = arith.constant 52 : index
    %81 = memref.load %arg4[%c52] : memref<98xf32, #tpu.memory_space<smem>>
    %82 = vector.broadcast %81 : f32 to vector<8x256xf32>
    %83 = arith.mulf %30, %82 : vector<8x256xf32>
    %84 = arith.addf %80, %83 : vector<8x256xf32>
    %c4_23 = arith.constant 4 : index
    %85 = memref.load %arg4[%c4_23] : memref<98xf32, #tpu.memory_space<smem>>
    %86 = vector.broadcast %85 : f32 to vector<8x256xf32>
    %87 = arith.mulf %35, %86 : vector<8x256xf32>
    %88 = arith.addf %84, %87 : vector<8x256xf32>
    %c53 = arith.constant 53 : index
    %89 = memref.load %arg4[%c53] : memref<98xf32, #tpu.memory_space<smem>>
    %90 = vector.broadcast %89 : f32 to vector<8x256xf32>
    %91 = arith.mulf %37, %90 : vector<8x256xf32>
    %92 = arith.addf %88, %91 : vector<8x256xf32>
    %c5_24 = arith.constant 5 : index
    %93 = memref.load %arg4[%c5_24] : memref<98xf32, #tpu.memory_space<smem>>
    %94 = vector.broadcast %93 : f32 to vector<8x256xf32>
    %95 = arith.mulf %42, %94 : vector<8x256xf32>
    %96 = arith.addf %92, %95 : vector<8x256xf32>
    %c54 = arith.constant 54 : index
    %97 = memref.load %arg4[%c54] : memref<98xf32, #tpu.memory_space<smem>>
    %98 = vector.broadcast %97 : f32 to vector<8x256xf32>
    %99 = arith.mulf %44, %98 : vector<8x256xf32>
    %100 = arith.addf %96, %99 : vector<8x256xf32>
    %c6_25 = arith.constant 6 : index
    %101 = memref.load %arg4[%c6_25] : memref<98xf32, #tpu.memory_space<smem>>
    %102 = vector.broadcast %101 : f32 to vector<8x256xf32>
    %103 = arith.mulf %49, %102 : vector<8x256xf32>
    %104 = arith.addf %100, %103 : vector<8x256xf32>
    %c55 = arith.constant 55 : index
    %105 = memref.load %arg4[%c55] : memref<98xf32, #tpu.memory_space<smem>>
    %106 = vector.broadcast %105 : f32 to vector<8x256xf32>
    %107 = arith.mulf %51, %106 : vector<8x256xf32>
    %108 = arith.addf %104, %107 : vector<8x256xf32>
    %c48_i32 = arith.constant 48 : i32
    %109 = tpu.dynamic_rotate %108 by %c48_i32 dim 1 : vector<8x256xf32>, i32 -> vector<8x256xf32>
    %c0_26 = arith.constant 0 : index
    %c0_27 = arith.constant 0 : index
    %110 = vector.load %arg3[%c0_26, %c0_27] : memref<7x256xf32, #tpu.memory_space<vmem>>, vector<1x256xf32>
    %111 = vector.broadcast %110 : vector<1x256xf32> to vector<8x256xf32>
    %112 = arith.mulf %109, %111 : vector<8x256xf32>
    %113 = arith.addf %53, %112 : vector<8x256xf32>
    %c7 = arith.constant 7 : index
    %114 = memref.load %arg4[%c7] : memref<98xf32, #tpu.memory_space<smem>>
    %115 = vector.broadcast %114 : f32 to vector<8x256xf32>
    %116 = arith.mulf %9, %115 : vector<8x256xf32>
    %c56 = arith.constant 56 : index
    %117 = memref.load %arg4[%c56] : memref<98xf32, #tpu.memory_space<smem>>
    %118 = vector.broadcast %117 : f32 to vector<8x256xf32>
    %119 = arith.mulf %11, %118 : vector<8x256xf32>
    %120 = arith.addf %116, %119 : vector<8x256xf32>
    %c8 = arith.constant 8 : index
    %121 = memref.load %arg4[%c8] : memref<98xf32, #tpu.memory_space<smem>>
    %122 = vector.broadcast %121 : f32 to vector<8x256xf32>
    %123 = arith.mulf %16, %122 : vector<8x256xf32>
    %124 = arith.addf %120, %123 : vector<8x256xf32>
    %c57 = arith.constant 57 : index
    %125 = memref.load %arg4[%c57] : memref<98xf32, #tpu.memory_space<smem>>
    %126 = vector.broadcast %125 : f32 to vector<8x256xf32>
    %127 = arith.mulf %18, %126 : vector<8x256xf32>
    %128 = arith.addf %124, %127 : vector<8x256xf32>
    %c9 = arith.constant 9 : index
    %129 = memref.load %arg4[%c9] : memref<98xf32, #tpu.memory_space<smem>>
    %130 = vector.broadcast %129 : f32 to vector<8x256xf32>
    %131 = arith.mulf %23, %130 : vector<8x256xf32>
    %132 = arith.addf %128, %131 : vector<8x256xf32>
    %c58 = arith.constant 58 : index
    %133 = memref.load %arg4[%c58] : memref<98xf32, #tpu.memory_space<smem>>
    %134 = vector.broadcast %133 : f32 to vector<8x256xf32>
    %135 = arith.mulf %25, %134 : vector<8x256xf32>
    %136 = arith.addf %132, %135 : vector<8x256xf32>
    %c10 = arith.constant 10 : index
    %137 = memref.load %arg4[%c10] : memref<98xf32, #tpu.memory_space<smem>>
    %138 = vector.broadcast %137 : f32 to vector<8x256xf32>
    %139 = arith.mulf %28, %138 : vector<8x256xf32>
    %140 = arith.addf %136, %139 : vector<8x256xf32>
    %c59 = arith.constant 59 : index
    %141 = memref.load %arg4[%c59] : memref<98xf32, #tpu.memory_space<smem>>
    %142 = vector.broadcast %141 : f32 to vector<8x256xf32>
    %143 = arith.mulf %30, %142 : vector<8x256xf32>
    %144 = arith.addf %140, %143 : vector<8x256xf32>
    %c11 = arith.constant 11 : index
    %145 = memref.load %arg4[%c11] : memref<98xf32, #tpu.memory_space<smem>>
    %146 = vector.broadcast %145 : f32 to vector<8x256xf32>
    %147 = arith.mulf %35, %146 : vector<8x256xf32>
    %148 = arith.addf %144, %147 : vector<8x256xf32>
    %c60 = arith.constant 60 : index
    %149 = memref.load %arg4[%c60] : memref<98xf32, #tpu.memory_space<smem>>
    %150 = vector.broadcast %149 : f32 to vector<8x256xf32>
    %151 = arith.mulf %37, %150 : vector<8x256xf32>
    %152 = arith.addf %148, %151 : vector<8x256xf32>
    %c12 = arith.constant 12 : index
    %153 = memref.load %arg4[%c12] : memref<98xf32, #tpu.memory_space<smem>>
    %154 = vector.broadcast %153 : f32 to vector<8x256xf32>
    %155 = arith.mulf %42, %154 : vector<8x256xf32>
    %156 = arith.addf %152, %155 : vector<8x256xf32>
    %c61 = arith.constant 61 : index
    %157 = memref.load %arg4[%c61] : memref<98xf32, #tpu.memory_space<smem>>
    %158 = vector.broadcast %157 : f32 to vector<8x256xf32>
    %159 = arith.mulf %44, %158 : vector<8x256xf32>
    %160 = arith.addf %156, %159 : vector<8x256xf32>
    %c13 = arith.constant 13 : index
    %161 = memref.load %arg4[%c13] : memref<98xf32, #tpu.memory_space<smem>>
    %162 = vector.broadcast %161 : f32 to vector<8x256xf32>
    %163 = arith.mulf %49, %162 : vector<8x256xf32>
    %164 = arith.addf %160, %163 : vector<8x256xf32>
    %c62 = arith.constant 62 : index
    %165 = memref.load %arg4[%c62] : memref<98xf32, #tpu.memory_space<smem>>
    %166 = vector.broadcast %165 : f32 to vector<8x256xf32>
    %167 = arith.mulf %51, %166 : vector<8x256xf32>
    %168 = arith.addf %164, %167 : vector<8x256xf32>
    %c32_i32 = arith.constant 32 : i32
    %169 = tpu.dynamic_rotate %168 by %c32_i32 dim 1 : vector<8x256xf32>, i32 -> vector<8x256xf32>
    %c1_28 = arith.constant 1 : index
    %c0_29 = arith.constant 0 : index
    %170 = vector.load %arg3[%c1_28, %c0_29] : memref<7x256xf32, #tpu.memory_space<vmem>>, vector<1x256xf32>
    %171 = vector.broadcast %170 : vector<1x256xf32> to vector<8x256xf32>
    %172 = arith.mulf %169, %171 : vector<8x256xf32>
    %173 = arith.addf %113, %172 : vector<8x256xf32>
    %c14 = arith.constant 14 : index
    %174 = memref.load %arg4[%c14] : memref<98xf32, #tpu.memory_space<smem>>
    %175 = vector.broadcast %174 : f32 to vector<8x256xf32>
    %176 = arith.mulf %9, %175 : vector<8x256xf32>
    %c63 = arith.constant 63 : index
    %177 = memref.load %arg4[%c63] : memref<98xf32, #tpu.memory_space<smem>>
    %178 = vector.broadcast %177 : f32 to vector<8x256xf32>
    %179 = arith.mulf %11, %178 : vector<8x256xf32>
    %180 = arith.addf %176, %179 : vector<8x256xf32>
    %c15 = arith.constant 15 : index
    %181 = memref.load %arg4[%c15] : memref<98xf32, #tpu.memory_space<smem>>
    %182 = vector.broadcast %181 : f32 to vector<8x256xf32>
    %183 = arith.mulf %16, %182 : vector<8x256xf32>
    %184 = arith.addf %180, %183 : vector<8x256xf32>
    %c64 = arith.constant 64 : index
    %185 = memref.load %arg4[%c64] : memref<98xf32, #tpu.memory_space<smem>>
    %186 = vector.broadcast %185 : f32 to vector<8x256xf32>
    %187 = arith.mulf %18, %186 : vector<8x256xf32>
    %188 = arith.addf %184, %187 : vector<8x256xf32>
    %c16 = arith.constant 16 : index
    %189 = memref.load %arg4[%c16] : memref<98xf32, #tpu.memory_space<smem>>
    %190 = vector.broadcast %189 : f32 to vector<8x256xf32>
    %191 = arith.mulf %23, %190 : vector<8x256xf32>
    %192 = arith.addf %188, %191 : vector<8x256xf32>
    %c65 = arith.constant 65 : index
    %193 = memref.load %arg4[%c65] : memref<98xf32, #tpu.memory_space<smem>>
    %194 = vector.broadcast %193 : f32 to vector<8x256xf32>
    %195 = arith.mulf %25, %194 : vector<8x256xf32>
    %196 = arith.addf %192, %195 : vector<8x256xf32>
    %c17 = arith.constant 17 : index
    %197 = memref.load %arg4[%c17] : memref<98xf32, #tpu.memory_space<smem>>
    %198 = vector.broadcast %197 : f32 to vector<8x256xf32>
    %199 = arith.mulf %28, %198 : vector<8x256xf32>
    %200 = arith.addf %196, %199 : vector<8x256xf32>
    %c66 = arith.constant 66 : index
    %201 = memref.load %arg4[%c66] : memref<98xf32, #tpu.memory_space<smem>>
    %202 = vector.broadcast %201 : f32 to vector<8x256xf32>
    %203 = arith.mulf %30, %202 : vector<8x256xf32>
    %204 = arith.addf %200, %203 : vector<8x256xf32>
    %c18 = arith.constant 18 : index
    %205 = memref.load %arg4[%c18] : memref<98xf32, #tpu.memory_space<smem>>
    %206 = vector.broadcast %205 : f32 to vector<8x256xf32>
    %207 = arith.mulf %35, %206 : vector<8x256xf32>
    %208 = arith.addf %204, %207 : vector<8x256xf32>
    %c67 = arith.constant 67 : index
    %209 = memref.load %arg4[%c67] : memref<98xf32, #tpu.memory_space<smem>>
    %210 = vector.broadcast %209 : f32 to vector<8x256xf32>
    %211 = arith.mulf %37, %210 : vector<8x256xf32>
    %212 = arith.addf %208, %211 : vector<8x256xf32>
    %c19 = arith.constant 19 : index
    %213 = memref.load %arg4[%c19] : memref<98xf32, #tpu.memory_space<smem>>
    %214 = vector.broadcast %213 : f32 to vector<8x256xf32>
    %215 = arith.mulf %42, %214 : vector<8x256xf32>
    %216 = arith.addf %212, %215 : vector<8x256xf32>
    %c68 = arith.constant 68 : index
    %217 = memref.load %arg4[%c68] : memref<98xf32, #tpu.memory_space<smem>>
    %218 = vector.broadcast %217 : f32 to vector<8x256xf32>
    %219 = arith.mulf %44, %218 : vector<8x256xf32>
    %220 = arith.addf %216, %219 : vector<8x256xf32>
    %c20 = arith.constant 20 : index
    %221 = memref.load %arg4[%c20] : memref<98xf32, #tpu.memory_space<smem>>
    %222 = vector.broadcast %221 : f32 to vector<8x256xf32>
    %223 = arith.mulf %49, %222 : vector<8x256xf32>
    %224 = arith.addf %220, %223 : vector<8x256xf32>
    %c69 = arith.constant 69 : index
    %225 = memref.load %arg4[%c69] : memref<98xf32, #tpu.memory_space<smem>>
    %226 = vector.broadcast %225 : f32 to vector<8x256xf32>
    %227 = arith.mulf %51, %226 : vector<8x256xf32>
    %228 = arith.addf %224, %227 : vector<8x256xf32>
    %c16_i32 = arith.constant 16 : i32
    %229 = tpu.dynamic_rotate %228 by %c16_i32 dim 1 : vector<8x256xf32>, i32 -> vector<8x256xf32>
    %c2_30 = arith.constant 2 : index
    %c0_31 = arith.constant 0 : index
    %230 = vector.load %arg3[%c2_30, %c0_31] : memref<7x256xf32, #tpu.memory_space<vmem>>, vector<1x256xf32>
    %231 = vector.broadcast %230 : vector<1x256xf32> to vector<8x256xf32>
    %232 = arith.mulf %229, %231 : vector<8x256xf32>
    %233 = arith.addf %173, %232 : vector<8x256xf32>
    %c21 = arith.constant 21 : index
    %234 = memref.load %arg4[%c21] : memref<98xf32, #tpu.memory_space<smem>>
    %235 = vector.broadcast %234 : f32 to vector<8x256xf32>
    %236 = arith.mulf %9, %235 : vector<8x256xf32>
    %c70 = arith.constant 70 : index
    %237 = memref.load %arg4[%c70] : memref<98xf32, #tpu.memory_space<smem>>
    %238 = vector.broadcast %237 : f32 to vector<8x256xf32>
    %239 = arith.mulf %11, %238 : vector<8x256xf32>
    %240 = arith.addf %236, %239 : vector<8x256xf32>
    %c22 = arith.constant 22 : index
    %241 = memref.load %arg4[%c22] : memref<98xf32, #tpu.memory_space<smem>>
    %242 = vector.broadcast %241 : f32 to vector<8x256xf32>
    %243 = arith.mulf %16, %242 : vector<8x256xf32>
    %244 = arith.addf %240, %243 : vector<8x256xf32>
    %c71 = arith.constant 71 : index
    %245 = memref.load %arg4[%c71] : memref<98xf32, #tpu.memory_space<smem>>
    %246 = vector.broadcast %245 : f32 to vector<8x256xf32>
    %247 = arith.mulf %18, %246 : vector<8x256xf32>
    %248 = arith.addf %244, %247 : vector<8x256xf32>
    %c23 = arith.constant 23 : index
    %249 = memref.load %arg4[%c23] : memref<98xf32, #tpu.memory_space<smem>>
    %250 = vector.broadcast %249 : f32 to vector<8x256xf32>
    %251 = arith.mulf %23, %250 : vector<8x256xf32>
    %252 = arith.addf %248, %251 : vector<8x256xf32>
    %c72 = arith.constant 72 : index
    %253 = memref.load %arg4[%c72] : memref<98xf32, #tpu.memory_space<smem>>
    %254 = vector.broadcast %253 : f32 to vector<8x256xf32>
    %255 = arith.mulf %25, %254 : vector<8x256xf32>
    %256 = arith.addf %252, %255 : vector<8x256xf32>
    %c24 = arith.constant 24 : index
    %257 = memref.load %arg4[%c24] : memref<98xf32, #tpu.memory_space<smem>>
    %258 = vector.broadcast %257 : f32 to vector<8x256xf32>
    %259 = arith.mulf %28, %258 : vector<8x256xf32>
    %260 = arith.addf %256, %259 : vector<8x256xf32>
    %c73 = arith.constant 73 : index
    %261 = memref.load %arg4[%c73] : memref<98xf32, #tpu.memory_space<smem>>
    %262 = vector.broadcast %261 : f32 to vector<8x256xf32>
    %263 = arith.mulf %30, %262 : vector<8x256xf32>
    %264 = arith.addf %260, %263 : vector<8x256xf32>
    %c25 = arith.constant 25 : index
    %265 = memref.load %arg4[%c25] : memref<98xf32, #tpu.memory_space<smem>>
    %266 = vector.broadcast %265 : f32 to vector<8x256xf32>
    %267 = arith.mulf %35, %266 : vector<8x256xf32>
    %268 = arith.addf %264, %267 : vector<8x256xf32>
    %c74 = arith.constant 74 : index
    %269 = memref.load %arg4[%c74] : memref<98xf32, #tpu.memory_space<smem>>
    %270 = vector.broadcast %269 : f32 to vector<8x256xf32>
    %271 = arith.mulf %37, %270 : vector<8x256xf32>
    %272 = arith.addf %268, %271 : vector<8x256xf32>
    %c26 = arith.constant 26 : index
    %273 = memref.load %arg4[%c26] : memref<98xf32, #tpu.memory_space<smem>>
    %274 = vector.broadcast %273 : f32 to vector<8x256xf32>
    %275 = arith.mulf %42, %274 : vector<8x256xf32>
    %276 = arith.addf %272, %275 : vector<8x256xf32>
    %c75 = arith.constant 75 : index
    %277 = memref.load %arg4[%c75] : memref<98xf32, #tpu.memory_space<smem>>
    %278 = vector.broadcast %277 : f32 to vector<8x256xf32>
    %279 = arith.mulf %44, %278 : vector<8x256xf32>
    %280 = arith.addf %276, %279 : vector<8x256xf32>
    %c27 = arith.constant 27 : index
    %281 = memref.load %arg4[%c27] : memref<98xf32, #tpu.memory_space<smem>>
    %282 = vector.broadcast %281 : f32 to vector<8x256xf32>
    %283 = arith.mulf %49, %282 : vector<8x256xf32>
    %284 = arith.addf %280, %283 : vector<8x256xf32>
    %c76 = arith.constant 76 : index
    %285 = memref.load %arg4[%c76] : memref<98xf32, #tpu.memory_space<smem>>
    %286 = vector.broadcast %285 : f32 to vector<8x256xf32>
    %287 = arith.mulf %51, %286 : vector<8x256xf32>
    %288 = arith.addf %284, %287 : vector<8x256xf32>
    %c3_32 = arith.constant 3 : index
    %c0_33 = arith.constant 0 : index
    %289 = vector.load %arg3[%c3_32, %c0_33] : memref<7x256xf32, #tpu.memory_space<vmem>>, vector<1x256xf32>
    %290 = vector.broadcast %289 : vector<1x256xf32> to vector<8x256xf32>
    %291 = arith.mulf %288, %290 : vector<8x256xf32>
    %292 = arith.addf %233, %291 : vector<8x256xf32>
    %c28 = arith.constant 28 : index
    %293 = memref.load %arg4[%c28] : memref<98xf32, #tpu.memory_space<smem>>
    %294 = vector.broadcast %293 : f32 to vector<8x256xf32>
    %295 = arith.mulf %9, %294 : vector<8x256xf32>
    %c77 = arith.constant 77 : index
    %296 = memref.load %arg4[%c77] : memref<98xf32, #tpu.memory_space<smem>>
    %297 = vector.broadcast %296 : f32 to vector<8x256xf32>
    %298 = arith.mulf %11, %297 : vector<8x256xf32>
    %299 = arith.addf %295, %298 : vector<8x256xf32>
    %c29 = arith.constant 29 : index
    %300 = memref.load %arg4[%c29] : memref<98xf32, #tpu.memory_space<smem>>
    %301 = vector.broadcast %300 : f32 to vector<8x256xf32>
    %302 = arith.mulf %16, %301 : vector<8x256xf32>
    %303 = arith.addf %299, %302 : vector<8x256xf32>
    %c78 = arith.constant 78 : index
    %304 = memref.load %arg4[%c78] : memref<98xf32, #tpu.memory_space<smem>>
    %305 = vector.broadcast %304 : f32 to vector<8x256xf32>
    %306 = arith.mulf %18, %305 : vector<8x256xf32>
    %307 = arith.addf %303, %306 : vector<8x256xf32>
    %c30 = arith.constant 30 : index
    %308 = memref.load %arg4[%c30] : memref<98xf32, #tpu.memory_space<smem>>
    %309 = vector.broadcast %308 : f32 to vector<8x256xf32>
    %310 = arith.mulf %23, %309 : vector<8x256xf32>
    %311 = arith.addf %307, %310 : vector<8x256xf32>
    %c79 = arith.constant 79 : index
    %312 = memref.load %arg4[%c79] : memref<98xf32, #tpu.memory_space<smem>>
    %313 = vector.broadcast %312 : f32 to vector<8x256xf32>
    %314 = arith.mulf %25, %313 : vector<8x256xf32>
    %315 = arith.addf %311, %314 : vector<8x256xf32>
    %c31 = arith.constant 31 : index
    %316 = memref.load %arg4[%c31] : memref<98xf32, #tpu.memory_space<smem>>
    %317 = vector.broadcast %316 : f32 to vector<8x256xf32>
    %318 = arith.mulf %28, %317 : vector<8x256xf32>
    %319 = arith.addf %315, %318 : vector<8x256xf32>
    %c80 = arith.constant 80 : index
    %320 = memref.load %arg4[%c80] : memref<98xf32, #tpu.memory_space<smem>>
    %321 = vector.broadcast %320 : f32 to vector<8x256xf32>
    %322 = arith.mulf %30, %321 : vector<8x256xf32>
    %323 = arith.addf %319, %322 : vector<8x256xf32>
    %c32 = arith.constant 32 : index
    %324 = memref.load %arg4[%c32] : memref<98xf32, #tpu.memory_space<smem>>
    %325 = vector.broadcast %324 : f32 to vector<8x256xf32>
    %326 = arith.mulf %35, %325 : vector<8x256xf32>
    %327 = arith.addf %323, %326 : vector<8x256xf32>
    %c81 = arith.constant 81 : index
    %328 = memref.load %arg4[%c81] : memref<98xf32, #tpu.memory_space<smem>>
    %329 = vector.broadcast %328 : f32 to vector<8x256xf32>
    %330 = arith.mulf %37, %329 : vector<8x256xf32>
    %331 = arith.addf %327, %330 : vector<8x256xf32>
    %c33 = arith.constant 33 : index
    %332 = memref.load %arg4[%c33] : memref<98xf32, #tpu.memory_space<smem>>
    %333 = vector.broadcast %332 : f32 to vector<8x256xf32>
    %334 = arith.mulf %42, %333 : vector<8x256xf32>
    %335 = arith.addf %331, %334 : vector<8x256xf32>
    %c82 = arith.constant 82 : index
    %336 = memref.load %arg4[%c82] : memref<98xf32, #tpu.memory_space<smem>>
    %337 = vector.broadcast %336 : f32 to vector<8x256xf32>
    %338 = arith.mulf %44, %337 : vector<8x256xf32>
    %339 = arith.addf %335, %338 : vector<8x256xf32>
    %c34 = arith.constant 34 : index
    %340 = memref.load %arg4[%c34] : memref<98xf32, #tpu.memory_space<smem>>
    %341 = vector.broadcast %340 : f32 to vector<8x256xf32>
    %342 = arith.mulf %49, %341 : vector<8x256xf32>
    %343 = arith.addf %339, %342 : vector<8x256xf32>
    %c83 = arith.constant 83 : index
    %344 = memref.load %arg4[%c83] : memref<98xf32, #tpu.memory_space<smem>>
    %345 = vector.broadcast %344 : f32 to vector<8x256xf32>
    %346 = arith.mulf %51, %345 : vector<8x256xf32>
    %347 = arith.addf %343, %346 : vector<8x256xf32>
    %c240_i32 = arith.constant 240 : i32
    %348 = tpu.dynamic_rotate %347 by %c240_i32 dim 1 : vector<8x256xf32>, i32 -> vector<8x256xf32>
    %c4_34 = arith.constant 4 : index
    %c0_35 = arith.constant 0 : index
    %349 = vector.load %arg3[%c4_34, %c0_35] : memref<7x256xf32, #tpu.memory_space<vmem>>, vector<1x256xf32>
    %350 = vector.broadcast %349 : vector<1x256xf32> to vector<8x256xf32>
    %351 = arith.mulf %348, %350 : vector<8x256xf32>
    %352 = arith.addf %292, %351 : vector<8x256xf32>
    %c35 = arith.constant 35 : index
    %353 = memref.load %arg4[%c35] : memref<98xf32, #tpu.memory_space<smem>>
    %354 = vector.broadcast %353 : f32 to vector<8x256xf32>
    %355 = arith.mulf %9, %354 : vector<8x256xf32>
    %c84 = arith.constant 84 : index
    %356 = memref.load %arg4[%c84] : memref<98xf32, #tpu.memory_space<smem>>
    %357 = vector.broadcast %356 : f32 to vector<8x256xf32>
    %358 = arith.mulf %11, %357 : vector<8x256xf32>
    %359 = arith.addf %355, %358 : vector<8x256xf32>
    %c36 = arith.constant 36 : index
    %360 = memref.load %arg4[%c36] : memref<98xf32, #tpu.memory_space<smem>>
    %361 = vector.broadcast %360 : f32 to vector<8x256xf32>
    %362 = arith.mulf %16, %361 : vector<8x256xf32>
    %363 = arith.addf %359, %362 : vector<8x256xf32>
    %c85 = arith.constant 85 : index
    %364 = memref.load %arg4[%c85] : memref<98xf32, #tpu.memory_space<smem>>
    %365 = vector.broadcast %364 : f32 to vector<8x256xf32>
    %366 = arith.mulf %18, %365 : vector<8x256xf32>
    %367 = arith.addf %363, %366 : vector<8x256xf32>
    %c37 = arith.constant 37 : index
    %368 = memref.load %arg4[%c37] : memref<98xf32, #tpu.memory_space<smem>>
    %369 = vector.broadcast %368 : f32 to vector<8x256xf32>
    %370 = arith.mulf %23, %369 : vector<8x256xf32>
    %371 = arith.addf %367, %370 : vector<8x256xf32>
    %c86 = arith.constant 86 : index
    %372 = memref.load %arg4[%c86] : memref<98xf32, #tpu.memory_space<smem>>
    %373 = vector.broadcast %372 : f32 to vector<8x256xf32>
    %374 = arith.mulf %25, %373 : vector<8x256xf32>
    %375 = arith.addf %371, %374 : vector<8x256xf32>
    %c38 = arith.constant 38 : index
    %376 = memref.load %arg4[%c38] : memref<98xf32, #tpu.memory_space<smem>>
    %377 = vector.broadcast %376 : f32 to vector<8x256xf32>
    %378 = arith.mulf %28, %377 : vector<8x256xf32>
    %379 = arith.addf %375, %378 : vector<8x256xf32>
    %c87 = arith.constant 87 : index
    %380 = memref.load %arg4[%c87] : memref<98xf32, #tpu.memory_space<smem>>
    %381 = vector.broadcast %380 : f32 to vector<8x256xf32>
    %382 = arith.mulf %30, %381 : vector<8x256xf32>
    %383 = arith.addf %379, %382 : vector<8x256xf32>
    %c39 = arith.constant 39 : index
    %384 = memref.load %arg4[%c39] : memref<98xf32, #tpu.memory_space<smem>>
    %385 = vector.broadcast %384 : f32 to vector<8x256xf32>
    %386 = arith.mulf %35, %385 : vector<8x256xf32>
    %387 = arith.addf %383, %386 : vector<8x256xf32>
    %c88 = arith.constant 88 : index
    %388 = memref.load %arg4[%c88] : memref<98xf32, #tpu.memory_space<smem>>
    %389 = vector.broadcast %388 : f32 to vector<8x256xf32>
    %390 = arith.mulf %37, %389 : vector<8x256xf32>
    %391 = arith.addf %387, %390 : vector<8x256xf32>
    %c40 = arith.constant 40 : index
    %392 = memref.load %arg4[%c40] : memref<98xf32, #tpu.memory_space<smem>>
    %393 = vector.broadcast %392 : f32 to vector<8x256xf32>
    %394 = arith.mulf %42, %393 : vector<8x256xf32>
    %395 = arith.addf %391, %394 : vector<8x256xf32>
    %c89 = arith.constant 89 : index
    %396 = memref.load %arg4[%c89] : memref<98xf32, #tpu.memory_space<smem>>
    %397 = vector.broadcast %396 : f32 to vector<8x256xf32>
    %398 = arith.mulf %44, %397 : vector<8x256xf32>
    %399 = arith.addf %395, %398 : vector<8x256xf32>
    %c41 = arith.constant 41 : index
    %400 = memref.load %arg4[%c41] : memref<98xf32, #tpu.memory_space<smem>>
    %401 = vector.broadcast %400 : f32 to vector<8x256xf32>
    %402 = arith.mulf %49, %401 : vector<8x256xf32>
    %403 = arith.addf %399, %402 : vector<8x256xf32>
    %c90 = arith.constant 90 : index
    %404 = memref.load %arg4[%c90] : memref<98xf32, #tpu.memory_space<smem>>
    %405 = vector.broadcast %404 : f32 to vector<8x256xf32>
    %406 = arith.mulf %51, %405 : vector<8x256xf32>
    %407 = arith.addf %403, %406 : vector<8x256xf32>
    %c224_i32 = arith.constant 224 : i32
    %408 = tpu.dynamic_rotate %407 by %c224_i32 dim 1 : vector<8x256xf32>, i32 -> vector<8x256xf32>
    %c5_36 = arith.constant 5 : index
    %c0_37 = arith.constant 0 : index
    %409 = vector.load %arg3[%c5_36, %c0_37] : memref<7x256xf32, #tpu.memory_space<vmem>>, vector<1x256xf32>
    %410 = vector.broadcast %409 : vector<1x256xf32> to vector<8x256xf32>
    %411 = arith.mulf %408, %410 : vector<8x256xf32>
    %412 = arith.addf %352, %411 : vector<8x256xf32>
    %c42 = arith.constant 42 : index
    %413 = memref.load %arg4[%c42] : memref<98xf32, #tpu.memory_space<smem>>
    %414 = vector.broadcast %413 : f32 to vector<8x256xf32>
    %415 = arith.mulf %9, %414 : vector<8x256xf32>
    %c91 = arith.constant 91 : index
    %416 = memref.load %arg4[%c91] : memref<98xf32, #tpu.memory_space<smem>>
    %417 = vector.broadcast %416 : f32 to vector<8x256xf32>
    %418 = arith.mulf %11, %417 : vector<8x256xf32>
    %419 = arith.addf %415, %418 : vector<8x256xf32>
    %c43 = arith.constant 43 : index
    %420 = memref.load %arg4[%c43] : memref<98xf32, #tpu.memory_space<smem>>
    %421 = vector.broadcast %420 : f32 to vector<8x256xf32>
    %422 = arith.mulf %16, %421 : vector<8x256xf32>
    %423 = arith.addf %419, %422 : vector<8x256xf32>
    %c92 = arith.constant 92 : index
    %424 = memref.load %arg4[%c92] : memref<98xf32, #tpu.memory_space<smem>>
    %425 = vector.broadcast %424 : f32 to vector<8x256xf32>
    %426 = arith.mulf %18, %425 : vector<8x256xf32>
    %427 = arith.addf %423, %426 : vector<8x256xf32>
    %c44 = arith.constant 44 : index
    %428 = memref.load %arg4[%c44] : memref<98xf32, #tpu.memory_space<smem>>
    %429 = vector.broadcast %428 : f32 to vector<8x256xf32>
    %430 = arith.mulf %23, %429 : vector<8x256xf32>
    %431 = arith.addf %427, %430 : vector<8x256xf32>
    %c93 = arith.constant 93 : index
    %432 = memref.load %arg4[%c93] : memref<98xf32, #tpu.memory_space<smem>>
    %433 = vector.broadcast %432 : f32 to vector<8x256xf32>
    %434 = arith.mulf %25, %433 : vector<8x256xf32>
    %435 = arith.addf %431, %434 : vector<8x256xf32>
    %c45 = arith.constant 45 : index
    %436 = memref.load %arg4[%c45] : memref<98xf32, #tpu.memory_space<smem>>
    %437 = vector.broadcast %436 : f32 to vector<8x256xf32>
    %438 = arith.mulf %28, %437 : vector<8x256xf32>
    %439 = arith.addf %435, %438 : vector<8x256xf32>
    %c94 = arith.constant 94 : index
    %440 = memref.load %arg4[%c94] : memref<98xf32, #tpu.memory_space<smem>>
    %441 = vector.broadcast %440 : f32 to vector<8x256xf32>
    %442 = arith.mulf %30, %441 : vector<8x256xf32>
    %443 = arith.addf %439, %442 : vector<8x256xf32>
    %c46 = arith.constant 46 : index
    %444 = memref.load %arg4[%c46] : memref<98xf32, #tpu.memory_space<smem>>
    %445 = vector.broadcast %444 : f32 to vector<8x256xf32>
    %446 = arith.mulf %35, %445 : vector<8x256xf32>
    %447 = arith.addf %443, %446 : vector<8x256xf32>
    %c95 = arith.constant 95 : index
    %448 = memref.load %arg4[%c95] : memref<98xf32, #tpu.memory_space<smem>>
    %449 = vector.broadcast %448 : f32 to vector<8x256xf32>
    %450 = arith.mulf %37, %449 : vector<8x256xf32>
    %451 = arith.addf %447, %450 : vector<8x256xf32>
    %c47 = arith.constant 47 : index
    %452 = memref.load %arg4[%c47] : memref<98xf32, #tpu.memory_space<smem>>
    %453 = vector.broadcast %452 : f32 to vector<8x256xf32>
    %454 = arith.mulf %42, %453 : vector<8x256xf32>
    %455 = arith.addf %451, %454 : vector<8x256xf32>
    %c96 = arith.constant 96 : index
    %456 = memref.load %arg4[%c96] : memref<98xf32, #tpu.memory_space<smem>>
    %457 = vector.broadcast %456 : f32 to vector<8x256xf32>
    %458 = arith.mulf %44, %457 : vector<8x256xf32>
    %459 = arith.addf %455, %458 : vector<8x256xf32>
    %c48 = arith.constant 48 : index
    %460 = memref.load %arg4[%c48] : memref<98xf32, #tpu.memory_space<smem>>
    %461 = vector.broadcast %460 : f32 to vector<8x256xf32>
    %462 = arith.mulf %49, %461 : vector<8x256xf32>
    %463 = arith.addf %459, %462 : vector<8x256xf32>
    %c97 = arith.constant 97 : index
    %464 = memref.load %arg4[%c97] : memref<98xf32, #tpu.memory_space<smem>>
    %465 = vector.broadcast %464 : f32 to vector<8x256xf32>
    %466 = arith.mulf %51, %465 : vector<8x256xf32>
    %467 = arith.addf %463, %466 : vector<8x256xf32>
    %c208_i32 = arith.constant 208 : i32
    %468 = tpu.dynamic_rotate %467 by %c208_i32 dim 1 : vector<8x256xf32>, i32 -> vector<8x256xf32>
    %c6_38 = arith.constant 6 : index
    %c0_39 = arith.constant 0 : index
    %469 = vector.load %arg3[%c6_38, %c0_39] : memref<7x256xf32, #tpu.memory_space<vmem>>, vector<1x256xf32>
    %470 = vector.broadcast %469 : vector<1x256xf32> to vector<8x256xf32>
    %471 = arith.mulf %468, %470 : vector<8x256xf32>
    %472 = arith.addf %412, %471 : vector<8x256xf32>
    %473 = arith.negf %472 : vector<8x256xf32>
    %474 = math.exp %473 : vector<8x256xf32>
    %cst_40 = arith.constant 1.000000e+00 : f32
    %475 = vector.broadcast %cst_40 : f32 to vector<8x256xf32>
    %476 = arith.addf %475, %474 : vector<8x256xf32>
    %477 = arith.divf %475, %476 : vector<8x256xf32>
    %c0_41 = arith.constant 0 : index
    %c0_42 = arith.constant 0 : index
    %478 = vector.load %arg6[%c0_41, %c0_42] : memref<8x256xf32, #tpu.memory_space<vmem>>, vector<8x256xf32>
    tpu.vector_store %arg6[%c0_41, %c0_42], %477 {strides = array<i32>} : memref<8x256xf32, #tpu.memory_space<vmem>>, vector<8x256xf32>,
    return
  }
  func.func @transform_0(%arg0: i32) -> (i32, i32, i32) {
    %c0_i32 = arith.constant 0 : i32
    %c0_i32_0 = arith.constant 0 : i32
    %c0_i32_1 = arith.constant 0 : i32
    return %arg0, %c0_i32, %c0_i32_0 : i32, i32, i32
  }
  func.func @transform_1(%arg0: i32) -> (i32, i32) {
    %c0_i32 = arith.constant 0 : i32
    %c0_i32_0 = arith.constant 0 : i32
    %c0_i32_1 = arith.constant 0 : i32
    return %c0_i32, %c0_i32_0 : i32, i32
  }
  func.func @transform_2(%arg0: i32) -> (i32, i32) {
    %c0_i32 = arith.constant 0 : i32
    %c0_i32_0 = arith.constant 0 : i32
    %c0_i32_1 = arith.constant 0 : i32
    return %c0_i32, %c0_i32_0 : i32, i32
  }
  func.func @transform_3(%arg0: i32) -> i32 {
    %c0_i32 = arith.constant 0 : i32
    %c0_i32_0 = arith.constant 0 : i32
    return %c0_i32 : i32
  }
  func.func @transform_4(%arg0: i32) -> i32 {
    %c0_i32 = arith.constant 0 : i32
    %c0_i32_0 = arith.constant 0 : i32
    return %c0_i32 : i32
  }
  func.func @transform_5(%arg0: i32) -> (i32, i32) {
    %c0_i32 = arith.constant 0 : i32
    %c0_i32_0 = arith.constant 0 : i32
    return %arg0, %c0_i32 : i32, i32
  }
}

</mosaic_0001>

<bundles_post_ra>
// kernel: tpu_custom_call.1
= control target key start
LH: loop header
LB: loop body
LE: loop exit
PB: predicated region body
PF: predicated region fallthrough
CT: control target
= control target key end

     0   :  { %s4893_s0 = inlined_call_operand.hbm [shape: f32[8,4,256], index: 0, kind: input, shape index: {}]   ;;  %s4894_s1 = inlined_call_operand.hbm [shape: f32[7,256], index: 1, kind: input, shape index: {}]   ;;  %s4895_s2 = inlined_call_operand.hbm [shape: f32[7,256], index: 2, kind: input, shape index: {}]   ;;  %s4896_s3 = inlined_call_operand.vmem [shape: f32[98], index: 3, kind: input, shape index: {}]   ;;  %s4897_s4 = inlined_call_operand.<no memory space> [shape: f32[1], index: 4, kind: input, shape index: {}]   ;;  %s4898_s5 = inlined_call_operand.hbm [shape: f32[8,256], index: 5, kind: output, shape index: {}]  }
   0x1   :  { %5070 = sst [smem:[#allocation138_spill]] %s4897_s4 }
   0x2   :  { %5071 = sst [smem:[#allocation139_spill]] %s4898_s5 }
   0x3   :  { %11 = vsyncpa [#allocation4], 0 }
   0x4   :  { %12 = vsyncpa [#allocation8], 0 }
   0x5   :  { %13 = vsyncpa [#allocation6], 0 }
   0x6   :  { %14 = vsyncpa [#allocation5], 0  ;;  %s2491_s18 = smov [#allocation7]   ;;  %s2492_s20 = smov [#allocation3]  }
   0x7   :  { %s33_s19 = sshll.u32 %s2491_s18, 4  ;;  %s20_s21 = sshll.u32 %s2492_s20, 4  ;;  %s34_s19 = int_to_ptr.vmem [resolvable:$true] %s33_s19  ;;  %s2540_s21 = int_to_ptr.vmem [resolvable:$true] %s20_s21 }
   0x8   :  { %s2383_s24 = scalar_lea.hbm %s4894_s1, 256 }
   0x9   :  { %p2384_p0 = scmp.ne.s32.totalorder %s4894_s1, %s2383_s24  ;;  %p2387_p1 = scmp.lt.u32.totalorder %s2383_s24, %s4894_s1 }
   0xb   :  { %p2389_p2 = pnand %p2387_p1, %p2384_p0 }
   0xd   :  { %2392 = shalt.err (!%p2389_p2)
}
   0xe   :  { %s2393_s29 = scalar_lea.vmem %s34_s19, 256  ;;  %p2398_p4 = scmp.lt.s32.totalorder %s34_s19, %s34_s19 }
   0xf   :  { %p2394_p3 = scmp.ne.s32.totalorder %s34_s19, %s2393_s29  ;;  %p2399_p5 = scmp.lt.s32.totalorder %s2393_s29, %s2393_s29 }
  0x11   :  { %p2400_p6 = por %p2399_p5, %p2398_p4 }
  0x13   :  { %p2401_p7 = pnand %p2400_p6, %p2394_p3 }
  0x15   :  { %2404 = shalt.err (!%p2401_p7)
}
  0x16   :  { %36 = dma.hbm_to_vmem [thread:$0]  %s4894_s1, 256, %s34_s19, [#allocation8]  }
  0x17   :  { %s2405_s9 = scalar_lea.hbm %s4893_s0, 1024 }
  0x18   :  { %p2406_p8 = scmp.ne.s32.totalorder %s4893_s0, %s2405_s9  ;;  %p2409_p9 = scmp.lt.u32.totalorder %s2405_s9, %s4893_s0 }
  0x1a   :  { %p2411_p10 = pnand %p2409_p9, %p2406_p8 }
  0x1c   :  { %2414 = shalt.err (!%p2411_p10)
}
  0x1d   :  { %s2415_s14 = scalar_lea.vmem %s2540_s21, 1024  ;;  %p2420_p12 = scmp.lt.s32.totalorder %s2540_s21, %s2540_s21 }
  0x1e   :  { %p2416_p11 = scmp.ne.s32.totalorder %s2540_s21, %s2415_s14  ;;  %p2421_p13 = scmp.lt.s32.totalorder %s2415_s14, %s2415_s14 }
  0x20   :  { %p2422_p0 = por %p2421_p13, %p2420_p12 }
  0x22   :  { %p2423_p1 = pnand %p2422_p0, %p2416_p11 }
  0x24   :  { %2426 = shalt.err (!%p2423_p1)
}
  0x25   :  { %s2493_s1 = smov 128   ;;  %s2494_s15 = smov 8  }
  0x26   :  { %26 = dma.hbm_to_vmem [thread:$0]  %s4893_s0, 1024, %s2540_s21, [#allocation4], %s2493_s1, %s2493_s1, %s2494_s15  }
  0x27   :  { %s53_s20 = sshll.u32 %s4896_s3, 4  ;;  %s2495_s22 = smov [#allocation9]   ;;  %s54_s20 = int_to_ptr.vmem [resolvable:$true] %s53_s20 }
  0x28   :  { %s43_s23 = sshll.u32 %s2495_s22, 4  ;;  %s2427_s26 = scalar_lea.hbm %s4895_s2, 256  ;;  %s44_s23 = int_to_ptr.vmem [resolvable:$true] %s43_s23 }
  0x29   :  { %p2428_p2 = scmp.ne.s32.totalorder %s4895_s2, %s2427_s26  ;;  %p2431_p3 = scmp.lt.u32.totalorder %s2427_s26, %s4895_s2 }
  0x2b   :  { %p2433_p4 = pnand %p2431_p3, %p2428_p2 }
  0x2d   :  { %2436 = shalt.err (!%p2433_p4)
}
  0x2e   :  { %s2437_s0 = scalar_lea.vmem %s44_s23, 256  ;;  %p2442_p6 = scmp.lt.s32.totalorder %s44_s23, %s44_s23 }
  0x2f   :  { %p2438_p5 = scmp.ne.s32.totalorder %s44_s23, %s2437_s0  ;;  %p2443_p7 = scmp.lt.s32.totalorder %s2437_s0, %s2437_s0 }
  0x31   :  { %p2444_p8 = por %p2443_p7, %p2442_p6 }
  0x33   :  { %p2445_p9 = pnand %p2444_p8, %p2438_p5 }
  0x35   :  { %2448 = shalt.err (!%p2445_p9)
}
  0x36   :  { %46 = dma.hbm_to_vmem [thread:$0]  %s4895_s2, 256, %s44_s23, [#allocation8]  }
  0x37   :  { %s2449_s6 = scalar_lea.vmem %s54_s20, 16  ;;  %p2454_p11 = scmp.lt.s32.totalorder %s54_s20, %s54_s20 }
  0x38   :  { %p2450_p10 = scmp.ne.s32.totalorder %s54_s20, %s2449_s6  ;;  %p2455_p12 = scmp.lt.s32.totalorder %s2449_s6, %s2449_s6 }
  0x3a   :  { %p2456_p13 = por %p2455_p12, %p2454_p11 }
  0x3c   :  { %p2457_p0 = pnand %p2456_p13, %p2450_p10 }
  0x3e   :  { %2460 = shalt.err (!%p2457_p0)
}
  0x3f   :  { %s2496_s7 = smov [#allocation10]  }
  0x40   :  { %56 = dma.vmem_to_smem %s54_s20, 16, %s2496_s7, [#allocation6]  }
  0x41   :  { %2483 = dma.done.wait [#allocation4], 1024  }
  0x42   :  { %2484 = vsyncadd [#allocation4], 4294966272 }
  0x43   :  { %2485 = dma.done.wait [#allocation8], 512  }
  0x44   :  { %2486 = vsyncadd [#allocation8], 4294966784 }
  0x45   :  { %2487 = dma.done.wait [#allocation6], 16  }
  0x46   :  { %2488 = vsyncadd [#allocation6], 4294967280 }
  0x47   :  { %71 = sfence }
  0x48   :  { %v2586_v0 = vld [vmem:[#allocation3] sm:$0xff]  ;;  %v2588_v1 = vld [vmem:[#allocation3 + $0x8] sm:$0xff]  ;;  %v2590_v2 = vld [vmem:[#allocation3 + $0x10] sm:$0xff]  ;;  %vm104_vm0 = vcmask 1043456   ;;  %vm361_vm1 = vcmask 1041409   ;;  %vm363_vm2 = vcmask 1042434   ;;  %v388_v59 = vlaneseq }
  0x49   :  { %v2592_v3 = vld [vmem:[#allocation3 + $0x18] sm:$0xff]  ;;  %v2594_v4 = vld [vmem:[#allocation3 + $0x20] sm:$0xff]  ;;  %v2596_v5 = vld [vmem:[#allocation3 + $0x28] sm:$0xff]  ;;  %v217_v6 = vsel %vm104_vm0, %v2586_v0, -inf  ;;  %v231_v7 = vsel %vm104_vm0, %v2588_v1, -inf  ;;  %v245_v8 = vsel %vm104_vm0, %v2590_v2, -inf  ;;  %v2630_v62 = vcombine.high %v2586_v0, %v2586_v0 }
  0x4a   :  { %v2604_v9 = vld [vmem:[#allocation3 + $0x30] sm:$0xff]  ;;  %v2606_v10 = vld [vmem:[#allocation3 + $0x38] sm:$0xff]  ;;  %v218_v11 = vrot.slane %v217_v6, 4  ;;  %v232_v12 = vrot.slane %v231_v7, 4  ;;  %v246_v13 = vrot.slane %v245_v8, 4  ;;  %v259_v14 = vsel %vm104_vm0, %v2592_v3, -inf }
  0x4b   :  { %v260_v15 = vrot.slane %v259_v14, 4  ;;  %v273_v16 = vsel %vm104_vm0, %v2594_v4, -inf  ;;  %v287_v17 = vsel %vm104_vm0, %v2596_v5, -inf  ;;  %v301_v18 = vsel %vm104_vm0, %v2604_v9, -inf  ;;  %s2497_s2 = smov 2   ;;  %s2498_s8 = smov 3  }
  0x4c   :  { %v219_v19 = vmax.f32 %v217_v6, %v218_v11  ;;  %v233_v20 = vmax.f32 %v231_v7, %v232_v12  ;;  %v247_v21 = vmax.f32 %v245_v8, %v246_v13  ;;  %v274_v22 = vrot.slane %v273_v16, 4  ;;  %s2499_s9 = smov 1   ;;  %s2862_s10 = sld [smem:[#allocation10 + $0x31]] }
  0x4d   :  { %v261_v23 = vmax.f32 %v259_v14, %v260_v15  ;;  %v288_v24 = vrot.slane %v287_v17, 4  ;;  %v302_v25 = vrot.slane %v301_v18, 4  ;;  %v315_v26 = vsel %vm104_vm0, %v2606_v10, -inf  ;;  %s2864_s11 = sld [smem:[#allocation10 + $0x38]]  ;;  %s2870_s12 = sld [smem:[#allocation10 + $0x3f]] }
  0x4e   :  { %v220_v27 = vrot.slane %v219_v19, 2  ;;  %v234_v28 = vrot.slane %v233_v20, 2  ;;  %v248_v29 = vrot.slane %v247_v21, 2  ;;  %v275_v30 = vmax.f32 %v273_v16, %v274_v22  ;;  %s2877_s13 = sld [smem:[#allocation10 + $0x46]]  ;;  %s2879_s14 = sld [smem:[#allocation10 + $0x4d]] }
  0x4f   :  { %v262_v31 = vrot.slane %v261_v23, 2  ;;  %v289_v32 = vmax.f32 %v287_v17, %v288_v24  ;;  %v303_v33 = vmax.f32 %v301_v18, %v302_v25  ;;  %v316_v34 = vrot.slane %v315_v26, 4  ;;  %s2882_s1 = sld [smem:[#allocation10 + $0x54]]  ;;  %s2884_s15 = sld [smem:[#allocation10 + $0x5b]] }
  0x50   :  { %v221_v35 = vmax.f32 %v219_v19, %v220_v27  ;;  %v235_v36 = vmax.f32 %v233_v20, %v234_v28  ;;  %v249_v37 = vmax.f32 %v247_v21, %v248_v29  ;;  %v276_v38 = vrot.slane %v275_v30, 2  ;;  %s2899_s16 = sld [smem:[#allocation10 + $0x1]]  ;;  %s2901_s17 = sld [smem:[#allocation10 + $0x8]] }
  0x51   :  { %v263_v39 = vmax.f32 %v261_v23, %v262_v31  ;;  %v290_v40 = vrot.slane %v289_v32, 2  ;;  %v304_v41 = vrot.slane %v303_v33, 2  ;;  %v317_v42 = vmax.f32 %v315_v26, %v316_v34  ;;  %s2904_s18 = sld [smem:[#allocation10 + $0xf]]  ;;  %s2922_s19 = sld [smem:[#allocation10 + $0x16]] }
  0x52   :  { %v222_v43 = vrot.slane %v221_v35, 1  ;;  %v236_v44 = vrot.slane %v235_v36, 1  ;;  %v250_v45 = vrot.slane %v249_v37, 1  ;;  %v277_v46 = vmax.f32 %v275_v30, %v276_v38  ;;  %s2924_s20 = sld [smem:[#allocation10 + $0x1d]]  ;;  %s2939_s22 = sld [smem:[#allocation10 + $0x24]] }
  0x53   :  { %v264_v47 = vrot.slane %v263_v39, 1  ;;  %v291_v48 = vmax.f32 %v289_v32, %v290_v40  ;;  %v305_v49 = vmax.f32 %v303_v33, %v304_v41  ;;  %v318_v50 = vrot.slane %v317_v42, 2  ;;  %s2941_s23 = sld [smem:[#allocation10 + $0x2b]]  ;;  %s2956_s24 = sld [smem:[#allocation10]] }
  0x54   :  { %v2618_v51 = vmax.f32 %v221_v35, %v222_v43  ;;  %v2620_v52 = vmax.f32 %v235_v36, %v236_v44  ;;  %v278_v53 = vrot.slane %v277_v46, 1  ;;  %v2622_v54 = vmax.f32 %v249_v37, %v250_v45  ;;  %s2958_s25 = sld [smem:[#allocation10 + $0x7]]  ;;  %s2974_s26 = sld [smem:[#allocation10 + $0xe]] }
  0x55   :  { %v292_v55 = vrot.slane %v291_v48, 1  ;;  %v306_v56 = vrot.slane %v305_v49, 1  ;;  %v319_v57 = vmax.f32 %v317_v42, %v318_v50  ;;  %v2624_v58 = vmax.f32 %v263_v39, %v264_v47  ;;  %s2976_s27 = sld [smem:[#allocation10 + $0x15]]  ;;  %s2991_s28 = sld [smem:[#allocation10 + $0x1c]] }
  0x56   :  { %v2626_v60 = vmax.f32 %v277_v46, %v278_v53  ;;  %vm365_vm3 = vcmask 1043459   ;;  %vm367_vm4 = vcmask 1044484   ;;  %v409_v6 = vsel %vm361_vm1, %v2620_v52, %v2618_v51  ;;  %s2993_s29 = sld [smem:[#allocation10 + $0x3]]  ;;  %s3019_s0 = sld [smem:[#allocation10 + $0x2a]] }
  0x57   :  { %v320_v61 = vrot.slane %v319_v57, 1  ;;  %v2632_v63 = vmax.f32 %v291_v48, %v292_v55  ;;  %v2639_v7 = vcombine.high %v2588_v1, %v2588_v1  ;;  %v2641_v8 = vmax.f32 %v305_v49, %v306_v56  ;;  %s3017_s30 = sld [smem:[#allocation10 + $0x23]]  ;;  %s2500_s3 = smov 127  }
  0x58   :  { %vm369_vm5 = vcmask 1045509   ;;  %v410_v11 = vsel %vm363_vm2, %v2622_v54, %v409_v6  ;;  %v2647_v12 = vcombine.high %v2590_v2, %v2590_v2  ;;  %vm371_vm6 = vcmask 1046534   ;;  %s3043_s21 = sld [smem:[#allocation10 + $0x34]]  ;;  %s3077_s6 = sld [smem:[#allocation10 + $0x32]] }
  0x59   :  { %v2649_v13 = vmax.f32 %v319_v57, %v320_v61  ;;  %v411_v14 = vsel %vm365_vm3, %v2624_v58, %v410_v11  ;;  %v2655_v15 = vcombine.high %v2592_v3, %v2592_v3  ;;  %vm373_vm7 = vcmask 1047559   ;;  %s3079_s7 = sld [smem:[#allocation10 + $0x2]]  ;;  %s5129_s5 = smov 125  }
  0x5a   :  { %v412_v16 = vsel %vm367_vm4, %v2626_v60, %v411_v14  ;;  %v2661_v17 = vcombine.high %v2594_v4, %v2594_v4  ;;  %v224_v18 = vsel %vm104_vm0, %v2630_v62, -inf  ;;  %v2669_v20 = vcombine.high %v2596_v5, %v2596_v5  ;;  %s3182_s4 = sld [smem:[#allocation10 + $0x37]] }
  0x5b   :  { %v413_v19 = vsel %vm369_vm5, %v2632_v63, %v412_v16  ;;  %v225_v21 = vrot.slane %v224_v18, 4  ;;  %v238_v22 = vsel %vm104_vm0, %v2639_v7, -inf  ;;  %v2677_v24 = vcombine.high %v2604_v9, %v2604_v9  ;;  %5102 = sst [smem:[#allocation46_spill]] %s2991_s28  ;;  %s3444_s28 = sld [smem:[#allocation10 + $0x45]] }
  0x5c   :  { %v414_v23 = vsel %vm371_vm6, %v2641_v8, %v413_v19  ;;  %v239_v25 = vrot.slane %v238_v22, 4  ;;  %v252_v26 = vsel %vm104_vm0, %v2647_v12, -inf  ;;  %v266_v28 = vsel %vm104_vm0, %v2655_v15, -inf  ;;  %5111 = sst [smem:[#allocation55_spill]] %s3019_s0 }
  0x5d   :  { %v2683_v27 = vsel %vm373_vm7, %v2649_v13, %v414_v23  ;;  %v2691_v29 = vcombine.high %v2606_v10, %v2606_v10  ;;  %v2694_v30 = vshrl.u32 %v388_v59, 7  ;;  %v226_v31 = vmax.f32 %v224_v18, %v225_v21  ;;  %5110 = sst [smem:[#allocation54_spill]] %s3017_s30  ;;  %s3356_s0 = sld [smem:[#allocation10 + $0x42]] }
  0x5e   :  { %454 = vrot.lane.b32.xlu0 %v2683_v27, %s2497_s2  ;;  %425 = vrot.lane.b32.xlu1 %v2683_v27, %s2498_s8  ;;  %v240_v32 = vmax.f32 %v238_v22, %v239_v25  ;;  %v253_v33 = vrot.slane %v252_v26, 4  ;;  %v267_v34 = vrot.slane %v266_v28, 4  ;;  %v280_v35 = vsel %vm104_vm0, %v2661_v17, -inf  ;;  %s3442_s30 = sld [smem:[#allocation10 + $0x14]] }
  0x5f   :  { %v294_v36 = vsel %vm104_vm0, %v2669_v20, -inf  ;;  %v308_v37 = vsel %vm104_vm0, %v2677_v24, -inf  ;;  %v227_v38 = vrot.slane %v226_v31, 2  ;;  %v281_v41 = vrot.slane %v280_v35, 4  ;;  %5117 = sst [smem:[#allocation61_spill]] %s3079_s7 }
  0x60   :  { %v241_v39 = vrot.slane %v240_v32, 2  ;;  %v254_v40 = vmax.f32 %v252_v26, %v253_v33  ;;  %v268_v42 = vmax.f32 %v266_v28, %v267_v34  ;;  %v295_v43 = vrot.slane %v294_v36, 4  ;;  %5130 = sst [smem:[#allocation73_spill]] %s3182_s4  ;;  %s3214_s7 = sld [smem:[#allocation10 + $0x3b]] }
  0x61   :  { %v309_v44 = vrot.slane %v308_v37, 4  ;;  %v322_v45 = vsel %vm104_vm0, %v2691_v29, -inf  ;;  %v228_v46 = vmax.f32 %v226_v31, %v227_v38  ;;  %v282_v49 = vmax.f32 %v280_v35, %v281_v41  ;;  %v2722_v41 = vld [vmem:[#allocation7 + $0x3] ss:$8 sm:$0x3]  ;;  %s3259_s4 = sld [smem:[#allocation10 + $0xb]] }
  0x62   :  { %484 = vrot.lane.b32.xlu0 %v2683_v27, %s2499_s9  ;;  %v242_v47 = vmax.f32 %v240_v32, %v241_v39  ;;  %v255_v48 = vrot.slane %v254_v40, 2  ;;  %v269_v50 = vrot.slane %v268_v42, 2  ;;  %v296_v53 = vmax.f32 %v294_v36, %v295_v43 }
  0x63   :  { %v310_v55 = vmax.f32 %v308_v37, %v309_v44  ;;  %v323_v56 = vrot.slane %v322_v45, 4  ;;  %v229_v57 = vrot.slane %v228_v46, 1  ;;  %v283_v11 = vrot.slane %v282_v49, 2 }
  0x64   :  { %v243_v61 = vrot.slane %v242_v47, 1  ;;  %v256_v6 = vmax.f32 %v254_v40, %v255_v48  ;;  %v270_v14 = vmax.f32 %v268_v42, %v269_v50  ;;  %v297_v16 = vrot.slane %v296_v53, 2 }
  0x65   :  { %v311_v18 = vrot.slane %v310_v55, 2  ;;  %v324_v19 = vmax.f32 %v322_v45, %v323_v56  ;;  %v2708_v21 = vmax.f32 %v228_v46, %v229_v57  ;;  %v284_v25 = vmax.f32 %v282_v49, %v283_v11 }
  0x66   :  { %v2710_v22 = vmax.f32 %v242_v47, %v243_v61  ;;  %v257_v23 = vrot.slane %v256_v6, 1  ;;  %v271_v26 = vrot.slane %v270_v14, 1  ;;  %v298_v28 = vmax.f32 %v296_v53, %v297_v16 }
  0x67   :  { %v312_v31 = vmax.f32 %v310_v55, %v311_v18  ;;  %v325_v32 = vrot.slane %v324_v19, 2  ;;  %v285_v34 = vrot.slane %v284_v25, 1  ;;  %v2720_v40 = vsub.s32 0, %v2694_v30  ;;  %5133 = sst [smem:[#allocation76_spill]] %s3259_s4  ;;  %s3321_s4 = sld [smem:[#allocation10 + $0x3e]] }
  0x68   :  { %v2712_v33 = vmax.f32 %v256_v6, %v257_v23  ;;  %v416_v35 = vsel %vm361_vm1, %v2710_v22, %v2708_v21  ;;  %v2717_v36 = vmax.f32 %v270_v14, %v271_v26  ;;  %v299_v37 = vrot.slane %v298_v28, 1 }
  0x69   :  { %v313_v38 = vrot.slane %v312_v31, 1  ;;  %v326_v39 = vmax.f32 %v324_v19, %v325_v32  ;;  %5072 = vst [vmem:[#allocation16_spill] sm:$0xff] %v2720_v40  ;;  %v2724_v42 = vmax.f32 %v284_v25, %v285_v34  ;;  %v105_v44 = vsel %vm104_vm0, %v2586_v0, 0.0 }
  0x6a   :  { %v417_v43 = vsel %vm363_vm2, %v2712_v33, %v416_v35  ;;  %v2730_v45 = vmax.f32 %v298_v28, %v299_v37  ;;  %v2740_v50 = vrot.slane %v2722_v41, %v2720_v40  ;;  %v106_v56 = vrot.slane %v105_v44, 4 }
  0x6b   :  { %v2732_v46 = vmax.f32 %v312_v31, %v313_v38  ;;  %v327_v47 = vrot.slane %v326_v39, 1  ;;  %v418_v48 = vsel %vm365_vm3, %v2717_v36, %v417_v43  ;;  %v119_v6 = vsel %vm104_vm0, %v2588_v1, 0.0 }
  0x6c   :  { %v419_v49 = vsel %vm367_vm4, %v2724_v42, %v418_v48  ;;  %v2750_v57 = vmul.f32 %v2740_v50, %v2618_v51  ;;  %v133_v11 = vsel %vm104_vm0, %v2590_v2, 0.0  ;;  %v107_v14 = vadd.f32 %v106_v56, %v105_v44 }
  0x6d   :  { %v2742_v53 = vmax.f32 %v326_v39, %v327_v47  ;;  %v420_v0 = vsel %vm369_vm5, %v2730_v45, %v419_v49  ;;  %v120_v16 = vrot.slane %v119_v6, 4  ;;  %v134_v18 = vrot.slane %v133_v11, 4  ;;  %5142 = sst [smem:[#allocation84_spill]] %s3321_s4  ;;  %s3398_s4 = sld [smem:[#allocation10 + $0x41]] }
  0x6e   :  { %v421_v55 = vsel %vm371_vm6, %v2732_v46, %v420_v0  ;;  %5073 = vst [vmem:[#allocation17_spill] sm:$0xff] %v2750_v57  ;;  %v147_v51 = vsel %vm104_vm0, %v2592_v3, 0.0  ;;  %v161_v23 = vsel %vm104_vm0, %v2594_v4, 0.0  ;;  %v175_v25 = vsel %vm104_vm0, %v2596_v5, 0.0 }
  0x6f   :  { %v2754_v61 = vsel %vm373_vm7, %v2742_v53, %v421_v55  ;;  %v148_v19 = vrot.slane %v147_v51, 4  ;;  %v189_v1 = vsel %vm104_vm0, %v2604_v9, 0.0  ;;  %v108_v2 = vrot.slane %v107_v14, 2 }
  0x70   :  { %427 = vrot.lane.b32.xlu1 %v2754_v61, %s2498_s8  ;;  %v121_v26 = vadd.f32 %v120_v16, %v119_v6  ;;  %v135_v28 = vadd.f32 %v134_v18, %v133_v11  ;;  %v162_v31 = vrot.slane %v161_v23, 4  ;;  %v176_v34 = vrot.slane %v175_v25, 4 }
  0x71   :  { %v149_v32 = vadd.f32 %v148_v19, %v147_v51  ;;  %v190_v35 = vrot.slane %v189_v1, 4  ;;  %v203_v3 = vsel %vm104_vm0, %v2606_v10, 0.0  ;;  %v109_v37 = vadd.f32 %v108_v2, %v107_v14 }
  0x72   :  { %v122_v38 = vrot.slane %v121_v26, 2  ;;  %v136_v39 = vrot.slane %v135_v28, 2  ;;  %v163_v4 = vadd.f32 %v162_v31, %v161_v23  ;;  %v177_v43 = vadd.f32 %v176_v34, %v175_v25 }
  0x73   :  { %v150_v5 = vrot.slane %v149_v32, 2  ;;  %v191_v9 = vadd.f32 %v190_v35, %v189_v1  ;;  %v204_v44 = vrot.slane %v203_v3, 4  ;;  %v110_v47 = vrot.slane %v109_v37, 1 }
  0x74   :  { %456 = vrot.lane.b32.xlu1 %v2754_v61, %s2497_s2  ;;  %v123_v48 = vadd.f32 %v122_v38, %v121_v26  ;;  %v137_v49 = vadd.f32 %v136_v39, %v135_v28  ;;  %v164_v0 = vrot.slane %v163_v4, 2  ;;  %v178_v56 = vrot.slane %v177_v43, 2 }
  0x75   :  { %v151_v55 = vadd.f32 %v150_v5, %v149_v32  ;;  %v192_v6 = vrot.slane %v191_v9, 2  ;;  %v205_v11 = vadd.f32 %v204_v44, %v203_v3  ;;  %v111_v10 = vadd.f32 %v110_v47, %v109_v37 }
  0x76   :  { %v124_v14 = vrot.slane %v123_v48, 1  ;;  %v138_v16 = vrot.slane %v137_v49, 1  ;;  %v165_v18 = vadd.f32 %v164_v0, %v163_v4  ;;  %v179_v19 = vadd.f32 %v178_v56, %v177_v43 }
  0x77   :  { %v152_v51 = vrot.slane %v151_v55, 1  ;;  %v193_v23 = vadd.f32 %v192_v6, %v191_v9  ;;  %v206_v25 = vrot.slane %v205_v11, 2  ;;  %v2776_v28 = vmul.f32 0.25, %v111_v10 }
  0x78   :  { %486 = vrot.lane.b32.xlu1 %v2754_v61, %s2499_s9  ;;  %v125_v1 = vadd.f32 %v124_v14, %v123_v48  ;;  %v139_v2 = vadd.f32 %v138_v16, %v137_v49  ;;  %v166_v26 = vrot.slane %v165_v18, 1  ;;  %v180_v32 = vrot.slane %v179_v19, 1 }
  0x79   :  { %v153_v31 = vadd.f32 %v152_v51, %v151_v55  ;;  %v194_v34 = vrot.slane %v193_v23, 1  ;;  %v207_v35 = vadd.f32 %v206_v25, %v205_v11  ;;  %v2780_v3 = vmul.f32 %v2740_v50, %v2620_v52 }
  0x7a   :  { %v167_v37 = vadd.f32 %v166_v26, %v165_v18  ;;  %v2782_v38 = vmul.f32 0.25, %v125_v1  ;;  %v2784_v39 = vmul.f32 0.25, %v139_v2  ;;  %v181_v4 = vadd.f32 %v180_v32, %v179_v19 }
  0x7b   :  { %5074 = vst [vmem:[#allocation18_spill] sm:$0xff] %v2780_v3  ;;  %v195_v5 = vadd.f32 %v194_v34, %v193_v23  ;;  %v208_v43 = vrot.slane %v207_v35, 1  ;;  %v2786_v9 = vmul.f32 0.25, %v153_v31  ;;  %v2790_v44 = vmul.f32 %v2740_v50, %v2622_v54 }
  0x7c   :  { %v2794_v47 = vmul.f32 %v2740_v50, %v2624_v58  ;;  %v2796_v52 = vmul.f32 0.25, %v167_v37  ;;  %v362_v48 = vsel %vm361_vm1, %v2782_v38, %v2776_v28  ;;  %v2801_v0 = vmul.f32 0.25, %v181_v4 }
  0x7d   :  { %5075 = vst [vmem:[#allocation19_spill] sm:$0xff] %v2790_v44  ;;  %v209_v49 = vadd.f32 %v208_v43, %v207_v35  ;;  %v2803_v55 = vmul.f32 0.25, %v195_v5  ;;  %v364_v56 = vsel %vm363_vm2, %v2784_v39, %v362_v48  ;;  %v2809_v54 = vmul.f32 %v2740_v50, %v2626_v60 }
  0x7e   :  { %5076 = vst [vmem:[#allocation20_spill] sm:$0xff] %v2794_v47  ;;  %v2813_v58 = vmul.f32 %v2740_v50, %v2632_v63  ;;  %v366_v6 = vsel %vm365_vm3, %v2786_v9, %v364_v56  ;;  %v112_v11 = vsel %vm104_vm0, %v2630_v62, 0.0  ;;  %v2821_v10 = vmul.f32 %v2740_v50, %v2641_v8 }
  0x7f   :  { %5077 = vst [vmem:[#allocation21_spill] sm:$0xff] %v2809_v54  ;;  %v2824_v14 = vsub.s32 1, %v2694_v30  ;;  %v2826_v16 = vmul.f32 0.25, %v209_v49  ;;  %v368_v60 = vsel %vm367_vm4, %v2796_v52, %v366_v6  ;;  %v113_v18 = vrot.slane %v112_v11, 4 }
  0x80   :  { %5078 = vst [vmem:[#allocation22_spill] sm:$0xff] %v2813_v58  ;;  %5079 = vst [vmem:[#allocation23_spill] sm:$0xff] %v2821_v10  ;;  %v370_v63 = vsel %vm369_vm5, %v2801_v0, %v368_v60  ;;  %v126_v51 = vsel %vm104_vm0, %v2639_v7, 0.0  ;;  %v140_v62 = vsel %vm104_vm0, %v2647_v12, 0.0  ;;  %v154_v7 = vsel %vm104_vm0, %v2655_v15, 0.0 }
  0x81   :  { %5080 = vst [vmem:[#allocation24_spill] sm:$0xff] %v2824_v14  ;;  %v2838_v8 = vrot.slane %v2722_v41, %v2824_v14  ;;  %v372_v30 = vsel %vm371_vm6, %v2803_v55, %v370_v63  ;;  %v127_v19 = vrot.slane %v126_v51, 4  ;;  %v141_v23 = vrot.slane %v140_v62, 4 }
  0x82   :  { %v2844_v25 = vsel %vm373_vm7, %v2826_v16, %v372_v30  ;;  %v114_v1 = vadd.f32 %v113_v18, %v112_v11  ;;  %v168_v12 = vsel %vm104_vm0, %v2661_v17, 0.0  ;;  %v155_v26 = vrot.slane %v154_v7, 4 }
  0x83   :  { %384 = vrot.lane.b32.xlu0 %v2844_v25, %s2498_s8  ;;  %v128_v41 = vadd.f32 %v127_v19, %v126_v51  ;;  %v142_v2 = vadd.f32 %v141_v23, %v140_v62  ;;  %v169_v31 = vrot.slane %v168_v12, 4  ;;  %v182_v34 = vsel %vm104_vm0, %v2669_v20, 0.0 }
  0x84   :  { %v115_v32 = vrot.slane %v114_v1, 2  ;;  %v196_v35 = vsel %vm104_vm0, %v2677_v24, 0.0  ;;  %v210_v15 = vsel %vm104_vm0, %v2691_v29, 0.0  ;;  %v156_v17 = vadd.f32 %v155_v26, %v154_v7 }
  0x85   :  { %v129_v37 = vrot.slane %v128_v41, 2  ;;  %v143_v4 = vrot.slane %v142_v2, 2  ;;  %v170_v5 = vadd.f32 %v169_v31, %v168_v12  ;;  %v183_v48 = vrot.slane %v182_v34, 4 }
  0x86   :  { %v116_v43 = vadd.f32 %v115_v32, %v114_v1  ;;  %v197_v49 = vrot.slane %v196_v35, 4  ;;  %v211_v56 = vrot.slane %v210_v15, 4  ;;  %v157_v20 = vrot.slane %v156_v17, 2 }
  0x87   :  { %447 = vrot.lane.b32.xlu0 %v2844_v25, %s2497_s2  ;;  %v130_v6 = vadd.f32 %v129_v37, %v128_v41  ;;  %v144_v11 = vadd.f32 %v143_v4, %v142_v2  ;;  %v171_v60 = vrot.slane %v170_v5, 2  ;;  %v184_v24 = vadd.f32 %v183_v48, %v182_v34 }
  0x88   :  { %v117_v63 = vrot.slane %v116_v43, 1  ;;  %v198_v18 = vadd.f32 %v197_v49, %v196_v35  ;;  %v212_v51 = vadd.f32 %v211_v56, %v210_v15  ;;  %v158_v30 = vadd.f32 %v157_v20, %v156_v17 }
  0x89   :  { %v131_v29 = vrot.slane %v130_v6, 1  ;;  %v145_v62 = vrot.slane %v144_v11, 1  ;;  %v172_v19 = vadd.f32 %v171_v60, %v170_v5  ;;  %v185_v1 = vrot.slane %v184_v24, 2 }
  0x8a   :  { %v118_v23 = vadd.f32 %v117_v63, %v116_v43  ;;  %v199_v7 = vrot.slane %v198_v18, 2  ;;  %v213_v12 = vrot.slane %v212_v51, 2  ;;  %v159_v2 = vrot.slane %v158_v30, 1 }
  0x8b   :  { %477 = vrot.lane.b32.xlu0 %v2844_v25, %s2499_s9  ;;  %v132_v26 = vadd.f32 %v131_v29, %v130_v6  ;;  %v146_v41 = vadd.f32 %v145_v62, %v144_v11  ;;  %v173_v31 = vrot.slane %v172_v19, 1  ;;  %v186_v32 = vadd.f32 %v185_v1, %v184_v24 }
  0x8c   :  { %v200_v37 = vadd.f32 %v199_v7, %v198_v18  ;;  %v214_v34 = vadd.f32 %v213_v12, %v212_v51  ;;  %v330_v35 = vmul.f32 0.25, %v118_v23  ;;  %v160_v15 = vadd.f32 %v159_v2, %v158_v30  ;;  %v431_v12 = vld [vmem:[#allocation7] ss:$8 sm:$0x3] }
  0x8d   :  { %v174_v4 = vadd.f32 %v173_v31, %v172_v19  ;;  %v332_v48 = vmul.f32 0.25, %v132_v26  ;;  %v334_v17 = vmul.f32 0.25, %v146_v41  ;;  %v2868_v5 = vmul.f32 %v2740_v50, %v2649_v13  ;;  %v461_v2 = vld [vmem:[#allocation7 + $0x1] ss:$8 sm:$0x3] }
  0x8e   :  { %v187_v43 = vrot.slane %v186_v32, 1  ;;  %v201_v49 = vrot.slane %v200_v37, 1  ;;  %v215_v56 = vrot.slane %v214_v34, 1  ;;  %v2874_v6 = vmul.f32 %v2838_v8, %v2708_v21 }
  0x8f   :  { %5081 = vst [vmem:[#allocation25_spill] sm:$0xff] %v2868_v5  ;;  %v336_v11 = vmul.f32 0.25, %v160_v15  ;;  %v338_v20 = vmul.f32 0.25, %v174_v4  ;;  %v375_v60 = vsel %vm361_vm1, %v332_v48, %v330_v35  ;;  %v2888_v21 = vmul.f32 %v2838_v8, %v2710_v22 }
  0x90   :  { %5082 = vst [vmem:[#allocation26_spill] sm:$0xff] %v2874_v6  ;;  %v188_v63 = vadd.f32 %v187_v43, %v186_v32  ;;  %v202_v13 = vadd.f32 %v201_v49, %v200_v37  ;;  %v216_v24 = vadd.f32 %v215_v56, %v214_v34  ;;  %v376_v18 = vsel %vm363_vm2, %v334_v17, %v375_v60 }
  0x91   :  { %5083 = vst [vmem:[#allocation27_spill] sm:$0xff] %v2888_v21  ;;  %v2892_v51 = vmul.f32 %v2838_v8, %v2712_v33  ;;  %v2896_v29 = vmul.f32 %v2838_v8, %v2717_v36  ;;  %v377_v62 = vsel %vm365_vm3, %v336_v11, %v376_v18  ;;  %v2908_v33 = vmul.f32 %v2838_v8, %v2724_v42 }
  0x92   :  { %v340_v30 = vmul.f32 0.25, %v188_v63  ;;  %v342_v19 = vmul.f32 0.25, %v202_v13  ;;  %v344_v23 = vmul.f32 0.25, %v216_v24  ;;  %v378_v22 = vsel %vm367_vm4, %v338_v20, %v377_v62  ;;  %v566_v62 = vld [vmem:[#allocation7 + $0x4] ss:$8 sm:$0x3] }
  0x93   :  { %5084 = vst [vmem:[#allocation28_spill] sm:$0xff] %v2892_v51  ;;  %5085 = vst [vmem:[#allocation29_spill] sm:$0xff] %v2896_v29  ;;  %v2912_v36 = vmul.f32 %v2838_v8, %v2730_v45  ;;  %v2916_v1 = vmul.f32 %v2838_v8, %v2732_v46  ;;  %v2920_v7 = vmul.f32 %v2838_v8, %v2742_v53  ;;  %v2999_v32 = vand.u32 127, %v388_v59 }
  0x94   :  { %5086 = vst [vmem:[#allocation30_spill] sm:$0xff] %v2908_v33  ;;  %v2928_v42 = vmul.f32 %v2740_v50, %v2776_v28  ;;  %v2932_v45 = vmul.f32 %v2740_v50, %v2782_v38  ;;  %v2936_v46 = vmul.f32 %v2740_v50, %v2784_v39  ;;  %v379_v53 = vsel %vm369_vm5, %v340_v30, %v378_v22  ;;  %v596_v22 = vld [vmem:[#allocation7 + $0x5] ss:$8 sm:$0x3] }
  0x95   :  { %5087 = vst [vmem:[#allocation31_spill] sm:$0xff] %v2912_v36  ;;  %5088 = vst [vmem:[#allocation32_spill] sm:$0xff] %v2916_v1  ;;  %v2945_v26 = vmul.f32 %v2740_v50, %v2786_v9  ;;  %v2949_v28 = vmul.f32 %v2740_v50, %v2796_v52  ;;  %v2953_v38 = vmul.f32 %v2740_v50, %v2801_v0  ;;  %v3106_v59 = vstv %s3043_s21  ;;  %s3159_s21 = sld [smem:[#allocation10 + $0x5]] }
  0x96   :  { %5089 = vst [vmem:[#allocation33_spill] sm:$0xff] %v2920_v7  ;;  %5090 = vst [vmem:[#allocation34_spill] sm:$0xff] %v2928_v42  ;;  %v380_v39 = vsel %vm371_vm6, %v342_v19, %v379_v53  ;;  %v2962_v41 = vmul.f32 %v2740_v50, %v2803_v55  ;;  %v2966_v9 = vmul.f32 %v2740_v50, %v2826_v16 }
  0x97   :  { %5091 = vst [vmem:[#allocation35_spill] sm:$0xff] %v2932_v45  ;;  %5092 = vst [vmem:[#allocation36_spill] sm:$0xff] %v2936_v46  ;;  %v2969_v52 = vsel %vm373_vm7, %v344_v23, %v380_v39  ;;  %v2972_v0 = vmul.f32 %v2838_v8, %v330_v35  ;;  %v2979_v31 = vmul.f32 %v2838_v8, %v332_v48  ;;  %v491_v35 = vld [vmem:[#allocation7 + $0x2] ss:$8 sm:$0x3] }
  0x98   :  { %5093 = vst [vmem:[#allocation37_spill] sm:$0xff] %v2945_v26  ;;  %5094 = vst [vmem:[#allocation38_spill] sm:$0xff] %v2949_v28  ;;  %v2982_v55 = vmul.f32 %v2838_v8, %v334_v17  ;;  %v2985_v50 = vmul.f32 %v2838_v8, %v336_v11  ;;  %449 = vrot.lane.b32.xlu1 %v2969_v52, %s2497_s2  ;;  %386 = vrot.lane.b32.xlu0 %v2969_v52, %s2498_s8  ;;  %s2501_s2 = smov 126   ;;  %s3098_s8 = sld [smem:[#allocation10 + $0x33]] }
  0x99   :  { %5095 = vst [vmem:[#allocation39_spill] sm:$0xff] %v2953_v38  ;;  %5096 = vst [vmem:[#allocation40_spill] sm:$0xff] %v2962_v41  ;;  %v2996_v16 = vmul.f32 %v2838_v8, %v338_v20  ;;  %v3002_v37 = vrot.slane %v431_v12, %v2720_v40  ;;  %v3005_v34 = vrot.slane %v431_v12, %v2824_v14 }
  0x9a   :  { %5097 = vst [vmem:[#allocation41_spill] sm:$0xff] %v2966_v9  ;;  %5098 = vst [vmem:[#allocation42_spill] sm:$0xff] %v2972_v0  ;;  %v3008_v15 = vmul.f32 %v2838_v8, %v340_v30  ;;  %v3011_v4 = vmul.f32 %v2838_v8, %v342_v19  ;;  %v3014_v48 = vmul.f32 %v2838_v8, %v344_v23  ;;  %v3065_v23 = vstv %s2993_s29  ;;  %s3124_s29 = sld [smem:[#allocation10 + $0x35]] }
  0x9b   :  { %5099 = vst [vmem:[#allocation43_spill] sm:$0xff] %v2979_v31  ;;  %5100 = vst [vmem:[#allocation44_spill] sm:$0xff] %v2982_v55  ;;  %v3032_v20 = vrot.slane %v461_v2, %v2720_v40  ;;  %v3035_v60 = vrot.slane %v461_v2, %v2824_v14  ;;  %v3038_v63 = vrot.slane %v491_v35, %v2720_v40  ;;  %5125 = sst [smem:[#allocation69_spill]] %s3159_s21  ;;  %s3319_s21 = sld [smem:[#allocation10 + $0xd]] }
  0x9c   :  { %5101 = vst [vmem:[#allocation45_spill] sm:$0xff] %v2985_v50  ;;  %5103 = vst [vmem:[#allocation47_spill] sm:$0xff] %v2996_v16  ;;  %479 = vrot.lane.b32.xlu1 %v2969_v52, %s2499_s9  ;;  %552 = vrot.lane.b32.xlu0 %v2844_v25, %s2500_s3  ;;  %v3058_v18 = vrot.slane %v491_v35, %v2824_v14  ;;  %v3062_v19 = vrot.slane %v566_v62, %v2720_v40  ;;  %s3122_s9 = sld [smem:[#allocation10 + $0x4]] }
  0x9d   :  { %5104 = vst [vmem:[#allocation48_spill] sm:$0xff] %v2999_v32  ;;  %5105 = vst [vmem:[#allocation49_spill] sm:$0xff] %v3002_v37  ;;  %v681_v39 = vmul.f32 %v3065_v23, %v2972_v0  ;;  %v683_v2 = vmul.f32 %v3065_v23, %v2979_v31  ;;  %v685_v53 = vmul.f32 %v3065_v23, %v2982_v55 }
  0x9e   :  { %5106 = vst [vmem:[#allocation50_spill] sm:$0xff] %v3005_v34  ;;  %5107 = vst [vmem:[#allocation51_spill] sm:$0xff] %v3008_v15  ;;  %v687_v35 = vmul.f32 %v3065_v23, %v2985_v50  ;;  %v689_v30 = vmul.f32 %v3065_v23, %v2996_v16  ;;  %v691_v13 = vmul.f32 %v3065_v23, %v3008_v15 }
  0x9f   :  { %5108 = vst [vmem:[#allocation52_spill] sm:$0xff] %v3011_v4  ;;  %5109 = vst [vmem:[#allocation53_spill] sm:$0xff] %v3014_v48  ;;  %v3086_v11 = vrot.slane %v566_v62, %v2824_v14  ;;  %v3089_v8 = vrot.slane %v596_v22, %v2720_v40  ;;  %v3092_v12 = vrot.slane %v596_v22, %v2824_v14  ;;  %v726_v24 = vrot.slane %v683_v2, 7 }
  0xa0   :  { %5112 = vst [vmem:[#allocation56_spill] sm:$0xff] %v3032_v20  ;;  %5113 = vst [vmem:[#allocation57_spill] sm:$0xff] %v3035_v60  ;;  %554 = vrot.lane.b32.xlu1 %v2969_v52, %s2500_s3  ;;  %559 = vrot.lane.b32.xlu0 %v2683_v27, %s2500_s3  ;;  %v693_v62 = vmul.f32 %v3065_v23, %v3011_v4  ;;  %v728_v56 = vrot.slane %v685_v53, 6  ;;  %v730_v49 = vrot.slane %v687_v35, 5  ;;  %v732_v43 = vrot.slane %v689_v30, 4  ;;  %5122 = sst [smem:[#allocation66_spill]] %s3124_s29 }
  0xa1   :  { %5114 = vst [vmem:[#allocation58_spill] sm:$0xff] %v3038_v63  ;;  %5115 = vst [vmem:[#allocation59_spill] sm:$0xff] %v3058_v18  ;;  %v695_v22 = vmul.f32 %v3065_v23, %v3014_v48  ;;  %v727_v2 = vsel %vm361_vm1, %v726_v24, %v681_v39  ;;  %v734_v17 = vrot.slane %v691_v13, 3  ;;  %v751_v53 = vmul.f32 %v3106_v59, %v2892_v51  ;;  %s3212_s29 = sld [smem:[#allocation10 + $0x39]]  ;;  %5141 = sst [smem:[#allocation83_spill]] %s3319_s21 }
  0xa2   :  { %5116 = vst [vmem:[#allocation60_spill] sm:$0xff] %v3062_v19  ;;  %5118 = vst [vmem:[#allocation62_spill] sm:$0xff] %v3086_v11  ;;  %v749_v11 = vmul.f32 %v3106_v59, %v2888_v21  ;;  %v753_v35 = vmul.f32 %v3106_v59, %v2896_v29  ;;  %v755_v13 = vmul.f32 %v3106_v59, %v2908_v33  ;;  %5121 = sst [smem:[#allocation65_spill]] %s3122_s9  ;;  %s3191_s9 = sld [smem:[#allocation10 + $0xa]] }
  0xa3   :  { %5119 = vst [vmem:[#allocation63_spill] sm:$0xff] %v3089_v8  ;;  %5120 = vst [vmem:[#allocation64_spill] sm:$0xff] %v3092_v12  ;;  %v729_v12 = vsel %vm363_vm2, %v728_v56, %v727_v2  ;;  %v747_v8 = vmul.f32 %v3106_v59, %v2874_v6  ;;  %v757_v56 = vmul.f32 %v3106_v59, %v2912_v36  ;;  %v794_v18 = vrot.slane %v751_v53, 6  ;;  %s3407_s21 = sld [smem:[#allocation10 + $0x12]] }
  0xa4   :  { %561 = vrot.lane.b32.xlu1 %v2754_v61, %s2500_s3  ;;  %582 = vrot.lane.b32.xlu0 %v2844_v25, %s2501_s2  ;;  %v731_v30 = vsel %vm365_vm3, %v730_v49, %v729_v12  ;;  %v626_v49 = vld [vmem:[#allocation7 + $0x6] ss:$8 sm:$0x3]  ;;  %v736_v12 = vrot.slane %v693_v62, 2  ;;  %v759_v39 = vmul.f32 %v3106_v59, %v2916_v1  ;;  %v792_v2 = vrot.slane %v749_v11, 7  ;;  %s4912_s3 = smov 125  }
  0xa5   :  { %v733_v24 = vsel %vm367_vm4, %v732_v43, %v731_v30  ;;  %v796_v63 = vrot.slane %v753_v35, 5  ;;  %v798_v60 = vrot.slane %v755_v13, 4  ;;  %v800_v32 = vrot.slane %v757_v56, 3 }
  0xa6   :  { %v735_v19 = vsel %vm369_vm5, %v734_v17, %v733_v24  ;;  %v793_v37 = vsel %vm361_vm1, %v792_v2, %v747_v8  ;;  %v3138_v36 = vrot.slane %v626_v49, %v2720_v40  ;;  %v738_v43 = vrot.slane %v695_v22, 1 }
  0xa7   :  { %v761_v62 = vmul.f32 %v3106_v59, %v2920_v7  ;;  %v795_v11 = vsel %vm363_vm2, %v794_v18, %v793_v37  ;;  %v3148_v17 = vrot.slane %v626_v49, %v2824_v14  ;;  %v737_v53 = vsel %vm371_vm6, %v736_v12, %v735_v19 }
  0xa8   :  { %584 = vrot.lane.b32.xlu1 %v2969_v52, %s2501_s2  ;;  %589 = vrot.lane.b32.xlu0 %v2683_v27, %s2501_s2  ;;  %5123 = vst [vmem:[#allocation67_spill] sm:$0xff] %v3138_v36  ;;  %v797_v22 = vsel %vm365_vm3, %v796_v63, %v795_v11  ;;  %v802_v35 = vrot.slane %v759_v39, 2  ;;  %v680_v37 = vmul.f32 %v3065_v23, %v2928_v42  ;;  %v5171_v36 = vstv %s2879_s14  ;;  %s3711_s14 = sld [smem:[#allocation10 + $0x20]] }
  0xa9   :  { %5124 = vst [vmem:[#allocation68_spill] sm:$0xff] %v3148_v17  ;;  %v799_v30 = vsel %vm367_vm4, %v798_v60, %v797_v22  ;;  %v682_v18 = vmul.f32 %v3065_v23, %v2932_v45  ;;  %v684_v19 = vmul.f32 %v3065_v23, %v2936_v46  ;;  %v686_v60 = vmul.f32 %v3065_v23, %v2945_v26 }
  0xaa   :  { %v688_v63 = vmul.f32 %v3065_v23, %v2949_v28  ;;  %v3170_v13 = vsel %vm373_vm7, %v738_v43, %v737_v53  ;;  %v804_v56 = vrot.slane %v761_v62, 1  ;;  %v692_v12 = vmul.f32 %v3065_v23, %v2962_v41 }
  0xab   :  { %5127 = vst [vmem:[#allocation71_spill] sm:$0xff] %v3170_v13  ;;  %v712_v39 = vrot.slane %v682_v18, 7  ;;  %v714_v2 = vrot.slane %v684_v19, 6  ;;  %v3189_v62 = vmul.f32 %v3065_v23, %v2966_v9  ;;  %v716_v11 = vrot.slane %v686_v60, 5 }
  0xac   :  { %591 = vrot.lane.b32.xlu1 %v2754_v61, %s2501_s2  ;;  %612 = vrot.lane.b32.xlu0 %v2844_v25, %s4912_s3  ;;  %v801_v25 = vsel %vm369_vm5, %v800_v32, %v799_v30  ;;  %s3161_s2 = sld [smem:[#allocation10 + $0x36]]  ;;  %v690_v32 = vmul.f32 %v3065_v23, %v2953_v38  ;;  %v718_v53 = vrot.slane %v688_v63, 4  ;;  %v746_v22 = vmul.f32 %v3106_v59, %v2750_v57 }
  0xad   :  { %s3173_s3 = sld [smem:[#allocation10 + $0x6]]  ;;  %v803_v43 = vsel %vm371_vm6, %v802_v35, %v801_v25  ;;  %v748_v30 = vmul.f32 %v3106_v59, %v2780_v3  ;;  %v750_v23 = vmul.f32 %v3106_v59, %v2790_v44  ;;  %v752_v18 = vmul.f32 %v3106_v59, %v2794_v47 }
  0xae   :  { %v722_v19 = vrot.slane %v692_v12, 2  ;;  %v756_v60 = vmul.f32 %v3106_v59, %v2813_v58  ;;  %v758_v63 = vmul.f32 %v3106_v59, %v2821_v10  ;;  %v3221_v24 = vsel %vm373_vm7, %v804_v56, %v803_v43 }
  0xaf   :  { %5131 = vst [vmem:[#allocation74_spill] sm:$0xff] %v3221_v24  ;;  %v724_v14 = vrot.slane %v3189_v62, 1  ;;  %v3233_v43 = vstv %s3191_s9  ;;  %s3252_s9 = sld [smem:[#allocation10 + $0x3a]] }
  0xb0   :  { %614 = vrot.lane.b32.xlu1 %v2969_v52, %s5129_s5  ;;  %619 = vrot.lane.b32.xlu0 %v2683_v27, %s5129_s5  ;;  %v713_v27 = vsel %vm361_vm1, %v712_v39, %v680_v37  ;;  %v720_v52 = vrot.slane %v690_v32, 3  ;;  %v754_v37 = vmul.f32 %v3106_v59, %v2809_v54  ;;  %v778_v39 = vrot.slane %v748_v30, 7 }
  0xb1   :  { %v715_v35 = vsel %vm363_vm2, %v714_v2, %v713_v27  ;;  %v780_v2 = vrot.slane %v750_v23, 6  ;;  %v786_v8 = vrot.slane %v756_v60, 3  ;;  %v788_v56 = vrot.slane %v758_v63, 2  ;;  %v5144_v63 = vld [vmem:[#allocation48_spill] sm:$0xff] }
  0xb2   :  { %5126 = sst [smem:[#allocation70_spill]] %s3161_s2  ;;  %v717_v25 = vsel %vm365_vm3, %v716_v11, %v715_v35  ;;  %v784_v35 = vrot.slane %v754_v37, 4  ;;  %v779_v34 = vsel %vm361_vm1, %v778_v39, %v746_v22  ;;  %v908_v62 = vmul.f32 %v3233_v43, %v2979_v31  ;;  %s3308_s2 = sld [smem:[#allocation10 + $0x3d]] }
  0xb3   :  { %5128 = sst [smem:[#allocation72_spill]] %s3173_s3  ;;  %v719_v32 = vsel %vm367_vm4, %v718_v53, %v717_v25  ;;  %v760_v53 = vmul.f32 %v3106_v59, %v2868_v5  ;;  %v781_v30 = vsel %vm363_vm2, %v780_v2, %v779_v34  ;;  %v910_v59 = vmul.f32 %v3233_v43, %v2982_v55  ;;  %s3306_s3 = sld [smem:[#allocation10 + $0xc]] }
  0xb4   :  { %621 = vrot.lane.b32.xlu1 %v2754_v61, %s5129_s5  ;;  %v782_v61 = vrot.slane %v752_v18, 5  ;;  %v721_v12 = vsel %vm369_vm5, %v720_v52, %v719_v32  ;;  %v906_v18 = vmul.f32 %v3233_v43, %v2972_v0  ;;  %s3243_s5 = sld [smem:[#allocation10 + $0x9]]  ;;  %v912_v37 = vmul.f32 %v3233_v43, %v2985_v50 }
  0xb5   :  { %v723_v23 = vsel %vm371_vm6, %v722_v19, %v721_v12  ;;  %v914_v25 = vmul.f32 %v3233_v43, %v2996_v16  ;;  %v916_v19 = vmul.f32 %v3233_v43, %v3008_v15  ;;  %v790_v60 = vrot.slane %v760_v53, 1 }
  0xb6   :  { %v783_v52 = vsel %vm365_vm3, %v782_v61, %v781_v30  ;;  %v951_v32 = vrot.slane %v908_v62, 7  ;;  %v3255_v39 = vstv %s3214_s7  ;;  %v953_v2 = vrot.slane %v910_v59, 6  ;;  %s3282_s7 = sld [smem:[#allocation10 + $0x3c]] }
  0xb7   :  { %v785_v22 = vsel %vm367_vm4, %v784_v35, %v783_v52  ;;  %v955_v61 = vrot.slane %v912_v37, 5  ;;  %v957_v12 = vrot.slane %v914_v25, 4  ;;  %v920_v30 = vmul.f32 %v3233_v43, %v3014_v48  ;;  %v5134_v25 = vld [vmem:[#allocation31_spill] sm:$0xff] }
  0xb8   :  { %v787_v34 = vsel %vm369_vm5, %v786_v8, %v785_v22  ;;  %v918_v8 = vmul.f32 %v3233_v43, %v3011_v4  ;;  %v952_v53 = vsel %vm361_vm1, %v951_v32, %v906_v18  ;;  %v959_v52 = vrot.slane %v916_v19, 3  ;;  %5139 = sst [smem:[#allocation81_spill]] %s3308_s2  ;;  %s3435_s2 = sld [smem:[#allocation10 + $0x13]] }
  0xb9   :  { %v789_v35 = vsel %vm371_vm6, %v788_v56, %v787_v34  ;;  %v954_v22 = vsel %vm363_vm2, %v953_v2, %v952_v53  ;;  %v972_v62 = vmul.f32 %v3255_v39, %v2874_v6  ;;  %v974_v59 = vmul.f32 %v3255_v39, %v2888_v21  ;;  %5138 = sst [smem:[#allocation80_spill]] %s3306_s3  ;;  %s3437_s3 = sld [smem:[#allocation10 + $0x44]] }
  0xba   :  { %5132 = sst [smem:[#allocation75_spill]] %s3243_s5  ;;  %v976_v37 = vmul.f32 %v3255_v39, %v2892_v51  ;;  %v956_v56 = vsel %vm365_vm3, %v955_v61, %v954_v22  ;;  %v978_v34 = vmul.f32 %v3255_v39, %v2896_v29  ;;  %v980_v18 = vmul.f32 %v3255_v39, %v2908_v33  ;;  %s3333_s5 = sld [smem:[#allocation10 + $0x11]] }
  0xbb   :  { %v982_v19 = vmul.f32 %v3255_v39, %v5134_v25  ;;  %v958_v32 = vsel %vm367_vm4, %v957_v12, %v956_v56  ;;  %v961_v2 = vrot.slane %v918_v8, 2  ;;  %v984_v53 = vmul.f32 %v3255_v39, %v2916_v1 }
  0xbc   :  { %v1017_v20 = vrot.slane %v974_v59, 7  ;;  %5135 = sst [smem:[#allocation77_spill]] %s3282_s7  ;;  %v960_v61 = vsel %vm369_vm5, %v959_v52, %v958_v32  ;;  %v1019_v22 = vrot.slane %v976_v37, 6  ;;  %v1021_v49 = vrot.slane %v978_v34, 5  ;;  %s3347_s7 = sld [smem:[#allocation10 + $0x40]] }
  0xbd   :  { %v1023_v11 = vrot.slane %v980_v18, 4  ;;  %v3286_v27 = vsel %vm373_vm7, %v724_v14, %v723_v23  ;;  %v1025_v12 = vrot.slane %v982_v19, 3  ;;  %v963_v56 = vrot.slane %v920_v30, 1 }
  0xbe   :  { %5136 = vst [vmem:[#allocation78_spill] sm:$0xff] %v3286_v27  ;;  %v1018_v40 = vsel %vm361_vm1, %v1017_v20, %v972_v62  ;;  %v986_v59 = vmul.f32 %v3255_v39, %v2920_v7  ;;  %v3295_v17 = vsel %vm373_vm7, %v790_v60, %v789_v35  ;;  %v962_v52 = vsel %vm371_vm6, %v961_v2, %v960_v61 }
  0xbf   :  { %v1020_v24 = vsel %vm363_vm2, %v1019_v22, %v1018_v40  ;;  %5137 = vst [vmem:[#allocation79_spill] sm:$0xff] %v3295_v17  ;;  %v1027_v20 = vrot.slane %v984_v53, 2  ;;  %v905_v30 = vmul.f32 %v3233_v43, %v2928_v42  ;;  %v907_v62 = vmul.f32 %v3233_v43, %v2932_v45 }
  0xc0   :  { %v1022_v37 = vsel %vm365_vm3, %v1021_v49, %v1020_v24  ;;  %v909_v49 = vmul.f32 %v3233_v43, %v2936_v46  ;;  %v911_v24 = vmul.f32 %v3233_v43, %v2945_v26  ;;  %v3317_v60 = vsel %vm373_vm7, %v963_v56, %v962_v52 }
  0xc1   :  { %v1024_v23 = vsel %vm367_vm4, %v1023_v11, %v1022_v37  ;;  %v913_v11 = vmul.f32 %v3233_v43, %v2949_v28  ;;  %5140 = vst [vmem:[#allocation82_spill] sm:$0xff] %v3317_v60  ;;  %v1029_v35 = vrot.slane %v986_v59, 1  ;;  %v915_v34 = vmul.f32 %v3233_v43, %v2953_v38 }
  0xc2   :  { %v1026_v40 = vsel %vm369_vm5, %v1025_v12, %v1024_v23  ;;  %v917_v18 = vmul.f32 %v3233_v43, %v2962_v41  ;;  %v937_v32 = vrot.slane %v907_v62, 7  ;;  %v939_v2 = vrot.slane %v909_v49, 6 }
  0xc3   :  { %v941_v53 = vrot.slane %v911_v24, 5  ;;  %v1028_v61 = vsel %vm371_vm6, %v1027_v20, %v1026_v40  ;;  %v3331_v22 = vmul.f32 %v3233_v43, %v2966_v9  ;;  %v943_v12 = vrot.slane %v913_v11, 4 }
  0xc4   :  { %v945_v56 = vrot.slane %v915_v34, 3  ;;  %v938_v59 = vsel %vm361_vm1, %v937_v32, %v905_v30  ;;  %v971_v52 = vmul.f32 %v3255_v39, %v2750_v57  ;;  %v973_v37 = vmul.f32 %v3255_v39, %v2780_v3 }
  0xc5   :  { %v975_v23 = vmul.f32 %v3255_v39, %v2790_v44  ;;  %v940_v20 = vsel %vm363_vm2, %v939_v2, %v938_v59  ;;  %v947_v43 = vrot.slane %v917_v18, 2  ;;  %v977_v62 = vmul.f32 %v3255_v39, %v2794_v47 }
  0xc6   :  { %v979_v30 = vmul.f32 %v3255_v39, %v2809_v54  ;;  %v942_v40 = vsel %vm365_vm3, %v941_v53, %v940_v20  ;;  %v981_v49 = vmul.f32 %v3255_v39, %v2813_v58  ;;  %v3354_v24 = vmul.f32 %v3255_v39, %v2821_v10 }
  0xc7   :  { %v1003_v11 = vrot.slane %v973_v37, 7  ;;  %v944_v34 = vsel %vm367_vm4, %v943_v12, %v942_v40  ;;  %v1005_v18 = vrot.slane %v975_v23, 6  ;;  %v1007_v32 = vrot.slane %v977_v62, 5 }
  0xc8   :  { %v1009_v2 = vrot.slane %v979_v30, 4  ;;  %v946_v19 = vsel %vm369_vm5, %v945_v56, %v944_v34  ;;  %v3363_v53 = vmul.f32 %v3255_v39, %v2868_v5  ;;  %v3371_v12 = vsel %vm373_vm7, %v1029_v35, %v1028_v61 }
  0xc9   :  { %v1004_v20 = vsel %vm361_vm1, %v1003_v11, %v971_v52  ;;  %5143 = vst [vmem:[#allocation85_spill] sm:$0xff] %v3371_v12  ;;  %v949_v23 = vrot.slane %v3331_v22, 1  ;;  %v1011_v56 = vrot.slane %v981_v49, 3  ;;  %v948_v30 = vsel %vm371_vm6, %v947_v43, %v946_v19 }
  0xca   :  { %v1006_v8 = vsel %vm363_vm2, %v1005_v18, %v1004_v20  ;;  %v1013_v52 = vrot.slane %v3354_v24, 2  ;;  %v3379_v40 = vstv %s3333_s5  ;;  %v1015_v11 = vrot.slane %v3363_v53, 1  ;;  %s3396_s5 = sld [smem:[#allocation10 + $0x10]] }
  0xcb   :  { %v1008_v62 = vsel %vm365_vm3, %v1007_v32, %v1006_v8  ;;  %v1132_v35 = vmul.f32 %v3379_v40, %v2972_v0  ;;  %v1134_v61 = vmul.f32 %v3379_v40, %v2979_v31  ;;  %v1136_v8 = vmul.f32 %v3379_v40, %v2982_v55 }
  0xcc   :  { %v1010_v39 = vsel %vm367_vm4, %v1009_v2, %v1008_v62  ;;  %v1138_v19 = vmul.f32 %v3379_v40, %v2985_v50  ;;  %v1140_v43 = vmul.f32 %v3379_v40, %v2996_v16  ;;  %v1142_v49 = vmul.f32 %v3379_v40, %v3008_v15 }
  0xcd   :  { %v1012_v24 = vsel %vm369_vm5, %v1011_v56, %v1010_v39  ;;  %v1144_v34 = vmul.f32 %v3379_v40, %v3011_v4  ;;  %v1177_v18 = vrot.slane %v1134_v61, 7  ;;  %v3403_v32 = vstv %s3356_s0  ;;  %s3431_s0 = sld [smem:[#allocation10 + $0x43]] }
  0xce   :  { %v1146_v2 = vmul.f32 %v3379_v40, %v3014_v48  ;;  %v1179_v53 = vrot.slane %v1136_v8, 6  ;;  %v1181_v20 = vrot.slane %v1138_v19, 5  ;;  %v1183_v62 = vrot.slane %v1140_v43, 4 }
  0xcf   :  { %vm390_vm8 = vcmp.lt.s32.totalorder %v5144_v63, 3  ;;  %v1178_v56 = vsel %vm361_vm1, %v1177_v18, %v1132_v35  ;;  %v1185_v39 = vrot.slane %v1142_v49, 3  ;;  %v1187_v37 = vrot.slane %v1144_v34, 2 }
  0xd0   :  { %v1198_v14 = vmul.f32 %v3403_v32, %v2874_v6  ;;  %v1180_v61 = vsel %vm363_vm2, %v1179_v53, %v1178_v56  ;;  %v1200_v59 = vmul.f32 %v3403_v32, %v2888_v21  ;;  %v1202_v8 = vmul.f32 %v3403_v32, %v2892_v51 }
  0xd1   :  { %v1204_v19 = vmul.f32 %v3403_v32, %v2896_v29  ;;  %v1182_v43 = vsel %vm365_vm3, %v1181_v20, %v1180_v61  ;;  %v1206_v35 = vmul.f32 %v3403_v32, %v2908_v33  ;;  %v1208_v49 = vmul.f32 %v3403_v32, %v5134_v25  ;;  %v426_v20 = vpop.permute.xlu1 %425 }
  0xd2   :  { %v1210_v34 = vmul.f32 %v3403_v32, %v2916_v1  ;;  %v3428_v18 = vsel %vm373_vm7, %v949_v23, %v948_v30  ;;  %v1184_v53 = vsel %vm367_vm4, %v1183_v62, %v1182_v43  ;;  %v1243_v56 = vrot.slane %v1200_v59, 7 }
  0xd3   :  { %5145 = vst [vmem:[#allocation86_spill] sm:$0xff] %v3428_v18  ;;  %v1245_v22 = vrot.slane %v1202_v8, 6  ;;  %v1014_v61 = vsel %vm371_vm6, %v1013_v52, %v1012_v24  ;;  %v1186_v12 = vsel %vm369_vm5, %v1185_v39, %v1184_v53  ;;  %v1247_v60 = vrot.slane %v1204_v19, 5 }
  0xd4   :  { %v1249_v17 = vrot.slane %v1206_v35, 4  ;;  %v1189_v23 = vrot.slane %v1146_v2, 1  ;;  %v1212_v59 = vmul.f32 %v3403_v32, %v2920_v7  ;;  %v1244_v30 = vsel %vm361_vm1, %v1243_v56, %v1198_v14 }
  0xd5   :  { %v1251_v62 = vrot.slane %v1208_v49, 3  ;;  %vm451_vm9 = vcmp.lt.s32.totalorder %v5144_v63, 2  ;;  %v1188_v24 = vsel %vm371_vm6, %v1187_v37, %v1186_v12  ;;  %v1246_v39 = vsel %vm363_vm2, %v1245_v22, %v1244_v30 }
  0xd6   :  { %v1253_v8 = vrot.slane %v1210_v34, 2  ;;  %v3451_v2 = vsel %vm373_vm7, %v1015_v11, %v1014_v61  ;;  %v1248_v43 = vsel %vm365_vm3, %v1247_v60, %v1246_v39  ;;  %vm481_vm10 = vcmp.lt.s32.totalorder %v5144_v63, 1  ;;  %v455_v39 = vpop.permute.xlu0 %454 }
  0xd7   :  { %5146 = vst [vmem:[#allocation87_spill] sm:$0xff] %v3451_v2  ;;  %v1250_v35 = vsel %vm367_vm4, %v1249_v17, %v1248_v43  ;;  %v1131_v49 = vmul.f32 %v3379_v40, %v2928_v42  ;;  %v1133_v37 = vmul.f32 %v3379_v40, %v2932_v45  ;;  %v1135_v12 = vmul.f32 %v3379_v40, %v2936_v46 }
  0xd8   :  { %v3465_v11 = vsel %vm373_vm7, %v1189_v23, %v1188_v24  ;;  %v1252_v60 = vsel %vm369_vm5, %v1251_v62, %v1250_v35  ;;  %v1255_v22 = vrot.slane %v1212_v59, 1  ;;  %v1137_v17 = vmul.f32 %v3379_v40, %v2945_v26  ;;  %v5149_v35 = vld [vmem:[#allocation50_spill] sm:$0xff] }
  0xd9   :  { %5147 = vst [vmem:[#allocation88_spill] sm:$0xff] %v3465_v11  ;;  %v1254_v53 = vsel %vm371_vm6, %v1253_v8, %v1252_v60  ;;  %v1139_v56 = vmul.f32 %v3379_v40, %v2949_v28  ;;  %v3475_v61 = vmul.f32 %v3379_v40, %v2953_v38  ;;  %v1163_v23 = vrot.slane %v1133_v37, 7  ;;  %v5148_v8 = vld [vmem:[#allocation49_spill] sm:$0xff] }
  0xda   :  { %v3483_v62 = vmul.f32 %v3379_v40, %v2962_v41  ;;  %v1165_v24 = vrot.slane %v1135_v12, 6  ;;  %v3494_v12 = vsel %vm373_vm7, %v1255_v22, %v1254_v53  ;;  %v5155_v53 = vstv %s2864_s11  ;;  %s3601_s11 = sld [smem:[#allocation10 + $0x1f]] }
  0xdb   :  { %v1164_v37 = vsel %vm361_vm1, %v1163_v23, %v1131_v49  ;;  %5150 = vst [vmem:[#allocation49_spill] sm:$0xff] %v3494_v12  ;;  %v1167_v49 = vrot.slane %v1137_v17, 5  ;;  %v5151_v23 = vstv %s2862_s10  ;;  %v5157_v12 = vmov %v5155_v53  ;;  %s3572_s10 = sld [smem:[#allocation10 + $0x4e]] }
  0xdc   :  { %v1173_v19 = vrot.slane %v3483_v62, 2  ;;  %v5153_v14 = vmov %v5151_v23  ;;  %v5159_v17 = vstv %s2870_s12  ;;  %s3603_s12 = sld [smem:[#allocation10 + $0x50]]  ;;  %vm556_vm11 = vcmp.lt.s32.totalorder %v5144_v63, 127 }
  0xdd   :  { %vm586_vm12 = vcmp.lt.s32.totalorder %v5144_v63, 126  ;;  %vm616_vm13 = vcmp.lt.s32.totalorder %v5144_v63, 125 }
  0xe2   :  { %v428_v34 = vpop.permute.xlu1 %427 }
  0xe3   :  { %v429_v59 = vsel %vm390_vm8, %v426_v20, %v428_v34  ;;  %v430_v30 = vsel %vm390_vm8, %v428_v34, %v426_v20  ;;  %v1169_v20 = vrot.slane %v1139_v56, 4  ;;  %v1171_v34 = vrot.slane %v3475_v61, 3 }
  0xe4   :  { %v445_v43 = vmul.f32 %v5148_v8, %v430_v30  ;;  %v446_v60 = vmul.f32 %v5149_v35, %v429_v59  ;;  %v3498_v59 = vmul.f32 %v3379_v40, %v2966_v9  ;;  %v1166_v30 = vsel %vm363_vm2, %v1165_v24, %v1164_v37 }
  0xe5   :  { %v5161_v56 = vmov %v5159_v17  ;;  %v5163_v37 = vstv %s2877_s13  ;;  %v1168_v27 = vsel %vm365_vm3, %v1167_v49, %v1166_v30  ;;  %v5179_v49 = vld [vmem:[#allocation58_spill] sm:$0xff]  ;;  %s3658_s13 = sld [smem:[#allocation10 + $0x4f]] }
  0xe6   :  { %v457_v11 = vpop.permute.xlu1 %456  ;;  %v3503_v52 = vmul.f32 %v5151_v23, %v445_v43  ;;  %v3509_v22 = vmul.f32 %v5153_v14, %v446_v60  ;;  %v3513_v40 = vmul.f32 %v5155_v53, %v445_v43  ;;  %v3517_v2 = vmul.f32 %v5157_v12, %v446_v60  ;;  %v485_v12 = vpop.permute.xlu0 %484 }
  0xe7   :  { %v3521_v24 = vmul.f32 %v5159_v17, %v445_v43  ;;  %v3525_v61 = vmul.f32 %v5161_v56, %v446_v60  ;;  %v3529_v62 = vmul.f32 %v5163_v37, %v445_v43  ;;  %v458_v14 = vsel %vm451_vm9, %v455_v39, %v457_v11  ;;  %v5167_v17 = vld [vmem:[#allocation56_spill] sm:$0xff]  ;;  %v5169_v56 = vld [vmem:[#allocation57_spill] sm:$0xff] }
  0xe8   :  { %5152 = vst [vmem:[#allocation50_spill] sm:$0xff] %v3503_v52  ;;  %5154 = vst [vmem:[#allocation89_spill] sm:$0xff] %v3509_v22  ;;  %v459_v23 = vsel %vm451_vm9, %v457_v11, %v455_v39  ;;  %v5165_v53 = vmov %v5163_v37  ;;  %v3548_v11 = vmul.f32 %v5171_v36, %v445_v43  ;;  %v5173_v39 = vmov %v5171_v36 }
  0xe9   :  { %5156 = vst [vmem:[#allocation90_spill] sm:$0xff] %v3513_v40  ;;  %5158 = vst [vmem:[#allocation91_spill] sm:$0xff] %v3517_v2  ;;  %v3537_v18 = vmul.f32 %v5165_v53, %v446_v60  ;;  %v3552_v13 = vmul.f32 %v5173_v39, %v446_v60  ;;  %v5181_v39 = vld [vmem:[#allocation59_spill] sm:$0xff]  ;;  %v5191_v22 = vstv %s3212_s29 }
  0xea   :  { %5160 = vst [vmem:[#allocation92_spill] sm:$0xff] %v3521_v24  ;;  %5162 = vst [vmem:[#allocation93_spill] sm:$0xff] %v3525_v61  ;;  %v3540_v24 = vmul.f32 %v5167_v17, %v459_v23  ;;  %v3543_v61 = vmul.f32 %v5169_v56, %v458_v14  ;;  %v487_v37 = vpop.permute.xlu1 %486  ;;  %v5175_v14 = vstv %s2882_s1  ;;  %s3714_s1 = sld [smem:[#allocation10 + $0x51]] }
  0xeb   :  { %5164 = vst [vmem:[#allocation94_spill] sm:$0xff] %v3529_v62  ;;  %5166 = vst [vmem:[#allocation95_spill] sm:$0xff] %v3537_v18  ;;  %v488_v53 = vsel %vm481_vm10, %v485_v12, %v487_v37  ;;  %v489_v23 = vsel %vm481_vm10, %v487_v37, %v485_v12  ;;  %v3560_v40 = vmul.f32 %v5175_v14, %v445_v43  ;;  %v5177_v2 = vmov %v5175_v14 }
  0xec   :  { %5168 = vst [vmem:[#allocation56_spill] sm:$0xff] %v3540_v24  ;;  %5170 = vst [vmem:[#allocation57_spill] sm:$0xff] %v3543_v61  ;;  %v3564_v30 = vmul.f32 %v5177_v2, %v446_v60  ;;  %v3567_v36 = vmul.f32 %v5179_v49, %v489_v23  ;;  %v5183_v12 = vstv %s2884_s15  ;;  %v1170_v2 = vsel %vm367_vm4, %v1169_v20, %v1168_v27  ;;  %s3718_s15 = sld [smem:[#allocation10 + $0x21]] }
  0xed   :  { %5172 = vst [vmem:[#allocation96_spill] sm:$0xff] %v3548_v11  ;;  %5174 = vst [vmem:[#allocation97_spill] sm:$0xff] %v3552_v13  ;;  %v3570_v11 = vmul.f32 %v5181_v39, %v488_v53  ;;  %v3576_v37 = vmul.f32 %v5183_v12, %v445_v43  ;;  %v5185_v14 = vmov %v5183_v12  ;;  %v5187_v23 = vstv %s3077_s6  ;;  %s3720_s6 = sld [smem:[#allocation10 + $0x52]] }
  0xee   :  { %5176 = vst [vmem:[#allocation98_spill] sm:$0xff] %v3560_v40  ;;  %5178 = vst [vmem:[#allocation99_spill] sm:$0xff] %v3564_v30  ;;  %v3580_v40 = vmul.f32 %v5185_v14, %v446_v60  ;;  %v1175_v30 = vrot.slane %v3498_v59, 1  ;;  %v3587_v13 = vmul.f32 %v5187_v23, %v3543_v61  ;;  %v5189_v53 = vmov %v5187_v23 }
  0xef   :  { %5180 = vst [vmem:[#allocation100_spill] sm:$0xff] %v3567_v36  ;;  %5182 = vst [vmem:[#allocation101_spill] sm:$0xff] %v3570_v11  ;;  %v3592_v52 = vmul.f32 %v5189_v53, %v3540_v24  ;;  %v3597_v18 = vmul.f32 %v5191_v22, %v3543_v61  ;;  %v1197_v43 = vmul.f32 %v3403_v32, %v2750_v57  ;;  %v5193_v27 = vstv %s3098_s8  ;;  %s3727_s8 = sld [smem:[#allocation10 + $0x22]] }
  0xf0   :  { %5184 = vst [vmem:[#allocation102_spill] sm:$0xff] %v3576_v37  ;;  %5186 = vst [vmem:[#allocation103_spill] sm:$0xff] %v3580_v40  ;;  %v3608_v60 = vmul.f32 %v5193_v27, %v3570_v11  ;;  %v5195_v20 = vmov %v5193_v27  ;;  %v5197_v12 = vstv %s3252_s9  ;;  %v5199_v14 = vstv %s3212_s29  ;;  %s3744_s29 = sld [smem:[#allocation10 + $0x53]]  ;;  %s5305_s9 = sld [smem:[#allocation70_spill]] }
  0xf1   :  { %5188 = vst [vmem:[#allocation104_spill] sm:$0xff] %v3587_v13  ;;  %5190 = vst [vmem:[#allocation105_spill] sm:$0xff] %v3592_v52  ;;  %v3613_v59 = vmul.f32 %v5195_v20, %v3567_v36  ;;  %v3618_v22 = vmul.f32 %v5197_v12, %v3570_v11  ;;  %v3623_v23 = vmul.f32 %v5199_v14, %v3540_v24  ;;  %v5201_v53 = vmov %v5197_v12 }
  0xf2   :  { %5192 = vst [vmem:[#allocation106_spill] sm:$0xff] %v3597_v18  ;;  %5194 = vst [vmem:[#allocation107_spill] sm:$0xff] %v3608_v60  ;;  %v3628_v37 = vmul.f32 %v5201_v53, %v3567_v36  ;;  %v5203_v27 = vstv %s3347_s7  ;;  %v1172_v20 = vsel %vm369_vm5, %v1171_v34, %v1170_v2  ;;  %v1201_v14 = vmul.f32 %v3403_v32, %v2790_v44 }
  0xf3   :  { %5196 = vst [vmem:[#allocation108_spill] sm:$0xff] %v3613_v59  ;;  %5198 = vst [vmem:[#allocation109_spill] sm:$0xff] %v3618_v22  ;;  %v3633_v40 = vmul.f32 %v5203_v27, %v3543_v61  ;;  %v1199_v59 = vmul.f32 %v3403_v32, %v2780_v3  ;;  %v1174_v12 = vsel %vm371_vm6, %v1173_v19, %v1172_v20  ;;  %v5205_v27 = vstv %s3398_s4 }
  0xf4   :  { %5200 = vst [vmem:[#allocation110_spill] sm:$0xff] %v3623_v23  ;;  %5202 = vst [vmem:[#allocation111_spill] sm:$0xff] %v3628_v37  ;;  %v1203_v53 = vmul.f32 %v3403_v32, %v2794_v47  ;;  %v1205_v37 = vmul.f32 %v3403_v32, %v2809_v54  ;;  %v1207_v34 = vmul.f32 %v3403_v32, %v2813_v58  ;;  %v5207_v20 = vstv %s3347_s7  ;;  %s5307_s7 = sld [smem:[#allocation81_spill]] }
  0xf5   :  { %5204 = vst [vmem:[#allocation112_spill] sm:$0xff] %v3633_v40  ;;  %v3648_v40 = vmul.f32 %v5205_v27, %v3570_v11  ;;  %v1209_v19 = vmul.f32 %v3403_v32, %v2821_v10  ;;  %v3656_v2 = vmul.f32 %v3403_v32, %v2868_v5  ;;  %v3663_v23 = vmul.f32 %v5207_v20, %v3540_v24 }
  0xf6   :  { %v1229_v27 = vrot.slane %v1199_v59, 7  ;;  %v1233_v22 = vrot.slane %v1203_v53, 5  ;;  %v5208_v18 = vstv %s3398_s4  ;;  %v3671_v52 = vsel %vm373_vm7, %v1175_v30, %v1174_v12  ;;  %s3696_s4 = sld [smem:[#allocation10 + $0x1e]] }
  0xf7   :  { %5206 = vst [vmem:[#allocation113_spill] sm:$0xff] %v3648_v40  ;;  %v1231_v40 = vrot.slane %v1201_v14, 6  ;;  %v3668_v60 = vmul.f32 %v5208_v18, %v3567_v36  ;;  %5209 = vst [vmem:[#allocation114_spill] sm:$0xff] %v3671_v52  ;;  %v1235_v32 = vrot.slane %v1205_v37, 4  ;;  %v4957_v13 = vstv %s3572_s10 }
  0xf8   :  { %v1230_v62 = vsel %vm361_vm1, %v1229_v27, %v1197_v43  ;;  %v1237_v39 = vrot.slane %v1207_v34, 3  ;;  %v1239_v49 = vrot.slane %v1209_v19, 2  ;;  %v1241_v5 = vrot.slane %v3656_v2, 1  ;;  %v3704_v34 = vpop.permute.xlu0 %384 }
  0xf9   :  { %v1232_v20 = vsel %vm363_vm2, %v1231_v40, %v1230_v62  ;;  %v3680_v59 = vmul.f32 %v4957_v13, %v3543_v61  ;;  %v3683_v14 = vstv %s3601_s11  ;;  %v3686_v18 = vstv %s3603_s12  ;;  %s5320_s11 = sld [smem:[#allocation83_spill]]  ;;  %s5331_s12 = sld [smem:[#allocation73_spill]] }
  0xfa   :  { %v1234_v30 = vsel %vm365_vm3, %v1233_v22, %v1232_v20  ;;  %v1577_v37 = vmul.f32 %v3683_v14, %v2972_v0  ;;  %v1579_v43 = vmul.f32 %v3683_v14, %v2979_v31  ;;  %v1581_v40 = vmul.f32 %v3683_v14, %v2982_v55  ;;  %v5268_v55 = vld [vmem:[#allocation95_spill] sm:$0xff] }
  0xfb   :  { %v1236_v62 = vsel %vm367_vm4, %v1235_v32, %v1234_v30  ;;  %v1583_v12 = vmul.f32 %v3683_v14, %v2985_v50  ;;  %v1585_v53 = vmul.f32 %v3683_v14, %v2996_v16  ;;  %v1587_v22 = vmul.f32 %v3683_v14, %v3008_v15 }
  0xfc   :  { %v1238_v19 = vsel %vm369_vm5, %v1237_v39, %v1236_v62  ;;  %v1589_v2 = vmul.f32 %v3683_v14, %v3011_v4  ;;  %v1591_v27 = vmul.f32 %v3683_v14, %v3014_v48  ;;  %v1622_v32 = vrot.slane %v1579_v43, 7 }
  0xfd   :  { %v1624_v30 = vrot.slane %v1581_v40, 6  ;;  %v1626_v13 = vrot.slane %v1583_v12, 5  ;;  %v1628_v16 = vrot.slane %v1585_v53, 4  ;;  %v1240_v15 = vsel %vm371_vm6, %v1239_v49, %v1238_v19 }
  0xfe   :  { %v1623_v50 = vsel %vm361_vm1, %v1622_v32, %v1577_v37  ;;  %v1630_v39 = vrot.slane %v1587_v22, 3  ;;  %v1632_v62 = vrot.slane %v1589_v2, 2  ;;  %v1634_v48 = vrot.slane %v1591_v27, 1  ;;  %v448_v27 = vpop.permute.xlu0 %447 }
  0xff   :  { %v1625_v43 = vsel %vm363_vm2, %v1624_v30, %v1623_v50  ;;  %v1643_v40 = vmul.f32 %v3686_v18, %v2874_v6  ;;  %v1645_v12 = vmul.f32 %v3686_v18, %v2888_v21  ;;  %v1647_v37 = vmul.f32 %v3686_v18, %v2892_v51 }
 0x100   :  { %v1627_v49 = vsel %vm365_vm3, %v1626_v13, %v1625_v43  ;;  %v1649_v53 = vmul.f32 %v3686_v18, %v2896_v29  ;;  %v1651_v50 = vmul.f32 %v3686_v18, %v2908_v33  ;;  %v1653_v19 = vmul.f32 %v3686_v18, %v5134_v25 }
 0x101   :  { %v1629_v22 = vsel %vm367_vm4, %v1628_v16, %v1627_v49  ;;  %v1655_v2 = vmul.f32 %v3686_v18, %v2916_v1  ;;  %v1657_v13 = vmul.f32 %v3686_v18, %v2920_v7  ;;  %v1688_v30 = vrot.slane %v1645_v12, 7 }
 0x102   :  { %v1631_v32 = vsel %vm369_vm5, %v1630_v39, %v1629_v22  ;;  %v1690_v43 = vrot.slane %v1647_v37, 6  ;;  %v1692_v20 = vrot.slane %v1649_v53, 5  ;;  %v5210_v49 = vstv %s3658_s13 }
 0x103   :  { %v3750_v25 = vmul.f32 %v5210_v49, %v3570_v11  ;;  %v1633_v7 = vsel %vm371_vm6, %v1632_v62, %v1631_v32  ;;  %v1694_v1 = vrot.slane %v1651_v50, 4  ;;  %v3754_v39 = vsel %vm373_vm7, %v1241_v5, %v1240_v15 }
 0x104   :  { %5212 = vst [vmem:[#allocation116_spill] sm:$0xff] %v3754_v39  ;;  %v1689_v12 = vsel %vm361_vm1, %v1688_v30, %v1643_v40  ;;  %v1696_v37 = vrot.slane %v1653_v19, 3  ;;  %v1698_v53 = vrot.slane %v1655_v2, 2  ;;  %v3758_v22 = vsel %vm373_vm7, %v1634_v48, %v1633_v7  ;;  %v3772_v48 = vpop.permute.xlu0 %477 }
 0x105   :  { %5211 = vst [vmem:[#allocation115_spill] sm:$0xff] %v3750_v25  ;;  %5213 = vst [vmem:[#allocation117_spill] sm:$0xff] %v3758_v22  ;;  %v1691_v16 = vsel %vm363_vm2, %v1690_v43, %v1689_v12  ;;  %v1700_v33 = vrot.slane %v1657_v13, 1  ;;  %v1576_v40 = vmul.f32 %v3683_v14, %v2928_v42  ;;  %v1578_v7 = vmul.f32 %v3683_v14, %v2932_v45  ;;  %v5253_v45 = vld [vmem:[#allocation59_spill] sm:$0xff]  ;;  %v5311_v25 = vld [vmem:[#allocation106_spill] sm:$0xff] }
 0x106   :  { %v1693_v49 = vsel %vm365_vm3, %v1692_v20, %v1691_v16  ;;  %v1580_v20 = vmul.f32 %v3683_v14, %v2936_v46  ;;  %v1582_v2 = vmul.f32 %v3683_v14, %v2945_v26  ;;  %v3784_v32 = vmul.f32 %v3683_v14, %v2953_v38  ;;  %v5251_v38 = vld [vmem:[#allocation58_spill] sm:$0xff] }
 0x107   :  { %v1695_v5 = vsel %vm367_vm4, %v1694_v1, %v1693_v49  ;;  %v1584_v1 = vmul.f32 %v3683_v14, %v2949_v28  ;;  %v3788_v30 = vmul.f32 %v3683_v14, %v2962_v41  ;;  %v3792_v43 = vmul.f32 %v3683_v14, %v2966_v9 }
 0x108   :  { %v1697_v19 = vsel %vm369_vm5, %v1696_v37, %v1695_v5  ;;  %v1608_v12 = vrot.slane %v1578_v7, 7  ;;  %v1610_v37 = vrot.slane %v1580_v20, 6  ;;  %v1612_v49 = vrot.slane %v1582_v2, 5 }
 0x109   :  { %v1699_v13 = vsel %vm371_vm6, %v1698_v53, %v1697_v19  ;;  %5214 = vst [vmem:[#allocation118_spill] sm:$0xff] %v3788_v30  ;;  %5215 = vst [vmem:[#allocation119_spill] sm:$0xff] %v3792_v43  ;;  %v5217_v53 = vstv %s3572_s10  ;;  %v5219_v15 = vstv %s3658_s13  ;;  %v1614_v62 = vrot.slane %v1584_v1, 4  ;;  %s5318_s10 = sld [smem:[#allocation72_spill]] }
 0x10a   :  { %v3796_v5 = vsel %vm373_vm7, %v1700_v33, %v1699_v13  ;;  %v3801_v19 = vmul.f32 %v5217_v53, %v3540_v24  ;;  %v3806_v50 = vmul.f32 %v5219_v15, %v3567_v36  ;;  %v1609_v51 = vsel %vm361_vm1, %v1608_v12, %v1576_v40  ;;  %v450_v1 = vpop.permute.xlu1 %449  ;;  %v387_v40 = vpop.permute.xlu0 %386  ;;  %s5334_s13 = sld [smem:[#allocation84_spill]] }
 0x10b   :  { %5216 = vst [vmem:[#allocation120_spill] sm:$0xff] %v3796_v5  ;;  %v1644_v20 = vmul.f32 %v3686_v18, %v2780_v3  ;;  %v1611_v33 = vsel %vm363_vm2, %v1610_v37, %v1609_v51  ;;  %v1642_v13 = vmul.f32 %v3686_v18, %v2750_v57  ;;  %v3819_v15 = vmul.f32 %v3686_v18, %v2790_v44 }
 0x10c   :  { %5218 = vst [vmem:[#allocation121_spill] sm:$0xff] %v3801_v19  ;;  %5220 = vst [vmem:[#allocation122_spill] sm:$0xff] %v3806_v50  ;;  %v1613_v12 = vsel %vm365_vm3, %v1612_v49, %v1611_v33  ;;  %v3824_v53 = vmul.f32 %v3686_v18, %v2794_v47  ;;  %v3828_v51 = vmul.f32 %v3686_v18, %v2809_v54  ;;  %v5236_v47 = vstv %s2922_s19  ;;  %s5272_s19 = sld [smem:[#allocation61_spill]]  ;;  %v5298_v50 = vld [vmem:[#allocation91_spill] sm:$0xff]  ;;  %v5312_v19 = vld [vmem:[#allocation90_spill] sm:$0xff] }
 0x10d   :  { %5221 = vst [vmem:[#allocation123_spill] sm:$0xff] %v3819_v15  ;;  %v1674_v37 = vrot.slane %v1644_v20, 7  ;;  %v452_v2 = vsel %vm451_vm9, %v448_v27, %v450_v1  ;;  %v453_v7 = vsel %vm451_vm9, %v450_v1, %v448_v27  ;;  %v391_v49 = vsel %vm390_vm8, %v3704_v34, %v387_v40 }
 0x10e   :  { %5222 = vst [vmem:[#allocation124_spill] sm:$0xff] %v3824_v53  ;;  %5223 = vst [vmem:[#allocation125_spill] sm:$0xff] %v3828_v51  ;;  %v392_v33 = vsel %vm390_vm8, %v387_v40, %v3704_v34  ;;  %v473_v14 = vmul.f32 %v5167_v17, %v453_v7  ;;  %v474_v20 = vmul.f32 %v5169_v56, %v452_v2  ;;  %v5227_v7 = vld [vmem:[#allocation25_spill] sm:$0xff]  ;;  %v5229_v40 = vstv %s2899_s16  ;;  %v480_v29 = vpop.permute.xlu1 %479  ;;  %s5244_s16 = sld [smem:[#allocation46_spill]] }
 0x10f   :  { %v3845_v27 = vmul.f32 %v3686_v18, %v2813_v58  ;;  %v3849_v1 = vmul.f32 %v3686_v18, %v2821_v10  ;;  %v3852_v34 = vmul.f32 %v5148_v8, %v392_v33  ;;  %v444_v17 = vmul.f32 %v5149_v35, %v391_v49  ;;  %v553_v10 = vpop.permute.xlu0 %552 }
 0x110   :  { %v3856_v56 = vsel %vm367_vm4, %v1614_v62, %v1613_v12  ;;  %v3860_v2 = vmul.f32 %v3686_v18, %v5227_v7  ;;  %v3864_v16 = vmul.f32 %v5229_v40, %v473_v14  ;;  %v3867_v8 = vsel %vm361_vm1, %v1674_v37, %v1642_v13 }
 0x111   :  { %5224 = vst [vmem:[#allocation126_spill] sm:$0xff] %v3845_v27  ;;  %5225 = vst [vmem:[#allocation127_spill] sm:$0xff] %v3849_v1  ;;  %v5231_v12 = vmov %v5229_v40  ;;  %v5232_v49 = vstv %s2901_s17  ;;  %v5234_v58 = vstv %s2904_s18  ;;  %v1333_v35 = vmul.f32 %v5236_v47, %v473_v14  ;;  %s5249_s17 = sld [smem:[#allocation54_spill]]  ;;  %s5254_s18 = sld [smem:[#allocation55_spill]]  ;;  %v5310_v27 = vld [vmem:[#allocation107_spill] sm:$0xff] }
 0x112   :  { %5226 = vst [vmem:[#allocation128_spill] sm:$0xff] %v3852_v34  ;;  %5228 = vst [vmem:[#allocation129_spill] sm:$0xff] %v3860_v2  ;;  %v657_v18 = vmul.f32 %v5231_v12, %v474_v20  ;;  %v3875_v33 = vmul.f32 %v5232_v49, %v473_v14  ;;  %v5233_v40 = vmov %v5232_v49  ;;  %v3883_v54 = vmul.f32 %v5234_v58, %v473_v14  ;;  %v555_v26 = vpop.permute.xlu1 %554 }
 0x113   :  { %5230 = vst [vmem:[#allocation130_spill] sm:$0xff] %v3867_v8  ;;  %v3879_v7 = vmul.f32 %v5233_v40, %v474_v20  ;;  %v5235_v13 = vmov %v5234_v58  ;;  %v5237_v44 = vmov %v5236_v47  ;;  %v5238_v3 = vstv %s2924_s20  ;;  %v560_v46 = vpop.permute.xlu0 %559  ;;  %s5274_s20 = sld [smem:[#allocation65_spill]]  ;;  %v5326_v8 = vld [vmem:[#allocation109_spill] sm:$0xff] }
 0x114   :  { %v3887_v37 = vmul.f32 %v5235_v13, %v474_v20  ;;  %v1334_v62 = vmul.f32 %v5237_v44, %v474_v20  ;;  %v3895_v12 = vmul.f32 %v5238_v3, %v473_v14  ;;  %v5240_v49 = vmov %v5238_v3 }
 0x115   :  { %v3900_v58 = vmul.f32 %v5240_v49, %v474_v20  ;;  %v5241_v40 = vstv %s2939_s22  ;;  %v482_v44 = vsel %vm481_vm10, %v3772_v48, %v480_v29  ;;  %v483_v3 = vsel %vm481_vm10, %v480_v29, %v3772_v48  ;;  %s5279_s22 = sld [smem:[#allocation66_spill]] }
 0x116   :  { %5239 = vst [vmem:[#allocation131_spill] sm:$0xff] %v3895_v12  ;;  %v3904_v13 = vmul.f32 %v5241_v40, %v473_v14  ;;  %v5243_v47 = vmov %v5241_v40  ;;  %v5246_v49 = vstv %s2941_s23  ;;  %v3925_v28 = vmul.f32 %v5251_v38, %v483_v3  ;;  %s5284_s23 = sld [smem:[#allocation75_spill]]  ;;  %v5338_v12 = vld [vmem:[#allocation85_spill] sm:$0xff] }
 0x117   :  { %v3914_v57 = vmul.f32 %v5243_v47, %v474_v20  ;;  %v3918_v9 = vmul.f32 %v5246_v49, %v473_v14  ;;  %v5248_v40 = vmov %v5246_v49  ;;  %v3928_v29 = vmul.f32 %v5253_v45, %v482_v44  ;;  %v583_v11 = vpop.permute.xlu0 %582 }
 0x118   :  { %5242 = vst [vmem:[#allocation132_spill] sm:$0xff] %v3904_v13  ;;  %v3922_v41 = vmul.f32 %v5248_v40, %v474_v20  ;;  %5252 = vst [vmem:[#allocation58_spill] sm:$0xff] %v3925_v28  ;;  %v5255_v48 = vstv %s2956_s24  ;;  %v5257_v49 = vstv %s2958_s25  ;;  %v5259_v38 = vstv %s2974_s26  ;;  %s5286_s24 = sld [smem:[#allocation76_spill]]  ;;  %s5290_s25 = sld [smem:[#allocation69_spill]] }
 0x119   :  { %5245 = vst [vmem:[#allocation133_spill] sm:$0xff] %v3914_v57  ;;  %5247 = vst [vmem:[#allocation134_spill] sm:$0xff] %v3918_v9  ;;  %v646_v47 = vmul.f32 %v5255_v48, %v3852_v34  ;;  %v5256_v42 = vmov %v5255_v48  ;;  %v871_v9 = vmul.f32 %v5257_v49, %v3852_v34  ;;  %v5258_v20 = vmov %v5257_v49  ;;  %s5291_s26 = sld [smem:[#allocation77_spill]] }
 0x11a   :  { %5250 = vst [vmem:[#allocation135_spill] sm:$0xff] %v3922_v41  ;;  %v647_v14 = vmul.f32 %v5256_v42, %v444_v17  ;;  %v872_v40 = vmul.f32 %v5258_v20, %v444_v17  ;;  %v3943_v3 = vmul.f32 %v5259_v38, %v3852_v34  ;;  %v5260_v41 = vstv %s2976_s27  ;;  %s5300_s27 = sld [smem:[#allocation80_spill]] }
 0x11b   :  { %v1323_v13 = vmul.f32 %v5260_v41, %v3852_v34  ;;  %v5261_v36 = vmov %v5260_v41  ;;  %v5262_v44 = vmov %v5259_v38  ;;  %v5263_v48 = vstv %s5244_s16  ;;  %v5267_v38 = vld [vmem:[#allocation94_spill] sm:$0xff]  ;;  %s2503_s16 = smov 48  }
 0x11c   :  { %v1324_v45 = vmul.f32 %v5261_v36, %v444_v17  ;;  %v3952_v24 = vmul.f32 %v5262_v44, %v444_v17  ;;  %v3957_v42 = vmul.f32 %v5263_v48, %v3852_v34  ;;  %v5264_v21 = vmov %v5263_v48  ;;  %v562_v48 = vpop.permute.xlu1 %561 }
 0x11d   :  { %v3961_v49 = vmul.f32 %v5264_v21, %v444_v17  ;;  %v5265_v20 = vstv %s5249_s17  ;;  %v1329_v4 = vadd.f32 %v5267_v38, %v1323_v13  ;;  %v5271_v44 = vstv %s5254_s18  ;;  %s4492_s17 = sld [smem:[#allocation10 + $0x5c]] }
 0x11e   :  { %v3966_v6 = vmul.f32 %v5265_v20, %v3852_v34  ;;  %v1330_v41 = vadd.f32 %v5268_v55, %v1324_v45  ;;  %v5269_v31 = vmov %v5265_v20  ;;  %v3976_v0 = vmul.f32 %v5271_v44, %v444_v17  ;;  %v5277_v45 = vld [vmem:[#allocation60_spill] sm:$0xff]  ;;  %v5278_v44 = vld [vmem:[#allocation62_spill] sm:$0xff] }
 0x11f   :  { %v3972_v36 = vmul.f32 %v5269_v31, %v444_v17  ;;  %v557_v21 = vsel %vm556_vm11, %v553_v10, %v555_v26  ;;  %v558_v20 = vsel %vm556_vm11, %v555_v26, %v553_v10  ;;  %v563_v55 = vsel %vm556_vm11, %v560_v46, %v562_v48 }
 0x120   :  { %5266 = vst [vmem:[#allocation59_spill] sm:$0xff] %v3966_v6  ;;  %5273 = vst [vmem:[#allocation95_spill] sm:$0xff] %v3976_v0  ;;  %v564_v31 = vsel %vm556_vm11, %v562_v48, %v560_v46  ;;  %v3986_v13 = vadd.f32 %v1333_v35, %v1329_v4  ;;  %v3988_v17 = vadd.f32 %v1334_v62, %v1330_v41  ;;  %v5282_v46 = vld [vmem:[#allocation89_spill] sm:$0xff]  ;;  %v5283_v35 = vstv %s5272_s19  ;;  %v585_v41 = vpop.permute.xlu1 %584  ;;  %v590_v48 = vpop.permute.xlu0 %589  ;;  %s4494_s19 = sld [smem:[#allocation10 + $0x2c]] }
 0x121   :  { %5270 = vst [vmem:[#allocation94_spill] sm:$0xff] %v3972_v36  ;;  %v3991_v38 = vmul.f32 %v5277_v45, %v557_v21  ;;  %v3994_v34 = vmul.f32 %v5278_v44, %v558_v20  ;;  %v3998_v10 = vmul.f32 %v5277_v45, %v563_v55  ;;  %v4001_v26 = vmul.f32 %v5278_v44, %v564_v31  ;;  %v5297_v36 = vld [vmem:[#allocation104_spill] sm:$0xff] }
 0x122   :  { %5275 = vst [vmem:[#allocation136_spill] sm:$0xff] %v3986_v13  ;;  %5276 = vst [vmem:[#allocation137_spill] sm:$0xff] %v3988_v17  ;;  %v653_v4 = vadd.f32 %v5282_v46, %v647_v14  ;;  %v669_v62 = vmul.f32 %v5283_v35, %v3928_v29  ;;  %v5285_v21 = vstv %s5274_s20  ;;  %v5287_v17 = vld [vmem:[#allocation50_spill] sm:$0xff]  ;;  %v5288_v55 = vmov %v5283_v35  ;;  %s4503_s20 = sld [smem:[#allocation10 + $0x5d]] }
 0x123   :  { %5280 = vst [vmem:[#allocation60_spill] sm:$0xff] %v3994_v34  ;;  %5281 = vst [vmem:[#allocation62_spill] sm:$0xff] %v4001_v26  ;;  %v813_v20 = vmul.f32 %v5285_v21, %v3994_v34  ;;  %v652_v13 = vadd.f32 %v5287_v17, %v646_v47  ;;  %v668_v45 = vmul.f32 %v5288_v55, %v3925_v28  ;;  %v5289_v31 = vmov %v5285_v21  ;;  %v5293_v47 = vld [vmem:[#allocation63_spill] sm:$0xff]  ;;  %v5294_v55 = vld [vmem:[#allocation64_spill] sm:$0xff] }
 0x124   :  { %v812_v44 = vmul.f32 %v5289_v31, %v3991_v38  ;;  %v587_v14 = vsel %vm586_vm12, %v583_v11, %v585_v41  ;;  %v588_v46 = vsel %vm586_vm12, %v585_v41, %v583_v11  ;;  %v659_v35 = vadd.f32 %v657_v18, %v653_v4  ;;  %v613_v22 = vpop.permute.xlu0 %612 }
 0x125   :  { %v5292_v21 = vstv %s5279_s22  ;;  %v4025_v17 = vmul.f32 %v5293_v47, %v587_v14  ;;  %v4028_v6 = vmul.f32 %v5294_v55, %v588_v46  ;;  %v658_v31 = vadd.f32 %v3864_v16, %v652_v13  ;;  %v5303_v13 = vld [vmem:[#allocation105_spill] sm:$0xff]  ;;  %s4506_s22 = sld [smem:[#allocation10 + $0x2d]] }
 0x126   :  { %v819_v0 = vmul.f32 %v5292_v21, %v4001_v26  ;;  %v5296_v57 = vmov %v5292_v21  ;;  %v665_v5 = vadd.f32 %v5297_v36, %v659_v35  ;;  %v878_v11 = vadd.f32 %v5298_v50, %v872_v40  ;;  %v592_v21 = vpop.permute.xlu1 %591 }
 0x127   :  { %5295 = vst [vmem:[#allocation89_spill] sm:$0xff] %v4028_v6  ;;  %v818_v61 = vmul.f32 %v5296_v57, %v3998_v10  ;;  %v5299_v18 = vstv %s5284_s23  ;;  %v5301_v41 = vstv %s5286_s24  ;;  %v5302_v46 = vstv %s5290_s25  ;;  %s4577_s25 = sld [smem:[#allocation10 + $0x2e]] }
 0x128   :  { %v894_v4 = vmul.f32 %v5299_v18, %v3928_v29  ;;  %v1038_v14 = vmul.f32 %v5301_v41, %v3994_v34  ;;  %v825_v16 = vmul.f32 %v5302_v46, %v4028_v6  ;;  %v664_v2 = vadd.f32 %v5303_v13, %v658_v31 }
 0x129   :  { %v5304_v57 = vmov %v5302_v46  ;;  %v5306_v50 = vstv %s5291_s26  ;;  %v593_v35 = vsel %vm586_vm12, %v590_v48, %v592_v21  ;;  %v594_v18 = vsel %vm586_vm12, %v592_v21, %v590_v48  ;;  %v5319_v21 = vld [vmem:[#allocation71_spill] sm:$0xff] }
 0x12a   :  { %v824_v36 = vmul.f32 %v5304_v57, %v4025_v17  ;;  %v1044_v40 = vmul.f32 %v5306_v50, %v4001_v26  ;;  %v671_v41 = vadd.f32 %v669_v62, %v665_v5  ;;  %v884_v46 = vadd.f32 %v3879_v7, %v878_v11  ;;  %v615_v7 = vpop.permute.xlu1 %614 }
 0x12b   :  { %v4058_v31 = vmul.f32 %v5293_v47, %v593_v35  ;;  %v4061_v13 = vmul.f32 %v5294_v55, %v594_v18  ;;  %v670_v57 = vadd.f32 %v668_v45, %v664_v2  ;;  %v5309_v50 = vstv %s5300_s27  ;;  %v5315_v55 = vld [vmem:[#allocation108_spill] sm:$0xff] }
 0x12c   :  { %v1050_v1 = vmul.f32 %v5309_v50, %v4028_v6  ;;  %v677_v51 = vadd.f32 %v5310_v27, %v671_v41  ;;  %v890_v53 = vadd.f32 %v5311_v25, %v884_v46  ;;  %v877_v39 = vadd.f32 %v5312_v19, %v871_v9  ;;  %v5321_v41 = vld [vmem:[#allocation67_spill] sm:$0xff] }
 0x12d   :  { %5308 = vst [vmem:[#allocation50_spill] sm:$0xff] %v4061_v13  ;;  %v5313_v5 = vstv %s5284_s23  ;;  %v5314_v48 = vstv %s5305_s9  ;;  %v676_v2 = vadd.f32 %v5315_v55, %v670_v57  ;;  %v5317_v27 = vstv %s5307_s7  ;;  %v5322_v57 = vld [vmem:[#allocation68_spill] sm:$0xff]  ;;  %s2507_s23 = smov 96   ;;  %s4592_s9 = sld [smem:[#allocation10 + $0x60]] }
 0x12e   :  { %v893_v62 = vmul.f32 %v5313_v5, %v3925_v28  ;;  %v831_v47 = vmul.f32 %v5314_v48, %v4061_v13  ;;  %v5316_v45 = vmov %v5314_v48  ;;  %v1056_v25 = vmul.f32 %v5317_v27, %v4061_v13  ;;  %v620_v5 = vpop.permute.xlu0 %619  ;;  %v5324_v48 = vld [vmem:[#allocation78_spill] sm:$0xff]  ;;  %v5325_v27 = vld [vmem:[#allocation74_spill] sm:$0xff] }
 0x12f   :  { %v830_v11 = vmul.f32 %v5316_v45, %v4058_v31  ;;  %v617_v9 = vsel %vm616_vm13, %v613_v22, %v615_v7  ;;  %v618_v19 = vsel %vm616_vm13, %v615_v7, %v613_v22  ;;  %v743_v35 = vadd.f32 %v5319_v21, %v677_v51 }
 0x130   :  { %v896_v18 = vadd.f32 %v894_v4, %v890_v53  ;;  %v4088_v46 = vmul.f32 %v5321_v41, %v617_v9  ;;  %v4091_v50 = vmul.f32 %v5322_v57, %v618_v19  ;;  %v742_v55 = vadd.f32 %v5324_v48, %v676_v2  ;;  %v622_v4 = vpop.permute.xlu1 %621  ;;  %v5330_v2 = vld [vmem:[#allocation79_spill] sm:$0xff] }
 0x131   :  { %v883_v45 = vadd.f32 %v3875_v33, %v877_v39  ;;  %v809_v15 = vadd.f32 %v5325_v27, %v743_v35  ;;  %v5327_v22 = vstv %s5286_s24  ;;  %v5328_v53 = vstv %s5291_s26  ;;  %s4542_s24 = sld [smem:[#allocation10 + $0x5e]]  ;;  %s4583_s26 = sld [smem:[#allocation10 + $0x5f]] }
 0x132   :  { %5323 = vst [vmem:[#allocation63_spill] sm:$0xff] %v4091_v50  ;;  %v902_v43 = vadd.f32 %v5326_v8, %v896_v18  ;;  %v1037_v7 = vmul.f32 %v5327_v22, %v3991_v38  ;;  %v4103_v51 = vmul.f32 %v5328_v53, %v3998_v10  ;;  %v5329_v9 = vstv %s5318_s10  ;;  %v5335_v22 = vld [vmem:[#allocation82_spill] sm:$0xff]  ;;  %s4603_s10 = sld [smem:[#allocation10 + $0x61]] }
 0x133   :  { %v837_v19 = vmul.f32 %v5329_v9, %v4091_v50  ;;  %v808_v39 = vadd.f32 %v5330_v2, %v742_v55  ;;  %v5332_v33 = vmov %v5329_v9  ;;  %v5333_v8 = vstv %s5320_s11 }
 0x134   :  { %v836_v21 = vmul.f32 %v5332_v33, %v4088_v46  ;;  %v1062_v35 = vmul.f32 %v5333_v8, %v4091_v50  ;;  %v623_v18 = vsel %vm616_vm13, %v620_v5, %v622_v4  ;;  %v624_v48 = vsel %vm616_vm13, %v622_v4, %v620_v5  ;;  %v5337_v33 = vld [vmem:[#allocation110_spill] sm:$0xff] }
 0x135   :  { %v815_v27 = vadd.f32 %v813_v20, %v809_v15  ;;  %v968_v53 = vadd.f32 %v5335_v22, %v902_v43  ;;  %v4121_v55 = vmul.f32 %v5321_v41, %v623_v18  ;;  %v4124_v9 = vmul.f32 %v5322_v57, %v624_v48 }
 0x136   :  { %v814_v2 = vadd.f32 %v812_v44, %v808_v39  ;;  %v889_v8 = vadd.f32 %v5337_v33, %v883_v45  ;;  %v5339_v5 = vstv %s5300_s27  ;;  %v5340_v43 = vstv %s5307_s7  ;;  %s4585_s27 = sld [smem:[#allocation10 + $0x2f]]  ;;  %s4601_s7 = sld [smem:[#allocation10 + $0x30]] }
 0x137   :  { %5336 = vst [vmem:[#allocation64_spill] sm:$0xff] %v4124_v9  ;;  %v821_v30 = vadd.f32 %v819_v0, %v815_v27  ;;  %v1034_v52 = vadd.f32 %v5338_v12, %v968_v53  ;;  %v1049_v15 = vmul.f32 %v5339_v5, %v4025_v17  ;;  %v4134_v20 = vmul.f32 %v5340_v43, %v4058_v31 }
 0x138   :  { %v5341_v41 = vstv %s5331_s12  ;;  %v820_v4 = vadd.f32 %v818_v61, %v814_v2  ;;  %v5343_v45 = vstv %s5334_s13  ;;  %v895_v48 = vadd.f32 %v893_v62, %v889_v8  ;;  %v5346_v2 = vld [vmem:[#allocation93_spill] sm:$0xff]  ;;  %s2293_s12 = sld [smem:[#allocation10 + $0x47]]  ;;  %s2295_s13 = sld [smem:[#allocation10 + $0x48]] }
 0x139   :  { %v843_v57 = vmul.f32 %v5341_v41, %v4124_v9  ;;  %v5342_v44 = vmov %v5341_v41  ;;  %v1068_v0 = vmul.f32 %v5343_v45, %v4124_v9  ;;  %v827_v12 = vadd.f32 %v825_v16, %v821_v30 }
 0x13a   :  { %v842_v39 = vmul.f32 %v5342_v44, %v4121_v55  ;;  %v1040_v18 = vadd.f32 %v1038_v14, %v1034_v52  ;;  %v5344_v27 = vstv %s5320_s11  ;;  %v826_v53 = vadd.f32 %v824_v36, %v820_v4  ;;  %v5348_v14 = vld [vmem:[#allocation111_spill] sm:$0xff]  ;;  %s2296_s11 = sld [smem:[#allocation10 + $0x18]] }
 0x13b   :  { %v4148_v22 = vmul.f32 %v5344_v27, %v4088_v46  ;;  %v5345_v33 = vmov %v5343_v45  ;;  %v1104_v5 = vadd.f32 %v5346_v2, %v3952_v24  ;;  %v5347_v43 = vstv %s3396_s5 }
 0x13c   :  { %v4153_v61 = vmul.f32 %v5345_v33, %v4121_v55  ;;  %v1120_v41 = vmul.f32 %v5347_v43, %v3928_v29  ;;  %v833_v52 = vadd.f32 %v831_v47, %v827_v12  ;;  %v1046_v30 = vadd.f32 %v1044_v40, %v1040_v18  ;;  %v5352_v40 = vld [vmem:[#allocation86_spill] sm:$0xff] }
 0x13d   :  { %v901_v16 = vadd.f32 %v5348_v14, %v895_v48  ;;  %v5349_v62 = vstv %s3407_s21  ;;  %v832_v36 = vadd.f32 %v830_v11, %v826_v53  ;;  %v1110_v4 = vadd.f32 %v3887_v37, %v1104_v5  ;;  %v5354_v53 = vld [vmem:[#allocation112_spill] sm:$0xff] }
 0x13e   :  { %v1264_v8 = vmul.f32 %v5349_v62, %v3994_v34  ;;  %v5350_v44 = vstv %s3431_s0  ;;  %v5351_v24 = vstv %s3435_s2  ;;  %v839_v33 = vadd.f32 %v837_v19, %v833_v52  ;;  %v5357_v52 = vld [vmem:[#allocation87_spill] sm:$0xff] }
 0x13f   :  { %v1270_v45 = vmul.f32 %v5350_v44, %v4001_v26  ;;  %v4171_v27 = vmul.f32 %v5351_v24, %v4028_v6  ;;  %v1052_v47 = vadd.f32 %v1050_v1, %v1046_v30  ;;  %v967_v12 = vadd.f32 %v5352_v40, %v901_v16  ;;  %v5358_v16 = vld [vmem:[#allocation92_spill] sm:$0xff] }
 0x140   :  { %v5353_v18 = vstv %s3437_s3  ;;  %v838_v11 = vadd.f32 %v836_v21, %v832_v36  ;;  %v1116_v37 = vadd.f32 %v5354_v53, %v1110_v4  ;;  %v5355_v2 = vstv %s3442_s30  ;;  %s2504_s30 = smov 32  }
 0x141   :  { %v4177_v48 = vmul.f32 %v5353_v18, %v4061_v13  ;;  %v4183_v5 = vmul.f32 %v5355_v2, %v4091_v50  ;;  %v5356_v43 = vstv %s3444_s28  ;;  %v845_v19 = vadd.f32 %v843_v57, %v839_v33  ;;  %s4294_s28 = sld [smem:[#allocation10 + $0x55]] }
 0x142   :  { %v4188_v14 = vmul.f32 %v5356_v43, %v4124_v9  ;;  %v1058_v1 = vadd.f32 %v1056_v25, %v1052_v47  ;;  %v1033_v30 = vadd.f32 %v5357_v52, %v967_v12  ;;  %v1103_v21 = vadd.f32 %v5358_v16, %v3943_v3 }
 0x143   :  { %v844_v62 = vadd.f32 %v842_v39, %v838_v11  ;;  %v1122_v36 = vadd.f32 %v1120_v41, %v1116_v37  ;;  %v5359_v4 = vstv %s3396_s5  ;;  %v5360_v24 = vstv %s3407_s21  ;;  %848 = vrot.lane.b32.xlu1 %v845_v19, %s2503_s16  ;;  %v5362_v39 = vld [vmem:[#allocation113_spill] sm:$0xff]  ;;  %s4302_s21 = sld [smem:[#allocation10 + $0x56]]  ;;  %s4315_s5 = sld [smem:[#allocation10 + $0x57]] }
 0x144   :  { %v1119_v44 = vmul.f32 %v5359_v4, %v3925_v28  ;;  %v1263_v40 = vmul.f32 %v5360_v24, %v3991_v38  ;;  %v1064_v25 = vadd.f32 %v1062_v35, %v1058_v1  ;;  %v1039_v57 = vadd.f32 %v1037_v7, %v1033_v30  ;;  %v5366_v1 = vld [vmem:[#allocation88_spill] sm:$0xff]  ;;  %v5367_v30 = vld [vmem:[#allocation97_spill] sm:$0xff] }
 0x145   :  { %v1109_v33 = vadd.f32 %v3883_v54, %v1103_v21  ;;  %v5361_v47 = vstv %s3431_s0  ;;  %846 = vrot.lane.b32.xlu0 %v844_v62, %s2503_s16  ;;  %v1128_v41 = vadd.f32 %v5362_v39, %v1122_v36  ;;  %v5363_v12 = vstv %s3435_s2  ;;  %s4313_s2 = sld [smem:[#allocation10 + $0x26]]  ;;  %s2505_s0 = smov 16  }
 0x146   :  { %v1269_v3 = vmul.f32 %v5361_v47, %v3998_v10  ;;  %v4207_v18 = vmul.f32 %v5363_v12, %v4025_v17  ;;  %v5364_v11 = vstv %s3437_s3  ;;  %v5365_v7 = vmov %v5355_v2  ;;  %s4300_s3 = sld [smem:[#allocation10 + $0x25]]  ;;  %s2297_s16 = sld [smem:[#allocation10 + $0x49]] }
 0x147   :  { %v4212_v53 = vmul.f32 %v5364_v11, %v4058_v31  ;;  %v4217_v35 = vmul.f32 %v5365_v7, %v4088_v46  ;;  %v1070_v54 = vadd.f32 %v1068_v0, %v1064_v25  ;;  %v1045_v37 = vadd.f32 %v4103_v51, %v1039_v57 }
 0x148   :  { %v1115_v2 = vadd.f32 %v3663_v23, %v1109_v33  ;;  %v4224_v19 = vmul.f32 %v5356_v43, %v4121_v55  ;;  %v1194_v52 = vadd.f32 %v5366_v1, %v1128_v41  ;;  %v1549_v16 = vadd.f32 %v5367_v30, %v3961_v49  ;;  %v5372_v49 = vld [vmem:[#allocation49_spill] sm:$0xff] }
 0x149   :  { %v5368_v21 = vstv %s3696_s4  ;;  %v5369_v0 = vstv %s3711_s14  ;;  %1073 = vrot.lane.b32.xlu1 %v1070_v54, %s2504_s30  ;;  %v1051_v23 = vadd.f32 %v1049_v15, %v1045_v37  ;;  %v5370_v4 = vstv %s3714_s1  ;;  %v5376_v37 = vld [vmem:[#allocation96_spill] sm:$0xff]  ;;  %s4384_s4 = sld [smem:[#allocation10 + $0x27]] }
 0x14a   :  { %v1565_v62 = vmul.f32 %v5368_v21, %v3928_v29  ;;  %v1709_v36 = vmul.f32 %v5369_v0, %v3994_v34  ;;  %v1121_v51 = vadd.f32 %v1119_v44, %v1115_v2  ;;  %v4239_v24 = vmul.f32 %v5370_v4, %v4001_v26  ;;  %v5380_v0 = vld [vmem:[#allocation131_spill] sm:$0xff] }
 0x14b   :  { %v5371_v25 = vstv %s3718_s15  ;;  %v1260_v33 = vadd.f32 %v5372_v49, %v1194_v52  ;;  %v1555_v47 = vadd.f32 %v3900_v58, %v1549_v16  ;;  %v5373_v39 = vstv %s3720_s6  ;;  %v5379_v16 = vld [vmem:[#allocation114_spill] sm:$0xff] }
 0x14c   :  { %v4244_v57 = vmul.f32 %v5371_v25, %v4028_v6  ;;  %v4251_v41 = vmul.f32 %v5373_v39, %v4061_v13  ;;  %v5374_v12 = vstv %s3727_s8  ;;  %v1057_v44 = vadd.f32 %v4134_v20, %v1051_v23  ;;  %v5383_v25 = vld [vmem:[#allocation119_spill] sm:$0xff] }
 0x14d   :  { %v4256_v15 = vmul.f32 %v5374_v12, %v4091_v50  ;;  %v1127_v11 = vadd.f32 %v3668_v60, %v1121_v51  ;;  %v5375_v7 = vstv %s3744_s29  ;;  %v1548_v2 = vadd.f32 %v5376_v37, %v3957_v42  ;;  %v5381_v51 = vld [vmem:[#allocation118_spill] sm:$0xff]  ;;  %v5388_v12 = vld [vmem:[#allocation116_spill] sm:$0xff] }
 0x14e   :  { %v4263_v54 = vmul.f32 %v5375_v7, %v4124_v9  ;;  %v1266_v58 = vadd.f32 %v1264_v8, %v1260_v33  ;;  %v1561_v43 = vadd.f32 %v3680_v59, %v1555_v47  ;;  %v5377_v1 = vmov %v5368_v21  ;;  %v5385_v47 = vld [vmem:[#allocation130_spill] sm:$0xff]  ;;  %v5390_v37 = vld [vmem:[#allocation124_spill] sm:$0xff] }
 0x14f   :  { %v1564_v52 = vmul.f32 %v5377_v1, %v3925_v28  ;;  %v5378_v30 = vrot.slane %v3784_v32, 3  ;;  %v1063_v60 = vadd.f32 %v4148_v22, %v1057_v44  ;;  %v1193_v21 = vadd.f32 %v5379_v16, %v1127_v11  ;;  %v5386_v32 = vld [vmem:[#allocation123_spill] sm:$0xff]  ;;  %v5389_v11 = vld [vmem:[#allocation121_spill] sm:$0xff] }
 0x150   :  { %v1554_v23 = vadd.f32 %v5380_v0, %v1548_v2  ;;  %v5382_v4 = vrot.slane %v5381_v51, 2  ;;  %v1272_v8 = vadd.f32 %v1270_v45, %v1266_v58  ;;  %v1567_v59 = vadd.f32 %v1565_v62, %v1561_v43  ;;  %v5392_v58 = vld [vmem:[#allocation115_spill] sm:$0xff]  ;;  %v5393_v1 = vld [vmem:[#allocation125_spill] sm:$0xff] }
 0x151   :  { %v1617_v20 = vsel %vm369_vm5, %v5378_v30, %v3856_v56  ;;  %v5384_v49 = vrot.slane %v5383_v25, 1  ;;  %v5387_v39 = vrot.slane %v5386_v32, 6  ;;  %v1069_v22 = vadd.f32 %v4153_v61, %v1063_v60 }
 0x152   :  { %v1619_v42 = vsel %vm371_vm6, %v5382_v4, %v1617_v20  ;;  %v1259_v44 = vadd.f32 %v5388_v12, %v1193_v21  ;;  %v1560_v7 = vadd.f32 %v5389_v11, %v1554_v23  ;;  %v5391_v2 = vrot.slane %v5390_v37, 5  ;;  %v5394_v20 = vld [vmem:[#allocation126_spill] sm:$0xff]  ;;  %v5395_v21 = vld [vmem:[#allocation127_spill] sm:$0xff]  ;;  %v5396_v23 = vld [vmem:[#allocation129_spill] sm:$0xff] }
 0x153   :  { %v1621_v33 = vsel %vm373_vm7, %v5384_v49, %v1619_v42  ;;  %v1677_v56 = vsel %vm363_vm2, %v5387_v39, %v5385_v47  ;;  %v1278_v62 = vadd.f32 %v4171_v27, %v1272_v8  ;;  %v1573_v43 = vadd.f32 %v5392_v58, %v1567_v59  ;;  %1071 = vrot.lane.b32.xlu0 %v1069_v22, %s2504_s30  ;;  %v5397_v4 = vld [vmem:[#allocation117_spill] sm:$0xff]  ;;  %s2294_s30 = sld [smem:[#allocation10 + $0x17]] }
 0x154   :  { %v1679_v45 = vsel %vm365_vm3, %v5391_v2, %v1677_v56  ;;  %v1680_v30 = vrot.slane %v5393_v1, 4  ;;  %v1682_v16 = vrot.slane %v5394_v20, 3  ;;  %v1265_v61 = vadd.f32 %v1263_v40, %v1259_v44  ;;  %v5401_v56 = vld [vmem:[#allocation120_spill] sm:$0xff]  ;;  %v5406_v20 = vld [vmem:[#allocation94_spill] sm:$0xff] }
 0x155   :  { %v1566_v60 = vadd.f32 %v1564_v52, %v1560_v7  ;;  %v1684_v0 = vrot.slane %v5395_v21, 2  ;;  %v1686_v27 = vrot.slane %v5396_v23, 1  ;;  %v1284_v51 = vadd.f32 %v4177_v48, %v1278_v62  ;;  %v5399_v52 = vld [vmem:[#allocation122_spill] sm:$0xff] }
 0x156   :  { %v1639_v42 = vadd.f32 %v5397_v4, %v1573_v43  ;;  %v1681_v8 = vsel %vm367_vm4, %v1680_v30, %v1679_v45  ;;  %v5398_v59 = vstv %s3711_s14  ;;  %v1271_v40 = vadd.f32 %v1269_v3, %v1265_v61  ;;  %s4388_s14 = sld [smem:[#allocation10 + $0x58]] }
 0x157   :  { %v1708_v25 = vmul.f32 %v5398_v59, %v3991_v38  ;;  %v1572_v49 = vadd.f32 %v5399_v52, %v1566_v60  ;;  %v1683_v47 = vsel %vm369_vm5, %v1682_v16, %v1681_v8  ;;  %v5400_v48 = vstv %s3714_s1  ;;  %v5407_v16 = vld [vmem:[#allocation99_spill] sm:$0xff]  ;;  %v5410_v59 = vld [vmem:[#allocation101_spill] sm:$0xff]  ;;  %s4390_s1 = sld [smem:[#allocation10 + $0x28]] }
 0x158   :  { %v1714_v32 = vmul.f32 %v5400_v48, %v3998_v10  ;;  %v1290_v39 = vadd.f32 %v4183_v5, %v1284_v51  ;;  %v1705_v22 = vadd.f32 %v5401_v56, %v1639_v42  ;;  %v1685_v12 = vsel %vm371_vm6, %v1684_v0, %v1683_v47  ;;  %v5412_v56 = vld [vmem:[#allocation43_spill] sm:$0xff] }
 0x159   :  { %v5402_v44 = vstv %s3718_s15  ;;  %v1277_v3 = vadd.f32 %v4207_v18, %v1271_v40  ;;  %v1638_v7 = vadd.f32 %v1621_v33, %v1572_v49  ;;  %v1687_v37 = vsel %vm373_vm7, %v1686_v27, %v1685_v12  ;;  %s4393_s15 = sld [smem:[#allocation10 + $0x59]] }
 0x15a   :  { %v1720_v11 = vmul.f32 %v5402_v44, %v4025_v17  ;;  %v5403_v2 = vstv %s3720_s6  ;;  %v1296_v5 = vadd.f32 %v4188_v14, %v1290_v39  ;;  %v1711_v62 = vadd.f32 %v1709_v36, %v1705_v22  ;;  %v5408_v36 = vld [vmem:[#allocation57_spill] sm:$0xff]  ;;  %v5414_v44 = vld [vmem:[#allocation45_spill] sm:$0xff]  ;;  %s2506_s6 = smov 112  }
 0x15b   :  { %v1726_v45 = vmul.f32 %v5403_v2, %v4058_v31  ;;  %v5404_v58 = vstv %s3727_s8  ;;  %v5405_v1 = vstv %s3744_s29  ;;  %v1283_v18 = vadd.f32 %v4212_v53, %v1277_v3  ;;  %v5409_v53 = vld [vmem:[#allocation133_spill] sm:$0xff]  ;;  %v5416_v2 = vld [vmem:[#allocation51_spill] sm:$0xff]  ;;  %s4402_s8 = sld [smem:[#allocation10 + $0x29]]  ;;  %s4404_s29 = sld [smem:[#allocation10 + $0x5a]] }
 0x15c   :  { %v1732_v43 = vmul.f32 %v5404_v58, %v4088_v46  ;;  %v1738_v30 = vmul.f32 %v5405_v1, %v4121_v55  ;;  %v1704_v33 = vadd.f32 %v1687_v37, %v1638_v7  ;;  %v1775_v61 = vadd.f32 %v5407_v16, %v5406_v20  ;;  %1299 = vrot.lane.b32.xlu1 %v1296_v5, %s2505_s0  ;;  %v5418_v1 = vld [vmem:[#allocation53_spill] sm:$0xff] }
 0x15d   :  { %v1783_v60 = vstv %s4294_s28  ;;  %v1717_v14 = vadd.f32 %v4239_v24, %v1711_v62  ;;  %v1789_v0 = vstv %s4300_s3  ;;  %v1795_v23 = vstv %s4302_s21  ;;  %v5417_v62 = vld [vmem:[#allocation52_spill] sm:$0xff]  ;;  %s2298_s28 = sld [smem:[#allocation10 + $0x19]]  ;;  %s2299_s3 = sld [smem:[#allocation10 + $0x4a]] }
 0x15e   :  { %v1785_v21 = vmul.f32 %v1783_v60, %v5408_v36  ;;  %v1289_v27 = vadd.f32 %v4217_v35, %v1283_v18  ;;  %v1710_v51 = vadd.f32 %v1708_v25, %v1704_v33  ;;  %v1781_v4 = vadd.f32 %v5409_v53, %v1775_v61  ;;  %v5411_v35 = vld [vmem:[#allocation42_spill] sm:$0xff]  ;;  %s2300_s21 = sld [smem:[#allocation10 + $0x1a]] }
 0x15f   :  { %v1791_v42 = vmul.f32 %v1789_v0, %v3928_v29  ;;  %v1723_v8 = vadd.f32 %v4244_v57, %v1717_v14  ;;  %v1797_v40 = vmul.f32 %v1795_v23, %v5410_v59  ;;  %v4360_v52 = vstv %s4313_s2  ;;  %v5413_v57 = vld [vmem:[#allocation44_spill] sm:$0xff]  ;;  %s2301_s2 = sld [smem:[#allocation10 + $0x4b]] }
 0x160   :  { %v4363_v24 = vstv %s4315_s5  ;;  %v1295_v49 = vadd.f32 %v4224_v19, %v1289_v27  ;;  %v1716_v47 = vadd.f32 %v1714_v32, %v1710_v51  ;;  %v1787_v48 = vadd.f32 %v1785_v21, %v1781_v4  ;;  %v5415_v19 = vld [vmem:[#allocation47_spill] sm:$0xff]  ;;  %s4840_s5 = sld [smem:[#allocation10 + $0x1b]] }
 0x161   :  { %v1803_v25 = vmul.f32 %v4360_v52, %v5411_v35  ;;  %v1729_v39 = vadd.f32 %v4251_v41, %v1723_v8  ;;  %v1805_v22 = vmul.f32 %v4360_v52, %v5412_v56  ;;  %v1807_v12 = vmul.f32 %v4360_v52, %v5413_v57 }
 0x162   :  { %v1809_v3 = vmul.f32 %v4360_v52, %v5414_v44  ;;  %1297 = vrot.lane.b32.xlu0 %v1295_v49, %s2505_s0  ;;  %v1722_v7 = vadd.f32 %v1720_v11, %v1716_v47  ;;  %v1793_v37 = vadd.f32 %v1791_v42, %v1787_v48  ;;  %v1811_v32 = vmul.f32 %v4360_v52, %v5415_v19  ;;  %v5421_v47 = vld [vmem:[#allocation28_spill] sm:$0xff]  ;;  %s4842_s0 = sld [smem:[#allocation10 + $0x4c]] }
 0x163   :  { %v1813_v5 = vmul.f32 %v4360_v52, %v5416_v2  ;;  %v1735_v41 = vadd.f32 %v4256_v15, %v1729_v39  ;;  %v1815_v58 = vmul.f32 %v4360_v52, %v5417_v62  ;;  %v1817_v18 = vmul.f32 %v4360_v52, %v5418_v1  ;;  %v5422_v39 = vld [vmem:[#allocation29_spill] sm:$0xff] }
 0x164   :  { %v1848_v33 = vrot.slane %v1805_v22, 7  ;;  %v1728_v20 = vadd.f32 %v1726_v45, %v1722_v7  ;;  %v1799_v16 = vadd.f32 %v1797_v40, %v1793_v37  ;;  %v1850_v61 = vrot.slane %v1807_v12, 6  ;;  %v5420_v40 = vld [vmem:[#allocation27_spill] sm:$0xff]  ;;  %v5423_v12 = vld [vmem:[#allocation30_spill] sm:$0xff] }
 0x165   :  { %v1852_v11 = vrot.slane %v1809_v3, 5  ;;  %v1741_v14 = vadd.f32 %v4263_v54, %v1735_v41  ;;  %v1854_v27 = vrot.slane %v1811_v32, 4  ;;  %v1856_v51 = vrot.slane %v1813_v5, 3  ;;  %v5419_v54 = vld [vmem:[#allocation26_spill] sm:$0xff]  ;;  %v5424_v37 = vld [vmem:[#allocation31_spill] sm:$0xff]  ;;  %v5425_v5 = vld [vmem:[#allocation32_spill] sm:$0xff] }
 0x166   :  { %v1849_v21 = vsel %vm361_vm1, %v1848_v33, %v1803_v25  ;;  %v1734_v15 = vadd.f32 %v1732_v43, %v1728_v20  ;;  %v1858_v4 = vrot.slane %v1815_v58, 2  ;;  %v1860_v45 = vrot.slane %v1817_v18, 1  ;;  %v5426_v58 = vld [vmem:[#allocation33_spill] sm:$0xff] }
 0x167   :  { %v1851_v53 = vsel %vm363_vm2, %v1850_v61, %v1849_v21  ;;  %1744 = vrot.lane.b32.xlu1 %v1741_v14, %s2506_s6  ;;  %v1869_v8 = vmul.f32 %v4363_v24, %v5419_v54  ;;  %v1871_v49 = vmul.f32 %v4363_v24, %v5420_v40  ;;  %v1873_v48 = vmul.f32 %v4363_v24, %v5421_v47 }
 0x168   :  { %v1853_v42 = vsel %vm365_vm3, %v1852_v11, %v1851_v53  ;;  %v1740_v43 = vadd.f32 %v1738_v30, %v1734_v15  ;;  %v1875_v22 = vmul.f32 %v4363_v24, %v5422_v39  ;;  %v1877_v3 = vmul.f32 %v4363_v24, %v5423_v12 }
 0x169   :  { %v1855_v25 = vsel %vm367_vm4, %v1854_v27, %v1853_v42  ;;  %v1879_v32 = vmul.f32 %v4363_v24, %v5424_v37  ;;  %v1881_v41 = vmul.f32 %v4363_v24, %v5425_v5  ;;  %v1883_v30 = vmul.f32 %v4363_v24, %v5426_v58 }
 0x16a   :  { %v1857_v7 = vsel %vm369_vm5, %v1856_v51, %v1855_v25  ;;  %1742 = vrot.lane.b32.xlu0 %v1740_v43, %s2506_s6  ;;  %v1914_v33 = vrot.slane %v1871_v49, 7  ;;  %v1916_v20 = vrot.slane %v1873_v48, 6  ;;  %v1918_v61 = vrot.slane %v1875_v22, 5 }
 0x16b   :  { %v1859_v18 = vsel %vm371_vm6, %v1858_v4, %v1857_v7  ;;  %v1920_v14 = vrot.slane %v1877_v3, 4  ;;  %v1922_v21 = vrot.slane %v1879_v32, 3  ;;  %v1924_v27 = vrot.slane %v1881_v41, 2 }
 0x16c   :  { %v1861_v11 = vsel %vm373_vm7, %v1860_v45, %v1859_v18  ;;  %v1915_v15 = vsel %vm361_vm1, %v1914_v33, %v1869_v8  ;;  %v1926_v53 = vrot.slane %v1883_v30, 1  ;;  %v5037_v4 = vstv %s4384_s4  ;;  %v5427_v33 = vld [vmem:[#allocation59_spill] sm:$0xff] }
 0x16d   :  { %v1865_v51 = vadd.f32 %v1861_v11, %v1799_v16  ;;  %v1917_v42 = vsel %vm363_vm2, %v1916_v20, %v1915_v15  ;;  %v1935_v49 = vmul.f32 %v5037_v4, %v3994_v34  ;;  %v5036_v45 = vstv %s4388_s14  ;;  %v5428_v20 = vld [vmem:[#allocation98_spill] sm:$0xff]  ;;  %v5436_v4 = vld [vmem:[#allocation38_spill] sm:$0xff] }
 0x16e   :  { %v5034_v48 = vstv %s4390_s1  ;;  %v1919_v43 = vsel %vm365_vm3, %v1918_v61, %v1917_v42  ;;  %v1941_v16 = vmul.f32 %v5036_v45, %v4001_v26  ;;  %v5033_v25 = vstv %s4393_s15  ;;  %v5429_v15 = vld [vmem:[#allocation56_spill] sm:$0xff]  ;;  %v5433_v45 = vld [vmem:[#allocation35_spill] sm:$0xff] }
 0x16f   :  { %v1947_v8 = vmul.f32 %v5034_v48, %v4028_v6  ;;  %v1921_v22 = vsel %vm367_vm4, %v1920_v14, %v1919_v43  ;;  %v1953_v3 = vmul.f32 %v5033_v25, %v4061_v13  ;;  %v5032_v7 = vstv %s4402_s8  ;;  %v5430_v43 = vld [vmem:[#allocation100_spill] sm:$0xff]  ;;  %v5432_v48 = vld [vmem:[#allocation34_spill] sm:$0xff] }
 0x170   :  { %v5035_v32 = vstv %s4404_s29  ;;  %v1923_v41 = vsel %vm369_vm5, %v1922_v21, %v1921_v22  ;;  %v1959_v30 = vmul.f32 %v5032_v7, %v4091_v50  ;;  %v1774_v61 = vadd.f32 %v5428_v20, %v5427_v33  ;;  %v5431_v7 = vld [vmem:[#allocation132_spill] sm:$0xff]  ;;  %v5435_v20 = vld [vmem:[#allocation37_spill] sm:$0xff]  ;;  %v5441_v6 = vld [vmem:[#allocation18_spill] sm:$0xff] }
 0x171   :  { %v1965_v18 = vmul.f32 %v5035_v32, %v4124_v9  ;;  %v1925_v11 = vsel %vm371_vm6, %v1924_v27, %v1923_v41  ;;  %v1784_v14 = vmul.f32 %v1783_v60, %v5429_v15  ;;  %v1790_v42 = vmul.f32 %v1789_v0, %v3925_v28  ;;  %v5434_v41 = vld [vmem:[#allocation36_spill] sm:$0xff] }
 0x172   :  { %v1796_v21 = vmul.f32 %v1795_v23, %v5430_v43  ;;  %v1927_v22 = vsel %vm373_vm7, %v1926_v53, %v1925_v11  ;;  %v1780_v25 = vadd.f32 %v5431_v7, %v1774_v61  ;;  %v1802_v32 = vmul.f32 %v4360_v52, %v5432_v48  ;;  %v5437_v53 = vld [vmem:[#allocation39_spill] sm:$0xff]  ;;  %v5438_v61 = vld [vmem:[#allocation40_spill] sm:$0xff]  ;;  %v5439_v43 = vld [vmem:[#allocation41_spill] sm:$0xff] }
 0x173   :  { %v1804_v33 = vmul.f32 %v4360_v52, %v5433_v45  ;;  %v1931_v27 = vadd.f32 %v1927_v22, %v1865_v51  ;;  %v1806_v60 = vmul.f32 %v4360_v52, %v5434_v41  ;;  %v1808_v0 = vmul.f32 %v4360_v52, %v5435_v20 }
 0x174   :  { %v1810_v23 = vmul.f32 %v4360_v52, %v5436_v4  ;;  %v1786_v63 = vadd.f32 %v1784_v14, %v1780_v25  ;;  %v1812_v7 = vmul.f32 %v4360_v52, %v5437_v53  ;;  %v1814_v11 = vmul.f32 %v4360_v52, %v5438_v61  ;;  %v5440_v4 = vld [vmem:[#allocation17_spill] sm:$0xff] }
 0x175   :  { %v1816_v45 = vmul.f32 %v4360_v52, %v5439_v43  ;;  %v1937_v51 = vadd.f32 %v1935_v49, %v1931_v27  ;;  %v1834_v22 = vrot.slane %v1804_v33, 7  ;;  %v1836_v48 = vrot.slane %v1806_v60, 6  ;;  %v5442_v49 = vld [vmem:[#allocation19_spill] sm:$0xff]  ;;  %v5443_v27 = vld [vmem:[#allocation20_spill] sm:$0xff] }
 0x176   :  { %v1838_v41 = vrot.slane %v1808_v0, 5  ;;  %v1792_v28 = vadd.f32 %v1790_v42, %v1786_v63  ;;  %v1840_v15 = vrot.slane %v1810_v23, 4  ;;  %v1842_v20 = vrot.slane %v1812_v7, 3  ;;  %v5446_v60 = vld [vmem:[#allocation23_spill] sm:$0xff] }
 0x177   :  { %v1844_v9 = vrot.slane %v1814_v11, 2  ;;  %v1943_v50 = vadd.f32 %v1941_v16, %v1937_v51  ;;  %v1835_v25 = vsel %vm361_vm1, %v1834_v22, %v1802_v32  ;;  %v1846_v14 = vrot.slane %v1816_v45, 1  ;;  %v5444_v32 = vld [vmem:[#allocation21_spill] sm:$0xff] }
 0x178   :  { %v1868_v53 = vmul.f32 %v4363_v24, %v5440_v4  ;;  %v1798_v13 = vadd.f32 %v1796_v21, %v1792_v28  ;;  %v1837_v61 = vsel %vm363_vm2, %v1836_v48, %v1835_v25  ;;  %v1870_v52 = vmul.f32 %v4363_v24, %v5441_v6  ;;  %v5445_v48 = vld [vmem:[#allocation22_spill] sm:$0xff] }
 0x179   :  { %v1872_v33 = vmul.f32 %v4363_v24, %v5442_v49  ;;  %v1949_v63 = vadd.f32 %v1947_v8, %v1943_v50  ;;  %v1839_v42 = vsel %vm365_vm3, %v1838_v41, %v1837_v61  ;;  %v1874_v16 = vmul.f32 %v4363_v24, %v5443_v27  ;;  %v5447_v8 = vld [vmem:[#allocation25_spill] sm:$0xff] }
 0x17a   :  { %v1876_v45 = vmul.f32 %v4363_v24, %v5444_v32  ;;  %v1841_v28 = vsel %vm367_vm4, %v1840_v15, %v1839_v42  ;;  %v1878_v21 = vmul.f32 %v4363_v24, %v5445_v48  ;;  %v1880_v50 = vmul.f32 %v4363_v24, %v5446_v60 }
 0x17b   :  { %v1882_v41 = vmul.f32 %v4363_v24, %v5447_v8  ;;  %v1955_v0 = vadd.f32 %v1953_v3, %v1949_v63  ;;  %v1843_v23 = vsel %vm369_vm5, %v1842_v20, %v1841_v28  ;;  %v1900_v7 = vrot.slane %v1870_v52, 7 }
 0x17c   :  { %v1902_v61 = vrot.slane %v1872_v33, 6  ;;  %v1845_v15 = vsel %vm371_vm6, %v1844_v9, %v1843_v23  ;;  %v1904_v11 = vrot.slane %v1874_v16, 5  ;;  %v1906_v51 = vrot.slane %v1876_v45, 4 }
 0x17d   :  { %v1908_v22 = vrot.slane %v1878_v21, 3  ;;  %v1961_v24 = vadd.f32 %v1959_v30, %v1955_v0  ;;  %v1847_v3 = vsel %vm373_vm7, %v1846_v14, %v1845_v15  ;;  %v1901_v25 = vsel %vm361_vm1, %v1900_v7, %v1868_v53  ;;  %v5455_v15 = vld [vmem:[#allocation103_spill] sm:$0xff] }
 0x17e   :  { %v1910_v20 = vrot.slane %v1880_v50, 2  ;;  %v1864_v52 = vadd.f32 %v1847_v3, %v1798_v13  ;;  %v1903_v33 = vsel %vm363_vm2, %v1902_v61, %v1901_v25  ;;  %v1912_v63 = vrot.slane %v1882_v41, 1  ;;  %v5454_v61 = vld [vmem:[#allocation95_spill] sm:$0xff] }
 0x17f   :  { %v5448_v9 = vstv %s4384_s4  ;;  %v1967_v16 = vadd.f32 %v1965_v18, %v1961_v24  ;;  %v1905_v45 = vsel %vm365_vm3, %v1904_v11, %v1903_v33  ;;  %v5449_v30 = vstv %s4388_s14 }
 0x180   :  { %v1934_v42 = vmul.f32 %v5448_v9, %v3991_v38  ;;  %v1940_v14 = vmul.f32 %v5449_v30, %v3998_v10  ;;  %v5450_v53 = vstv %s4390_s1  ;;  %v1907_v28 = vsel %vm367_vm4, %v1906_v51, %v1905_v45  ;;  %v5456_v45 = vld [vmem:[#allocation135_spill] sm:$0xff]  ;;  %s5502_s1 = sld [smem:[#allocation138_spill]] }
 0x181   :  { %v1946_v13 = vmul.f32 %v5450_v53, %v4025_v17  ;;  %v5451_v21 = vstv %s4393_s15  ;;  %v5452_v41 = vstv %s4402_s8  ;;  %v5453_v0 = vstv %s4404_s29  ;;  %1970 = vrot.lane.b32.xlu1 %v1967_v16, %s2507_s23  ;;  %s2509_s15 = smov [#allocation11]  }
 0x182   :  { %v1952_v50 = vmul.f32 %v5451_v21, %v4058_v31  ;;  %v4529_v18 = vmul.f32 %v5452_v41, %v4088_v46  ;;  %v4534_v23 = vmul.f32 %v5453_v0, %v4121_v55  ;;  %v1909_v7 = vsel %vm369_vm5, %v1908_v22, %v1907_v28  ;;  %s2238_s6 = sshll.u32 %s2509_s15, 4  ;;  %s2239_s6 = int_to_ptr.vmem [resolvable:$true] %s2238_s6 }
 0x183   :  { %v2001_v11 = vadd.f32 %v5455_v15, %v5454_v61  ;;  %v5051_v51 = vstv %s4492_s17  ;;  %v5050_v24 = vstv %s4494_s19  ;;  %v1911_v3 = vsel %vm371_vm6, %v1910_v20, %v1909_v7  ;;  %s2461_s8 = scalar_lea.vmem %s2239_s6, 256  ;;  %p2466_p2 = scmp.lt.s32.totalorder %s2239_s6, %s2239_s6 }
 0x184   :  { %v2011_v25 = vmul.f32 %v5051_v51, %v5408_v36  ;;  %v2017_v33 = vmul.f32 %v5050_v24, %v3928_v29  ;;  %v5049_v9 = vstv %s4503_s20  ;;  %v1913_v16 = vsel %vm373_vm7, %v1912_v63, %v1911_v3  ;;  %p2462_p1 = scmp.ne.s32.totalorder %s2239_s6, %s2461_s8  ;;  %p2467_p3 = scmp.lt.s32.totalorder %s2461_s8, %s2461_s8 }
 0x185   :  { %v2007_v22 = vadd.f32 %v5456_v45, %v2001_v11  ;;  %v2023_v30 = vmul.f32 %v5049_v9, %v5410_v59  ;;  %v4558_v53 = vstv %s4506_s22  ;;  %v1930_v28 = vadd.f32 %v1913_v16, %v1864_v52 }
 0x186   :  { %v2029_v20 = vmul.f32 %v4558_v53, %v5411_v35  ;;  %v2031_v21 = vmul.f32 %v4558_v53, %v5412_v56  ;;  %v2033_v41 = vmul.f32 %v4558_v53, %v5413_v57  ;;  %v2035_v63 = vmul.f32 %v4558_v53, %v5414_v44  ;;  %p2468_p4 = por %p2467_p3, %p2466_p2 }
 0x187   :  { %v2013_v0 = vadd.f32 %v2011_v25, %v2007_v22  ;;  %v2037_v7 = vmul.f32 %v4558_v53, %v5415_v19  ;;  %v2039_v61 = vmul.f32 %v4558_v53, %v5416_v2  ;;  %v1936_v52 = vadd.f32 %v1934_v42, %v1930_v28 }
 0x188   :  { %v2041_v15 = vmul.f32 %v4558_v53, %v5417_v62  ;;  %v2043_v11 = vmul.f32 %v4558_v53, %v5418_v1  ;;  %v2074_v3 = vrot.slane %v2031_v21, 7  ;;  %v2076_v25 = vrot.slane %v2033_v41, 6  ;;  %p2469_p5 = pnand %p2468_p4, %p2462_p1 }
 0x189   :  { %v2019_v16 = vadd.f32 %v2017_v33, %v2013_v0  ;;  %v2078_v45 = vrot.slane %v2035_v63, 5  ;;  %v2080_v22 = vrot.slane %v2037_v7, 4  ;;  %v1942_v9 = vadd.f32 %v1940_v14, %v1936_v52 }
 0x18a   :  { %v2075_v24 = vsel %vm361_vm1, %v2074_v3, %v2029_v20  ;;  %v2082_v51 = vrot.slane %v2039_v61, 3  ;;  %v2084_v19 = vrot.slane %v2041_v15, 2  ;;  %v2086_v2 = vrot.slane %v2043_v11, 1 }
 0x18b   :  { %v2025_v42 = vadd.f32 %v2023_v30, %v2019_v16  ;;  %v2077_v28 = vsel %vm363_vm2, %v2076_v25, %v2075_v24  ;;  %v4581_v62 = vstv %s4542_s24  ;;  %v1948_v33 = vadd.f32 %v1946_v13, %v1942_v9  ;;  %v5457_v25 = vld [vmem:[#allocation128_spill] sm:$0xff] }
 0x18c   :  { %v2079_v21 = vsel %vm365_vm3, %v2078_v45, %v2077_v28  ;;  %v2095_v14 = vmul.f32 %v4581_v62, %v5419_v54  ;;  %v2097_v20 = vmul.f32 %v4581_v62, %v5420_v40  ;;  %v2099_v30 = vmul.f32 %v4581_v62, %v5421_v47 }
 0x18d   :  { %v2081_v24 = vsel %vm367_vm4, %v2080_v22, %v2079_v21  ;;  %v2101_v41 = vmul.f32 %v4581_v62, %v5422_v39  ;;  %v2103_v13 = vmul.f32 %v4581_v62, %v5423_v12  ;;  %v1954_v9 = vadd.f32 %v1952_v50, %v1948_v33 }
 0x18e   :  { %v2083_v0 = vsel %vm369_vm5, %v2082_v51, %v2081_v24  ;;  %v2105_v63 = vmul.f32 %v4581_v62, %v5424_v37  ;;  %v2107_v7 = vmul.f32 %v4581_v62, %v5425_v5  ;;  %v2109_v52 = vmul.f32 %v4581_v62, %v5426_v58 }
 0x18f   :  { %v2085_v61 = vsel %vm371_vm6, %v2084_v19, %v2083_v0  ;;  %v2140_v15 = vrot.slane %v2097_v20, 7  ;;  %v2142_v11 = vrot.slane %v2099_v30, 6  ;;  %v1960_v50 = vadd.f32 %v4529_v18, %v1954_v9 }
 0x190   :  { %v2087_v51 = vsel %vm373_vm7, %v2086_v2, %v2085_v61  ;;  %v2144_v3 = vrot.slane %v2101_v41, 5  ;;  %v2146_v16 = vrot.slane %v2103_v13, 4  ;;  %v5458_v45 = vstv %s5254_s18  ;;  %s2508_s18 = smov 80  }
 0x191   :  { %v1994_v22 = vmul.f32 %v5458_v45, %v5457_v25  ;;  %v2091_v19 = vadd.f32 %v2087_v51, %v2025_v42  ;;  %v2141_v28 = vsel %vm361_vm1, %v2140_v15, %v2095_v14  ;;  %v2148_v33 = vrot.slane %v2105_v63, 3  ;;  %v5459_v63 = vld [vmem:[#allocation89_spill] sm:$0xff]  ;;  %v5461_v51 = vld [vmem:[#allocation63_spill] sm:$0xff] }
 0x192   :  { %v1966_v21 = vadd.f32 %v4534_v23, %v1960_v50  ;;  %v2143_v18 = vsel %vm363_vm2, %v2142_v11, %v2141_v28  ;;  %v2150_v2 = vrot.slane %v2107_v7, 2  ;;  %v5058_v20 = vstv %s4577_s25  ;;  %v5460_v11 = vld [vmem:[#allocation50_spill] sm:$0xff]  ;;  %v5463_v28 = vld [vmem:[#allocation64_spill] sm:$0xff] }
 0x193   :  { %v2145_v24 = vsel %vm365_vm3, %v2144_v3, %v2143_v18  ;;  %v2152_v30 = vrot.slane %v2109_v52, 1  ;;  %v5056_v41 = vstv %s4583_s26  ;;  %v5055_v42 = vstv %s4585_s27 }
 0x194   :  { %1968 = vrot.lane.b32.xlu0 %v1966_v21, %s2507_s23  ;;  %v2147_v14 = vsel %vm367_vm4, %v2146_v16, %v2145_v24  ;;  %v2161_v23 = vmul.f32 %v5058_v20, %v3994_v34  ;;  %v2167_v13 = vmul.f32 %v5056_v41, %v4001_v26  ;;  %v5057_v9 = vstv %s4592_s9  ;;  %v5462_v16 = vld [vmem:[#allocation102_spill] sm:$0xff]  ;;  %v5469_v20 = vld [vmem:[#allocation34_spill] sm:$0xff]  ;;  %v5476_v26 = vld [vmem:[#allocation100_spill] sm:$0xff] }
 0x195   :  { %v2149_v0 = vsel %vm369_vm5, %v2148_v33, %v2147_v14  ;;  %v2173_v7 = vmul.f32 %v5055_v42, %v5459_v63  ;;  %v5059_v61 = vstv %s4601_s7  ;;  %v5060_v52 = vstv %s4603_s10  ;;  %v5464_v21 = vld [vmem:[#allocation56_spill] sm:$0xff]  ;;  %v5466_v14 = vld [vmem:[#allocation58_spill] sm:$0xff] }
 0x196   :  { %v2151_v15 = vsel %vm371_vm6, %v2150_v2, %v2149_v0  ;;  %v2179_v50 = vmul.f32 %v5057_v9, %v5460_v11  ;;  %v2185_v3 = vmul.f32 %v5059_v61, %v5461_v51  ;;  %v2000_v25 = vadd.f32 %v5462_v16, %v1994_v22  ;;  %v5468_v41 = vld [vmem:[#allocation134_spill] sm:$0xff]  ;;  %v5470_v51 = vld [vmem:[#allocation35_spill] sm:$0xff] }
 0x197   :  { %v2153_v45 = vsel %vm373_vm7, %v2152_v30, %v2151_v15  ;;  %v2191_v33 = vmul.f32 %v5060_v52, %v5463_v28  ;;  %v5465_v18 = vstv %s4492_s17  ;;  %v5467_v42 = vstv %s4494_s19  ;;  %v5471_v30 = vld [vmem:[#allocation36_spill] sm:$0xff]  ;;  %v5472_v16 = vld [vmem:[#allocation37_spill] sm:$0xff]  ;;  %v5473_v28 = vld [vmem:[#allocation38_spill] sm:$0xff] }
 0x198   :  { %v2010_v24 = vmul.f32 %v5465_v18, %v5464_v21  ;;  %v2016_v2 = vmul.f32 %v5467_v42, %v5466_v14  ;;  %v2157_v0 = vadd.f32 %v2153_v45, %v2091_v19  ;;  %v2006_v9 = vadd.f32 %v5468_v41, %v2000_v25  ;;  %v5474_v11 = vld [vmem:[#allocation39_spill] sm:$0xff]  ;;  %v5475_v25 = vld [vmem:[#allocation40_spill] sm:$0xff] }
 0x199   :  { %v2028_v61 = vmul.f32 %v4558_v53, %v5469_v20  ;;  %v2030_v22 = vmul.f32 %v4558_v53, %v5470_v51  ;;  %v2032_v15 = vmul.f32 %v4558_v53, %v5471_v30  ;;  %v2034_v52 = vmul.f32 %v4558_v53, %v5472_v16 }
 0x19a   :  { %v2036_v18 = vmul.f32 %v4558_v53, %v5473_v28  ;;  %v2038_v19 = vmul.f32 %v4558_v53, %v5474_v11  ;;  %v2163_v42 = vadd.f32 %v2161_v23, %v2157_v0  ;;  %v2012_v41 = vadd.f32 %v2010_v24, %v2006_v9 }
 0x19b   :  { %v2040_v45 = vmul.f32 %v4558_v53, %v5475_v25  ;;  %v2042_v63 = vmul.f32 %v4558_v53, %v5439_v43  ;;  %v5477_v34 = vstv %s4503_s20  ;;  %v2060_v5 = vrot.slane %v2030_v22, 7 }
 0x19c   :  { %v2022_v58 = vmul.f32 %v5477_v34, %v5476_v26  ;;  %v2062_v1 = vrot.slane %v2032_v15, 6  ;;  %v2064_v37 = vrot.slane %v2034_v52, 5  ;;  %v2169_v12 = vadd.f32 %v2167_v13, %v2163_v42 }
 0x19d   :  { %v2018_v39 = vadd.f32 %v2016_v2, %v2012_v41  ;;  %v2066_v28 = vrot.slane %v2036_v18, 4  ;;  %v2068_v54 = vrot.slane %v2038_v19, 3  ;;  %v2061_v11 = vsel %vm361_vm1, %v2060_v5, %v2028_v61 }
 0x19e   :  { %v2070_v23 = vrot.slane %v2040_v45, 2  ;;  %v2072_v9 = vrot.slane %v2042_v63, 1  ;;  %v2096_v24 = vmul.f32 %v4581_v62, %v5441_v6  ;;  %v2175_v0 = vadd.f32 %v2173_v7, %v2169_v12 }
 0x19f   :  { %v2063_v53 = vsel %vm363_vm2, %v2062_v1, %v2061_v11  ;;  %v2094_v34 = vmul.f32 %v4581_v62, %v5440_v4  ;;  %v2098_v52 = vmul.f32 %v4581_v62, %v5442_v49  ;;  %v2100_v2 = vmul.f32 %v4581_v62, %v5443_v27 }
 0x1a0   :  { %v2065_v13 = vsel %vm365_vm3, %v2064_v37, %v2063_v53  ;;  %v2102_v5 = vmul.f32 %v4581_v62, %v5444_v32  ;;  %v2104_v63 = vmul.f32 %v4581_v62, %v5445_v48  ;;  %v2181_v12 = vadd.f32 %v2179_v50, %v2175_v0 }
 0x1a1   :  { %v2067_v1 = vsel %vm367_vm4, %v2066_v28, %v2065_v13  ;;  %v2106_v7 = vmul.f32 %v4581_v62, %v5446_v60  ;;  %v2108_v61 = vmul.f32 %v4581_v62, %v5447_v8  ;;  %v2126_v11 = vrot.slane %v2096_v24, 7 }
 0x1a2   :  { %v2069_v37 = vsel %vm369_vm5, %v2068_v54, %v2067_v1  ;;  %v2128_v22 = vrot.slane %v2098_v52, 6  ;;  %v2130_v15 = vrot.slane %v2100_v2, 5  ;;  %v2187_v18 = vadd.f32 %v2185_v3, %v2181_v12 }
 0x1a3   :  { %v2024_v19 = vadd.f32 %v2022_v58, %v2018_v39  ;;  %v2071_v42 = vsel %vm371_vm6, %v2070_v23, %v2069_v37  ;;  %v2132_v41 = vrot.slane %v2102_v5, 4  ;;  %v2127_v28 = vsel %vm361_vm1, %v2126_v11, %v2094_v34 }
 0x1a4   :  { %v2073_v50 = vsel %vm373_vm7, %v2072_v9, %v2071_v42  ;;  %v2134_v45 = vrot.slane %v2104_v63, 3  ;;  %v2193_v0 = vadd.f32 %v2191_v33, %v2187_v18  ;;  %v2129_v62 = vsel %vm363_vm2, %v2128_v22, %v2127_v28 }
 0x1a5   :  { %v2136_v54 = vrot.slane %v2106_v7, 2  ;;  %v2131_v24 = vsel %vm365_vm3, %v2130_v15, %v2129_v62  ;;  %v2138_v3 = vrot.slane %v2108_v61, 1  ;;  %v2090_v39 = vadd.f32 %v2073_v50, %v2024_v19 }
 0x1a6   :  { %2196 = vrot.lane.b32.xlu1 %v2193_v0, %s2508_s18  ;;  %v2133_v58 = vsel %vm367_vm4, %v2132_v41, %v2131_v24  ;;  %v5478_v34 = vstv %s4577_s25  ;;  %v5479_v2 = vstv %s4583_s26  ;;  %v5480_v12 = vstv %s4585_s27 }
 0x1a7   :  { %v2135_v23 = vsel %vm369_vm5, %v2134_v45, %v2133_v58  ;;  %v2160_v52 = vmul.f32 %v5478_v34, %v3991_v38  ;;  %v2166_v5 = vmul.f32 %v5479_v2, %v3998_v10  ;;  %v2172_v1 = vmul.f32 %v5480_v12, %v4025_v17  ;;  %v5486_v12 = vld [vmem:[#allocation137_spill] sm:$0xff] }
 0x1a8   :  { %v2137_v9 = vsel %vm371_vm6, %v2136_v54, %v2135_v23  ;;  %v5481_v61 = vstv %s4592_s9  ;;  %v5482_v22 = vstv %s4601_s7  ;;  %v5483_v18 = vstv %s4603_s10 }
 0x1a9   :  { %v2139_v33 = vsel %vm373_vm7, %v2138_v3, %v2137_v9  ;;  %v2178_v37 = vmul.f32 %v5481_v61, %v4058_v31  ;;  %v2184_v15 = vmul.f32 %v5482_v22, %v4088_v46  ;;  %v2190_v19 = vmul.f32 %v5483_v18, %v4121_v55  ;;  %v5489_v22 = vld [vmem:[#allocation29_spill] sm:$0xff] }
 0x1aa   :  { %v2156_v53 = vadd.f32 %v2139_v33, %v2090_v39  ;;  %v4726_v50 = vstv %s2296_s11  ;;  %v1338_v0 = vstv %s2293_s12  ;;  %v1350_v62 = vstv %s2295_s13 }
 0x1ab   :  { %v1359_v28 = vmul.f32 %v4726_v50, %v5470_v51  ;;  %v1360_v45 = vmul.f32 %v4726_v50, %v5412_v56  ;;  %v4732_v54 = vstv %s2297_s16  ;;  %v1344_v24 = vstv %s2294_s30 }
 0x1ac   :  { %v2162_v13 = vadd.f32 %v2160_v52, %v2156_v53  ;;  %v1357_v3 = vmul.f32 %v4726_v50, %v5469_v20  ;;  %v1361_v39 = vmul.f32 %v4726_v50, %v5471_v30  ;;  %v1358_v23 = vmul.f32 %v4726_v50, %v5411_v35 }
 0x1ad   :  { %v1389_v58 = vrot.slane %v1359_v28, 7  ;;  %v1362_v51 = vmul.f32 %v4726_v50, %v5413_v57  ;;  %v1403_v9 = vrot.slane %v1360_v45, 7  ;;  %v1339_v56 = vmul.f32 %v1338_v0, %v5464_v21  ;;  %v5490_v28 = vld [vmem:[#allocation39_spill] sm:$0xff] }
 0x1ae   :  { %v2168_v63 = vadd.f32 %v2166_v5, %v2162_v13  ;;  %v1340_v33 = vmul.f32 %v1338_v0, %v5408_v36  ;;  %v1425_v53 = vmul.f32 %v4732_v54, %v5441_v6  ;;  %v1426_v20 = vmul.f32 %v4732_v54, %v5420_v40  ;;  %v5484_v13 = vld [vmem:[#allocation26_spill] sm:$0xff]  ;;  %v5485_v5 = vld [vmem:[#allocation136_spill] sm:$0xff] }
 0x1af   :  { %v4749_v30 = vmul.f32 %v1350_v62, %v5476_v26  ;;  %v4752_v34 = vmul.f32 %v1350_v62, %v5410_v59  ;;  %v1345_v35 = vmul.f32 %v1344_v24, %v5466_v14  ;;  %v1346_v57 = vmul.f32 %v1344_v24, %v3928_v29  ;;  %v5491_v0 = vld [vmem:[#allocation51_spill] sm:$0xff] }
 0x1b0   :  { %v2174_v7 = vadd.f32 %v2172_v1, %v2168_v63  ;;  %v1363_v21 = vmul.f32 %v4726_v50, %v5472_v16  ;;  %v1364_v36 = vmul.f32 %v4726_v50, %v5414_v44  ;;  %v1390_v6 = vsel %vm361_vm1, %v1389_v58, %v1357_v3 }
 0x1b1   :  { %v1391_v52 = vrot.slane %v1361_v39, 6  ;;  %v1404_v40 = vsel %vm361_vm1, %v1403_v9, %v1358_v23  ;;  %v1405_v26 = vrot.slane %v1362_v51, 6  ;;  %v1427_v59 = vmul.f32 %v4732_v54, %v5442_v49  ;;  %v5492_v23 = vld [vmem:[#allocation30_spill] sm:$0xff] }
 0x1b2   :  { %v2180_v11 = vadd.f32 %v2178_v37, %v2174_v7  ;;  %v1428_v14 = vmul.f32 %v4732_v54, %v5421_v47  ;;  %v1423_v29 = vmul.f32 %v4732_v54, %v5440_v4  ;;  %v1424_v16 = vmul.f32 %v4732_v54, %v5484_v13  ;;  %v5487_v7 = vld [vmem:[#allocation38_spill] sm:$0xff] }
 0x1b3   :  { %v1455_v2 = vrot.slane %v1425_v53, 7  ;;  %v1469_v44 = vrot.slane %v1426_v20, 7  ;;  %v1341_v63 = vadd.f32 %v1339_v56, %v5485_v5  ;;  %v1342_v1 = vadd.f32 %v1340_v33, %v5486_v12  ;;  %v5488_v37 = vld [vmem:[#allocation47_spill] sm:$0xff] }
 0x1b4   :  { %v2186_v42 = vadd.f32 %v2184_v15, %v2180_v11  ;;  %v1365_v61 = vmul.f32 %v4726_v50, %v5487_v7  ;;  %v1366_v49 = vmul.f32 %v4726_v50, %v5488_v37  ;;  %v1393_v11 = vrot.slane %v1363_v21, 5  ;;  %v5493_v21 = vld [vmem:[#allocation52_spill] sm:$0xff] }
 0x1b5   :  { %v1407_v47 = vrot.slane %v1364_v36, 5  ;;  %v1429_v4 = vmul.f32 %v4732_v54, %v5443_v27  ;;  %v1430_v15 = vmul.f32 %v4732_v54, %v5489_v22  ;;  %v1392_v18 = vsel %vm363_vm2, %v1391_v52, %v1390_v6 }
 0x1b6   :  { %v2192_v41 = vadd.f32 %v2190_v19, %v2186_v42  ;;  %v1406_v19 = vsel %vm363_vm2, %v1405_v26, %v1404_v40  ;;  %v1457_v42 = vrot.slane %v1427_v59, 6  ;;  %v1367_v45 = vmul.f32 %v4726_v50, %v5490_v28  ;;  %v5494_v59 = vld [vmem:[#allocation31_spill] sm:$0xff]  ;;  %v5497_v28 = vld [vmem:[#allocation33_spill] sm:$0xff] }
 0x1b7   :  { %v1368_v62 = vmul.f32 %v4726_v50, %v5491_v0  ;;  %v1456_v24 = vsel %vm361_vm1, %v1455_v2, %v1423_v29  ;;  %v1470_v3 = vsel %vm361_vm1, %v1469_v44, %v1424_v16  ;;  %v1395_v27 = vrot.slane %v1365_v61, 4  ;;  %v5495_v44 = vld [vmem:[#allocation53_spill] sm:$0xff] }
 0x1b8   :  { %2194 = vrot.lane.b32.xlu0 %v2192_v41, %s2508_s18  ;;  %v1471_v41 = vrot.slane %v1428_v14, 6  ;;  %v1409_v39 = vrot.slane %v1366_v49, 4  ;;  %v1431_v58 = vmul.f32 %v4732_v54, %v5444_v32  ;;  %v1432_v51 = vmul.f32 %v4732_v54, %v5492_v23  ;;  %v5496_v49 = vld [vmem:[#allocation32_spill] sm:$0xff] }
 0x1b9   :  { %v1394_v9 = vsel %vm365_vm3, %v1393_v11, %v1392_v18  ;;  %v1408_v56 = vsel %vm365_vm3, %v1407_v47, %v1406_v19  ;;  %v1459_v33 = vrot.slane %v1429_v4, 5  ;;  %v1473_v53 = vrot.slane %v1430_v15, 5 }
 0x1ba   :  { %v1369_v20 = vmul.f32 %v4726_v50, %v5475_v25  ;;  %v1370_v36 = vmul.f32 %v4726_v50, %v5493_v21  ;;  %v1458_v6 = vsel %vm363_vm2, %v1457_v42, %v1456_v24  ;;  %v1472_v52 = vsel %vm363_vm2, %v1471_v41, %v1470_v3  ;;  %v847_v21 = vpop.permute.xlu0 %846 }
 0x1bb   :  { %v1397_v32 = vrot.slane %v1367_v45, 3  ;;  %v1411_v40 = vrot.slane %v1368_v62, 3  ;;  %v1433_v26 = vmul.f32 %v4732_v54, %v5445_v48  ;;  %v1434_v14 = vmul.f32 %v4732_v54, %v5494_v59 }
 0x1bc   :  { %v1396_v29 = vsel %vm367_vm4, %v1395_v27, %v1394_v9  ;;  %v1410_v13 = vsel %vm367_vm4, %v1409_v39, %v1408_v56  ;;  %v1461_v25 = vrot.slane %v1431_v58, 4  ;;  %v1475_v16 = vrot.slane %v1432_v51, 4 }
 0x1bd   :  { %v1371_v2 = vmul.f32 %v4726_v50, %v5439_v43  ;;  %v1372_v5 = vmul.f32 %v4726_v50, %v5495_v44  ;;  %v1460_v12 = vsel %vm365_vm3, %v1459_v33, %v1458_v6  ;;  %v1474_v7 = vsel %vm365_vm3, %v1473_v53, %v1472_v52  ;;  %v5498_v6 = vld [vmem:[#allocation60_spill] sm:$0xff] }
 0x1be   :  { %v1399_v48 = vrot.slane %v1369_v20, 2  ;;  %v1413_v61 = vrot.slane %v1370_v36, 2  ;;  %v1435_v37 = vmul.f32 %v4732_v54, %v5446_v60  ;;  %v1436_v11 = vmul.f32 %v4732_v54, %v5496_v49  ;;  %v849_v20 = vpop.permute.xlu1 %848 }
 0x1bf   :  { %v1398_v47 = vsel %vm369_vm5, %v1397_v32, %v1396_v29  ;;  %v1412_v4 = vsel %vm369_vm5, %v1411_v40, %v1410_v13  ;;  %v1463_v43 = vrot.slane %v1433_v26, 3  ;;  %v1477_v22 = vrot.slane %v1434_v14, 3  ;;  %v5499_v14 = vld [vmem:[#allocation62_spill] sm:$0xff] }
 0x1c0   :  { %v1347_v15 = vadd.f32 %v1345_v35, %v1341_v63  ;;  %v1348_v50 = vadd.f32 %v1346_v57, %v1342_v1  ;;  %v1462_v18 = vsel %vm367_vm4, %v1461_v25, %v1460_v12  ;;  %v1476_v19 = vsel %vm367_vm4, %v1475_v16, %v1474_v7  ;;  %v5500_v12 = vld [vmem:[#allocation89_spill] sm:$0xff] }
 0x1c1   :  { %v1401_v42 = vrot.slane %v1371_v2, 1  ;;  %v1415_v41 = vrot.slane %v1372_v5, 1  ;;  %v1437_v60 = vmul.f32 %v4732_v54, %v5447_v8  ;;  %v1438_v45 = vmul.f32 %v4732_v54, %v5497_v28 }
 0x1c2   :  { %v1400_v0 = vsel %vm371_vm6, %v1399_v48, %v1398_v47  ;;  %v1414_v62 = vsel %vm371_vm6, %v1413_v61, %v1412_v4  ;;  %v1465_v24 = vrot.slane %v1435_v37, 2  ;;  %v1479_v3 = vrot.slane %v1436_v11, 2  ;;  %v1074_v25 = vpop.permute.xlu1 %1073  ;;  %v1079_v48 = vld [vmem:[#allocation9 + $0x1] ss:$8 sm:$0x3]  ;;  %v5501_v37 = vld [vmem:[#allocation48_spill] sm:$0xff] }
 0x1c3   :  { %v1464_v35 = vsel %vm369_vm5, %v1463_v43, %v1462_v18  ;;  %v1478_v57 = vsel %vm369_vm5, %v1477_v22, %v1476_v19  ;;  %v1353_v63 = vadd.f32 %v4749_v30, %v1347_v15  ;;  %v1354_v1 = vadd.f32 %v4752_v34, %v1348_v50  ;;  %v5503_v47 = vld [vmem:[#allocation16_spill] sm:$0xff] }
 0x1c4   :  { %v1402_v8 = vsel %vm373_vm7, %v1401_v42, %v1400_v0  ;;  %v1416_v27 = vsel %vm373_vm7, %v1415_v41, %v1414_v62  ;;  %v1467_v54 = vrot.slane %v1437_v60, 1  ;;  %v1481_v39 = vrot.slane %v1438_v45, 1  ;;  %v5504_v43 = vld [vmem:[#allocation24_spill] sm:$0xff]  ;;  %v5505_v42 = vld [vmem:[#allocation50_spill] sm:$0xff] }
 0x1c5   :  { %v1466_v58 = vsel %vm371_vm6, %v1465_v24, %v1464_v35  ;;  %v1480_v23 = vsel %vm371_vm6, %v1479_v3, %v1478_v57  ;;  %v1419_v51 = vadd.f32 %v1402_v8, %v1353_v63  ;;  %v1420_v9 = vadd.f32 %v1416_v27, %v1354_v1  ;;  %v1072_v16 = vpop.permute.xlu0 %1071  ;;  %v1305_v50 = vld [vmem:[#allocation9 + $0x2] ss:$8 sm:$0x3] }
 0x1c6   :  { %v1468_v56 = vsel %vm373_vm7, %v1467_v54, %v1466_v58  ;;  %v1482_v33 = vsel %vm373_vm7, %v1481_v39, %v1480_v23  ;;  %v1488_v30 = vstv %s2298_s28  ;;  %v1494_v32 = vstv %s2299_s3  ;;  %v5506_v54 = vld [vmem:[#allocation63_spill] sm:$0xff] }
 0x1c7   :  { %v1485_v34 = vadd.f32 %v1468_v56, %v1419_v51  ;;  %v1486_v53 = vadd.f32 %v1482_v33, %v1420_v9  ;;  %v1489_v36 = vmul.f32 %v1488_v30, %v3991_v38  ;;  %v1490_v52 = vmul.f32 %v1488_v30, %v5498_v6  ;;  %v853_v38 = vld [vmem:[#allocation9] ss:$8 sm:$0x3] }
 0x1c8   :  { %v1495_v59 = vmul.f32 %v1494_v32, %v3998_v10  ;;  %v1496_v29 = vmul.f32 %v1494_v32, %v5499_v14  ;;  %v1500_v13 = vstv %s2300_s21  ;;  %v1506_v61 = vstv %s2301_s2  ;;  %v5507_v9 = vld [vmem:[#allocation64_spill] sm:$0xff] }
 0x1c9   :  { %v1491_v40 = vadd.f32 %v1489_v36, %v1485_v34  ;;  %v1492_v26 = vadd.f32 %v1490_v52, %v1486_v53  ;;  %v1501_v5 = vmul.f32 %v1500_v13, %v4025_v17  ;;  %v1502_v7 = vmul.f32 %v1500_v13, %v5500_v12 }
 0x1ca   :  { %vm850_vm14 = vcmp.lt.s32.totalorder %v5501_v37, 48  ;;  %v643_v11 = vstv %s5502_s1  ;;  %v858_v4 = vrot.slane %v853_v38, %v5503_v47  ;;  %v862_v22 = vrot.slane %v853_v38, %v5504_v43 }
 0x1cb   :  { %v1497_v2 = vadd.f32 %v1495_v59, %v1491_v40  ;;  %v1498_v44 = vadd.f32 %v1496_v29, %v1492_v26  ;;  %vm1075_vm15 = vcmp.lt.s32.totalorder %v5501_v37, 32  ;;  %v1084_v17 = vrot.slane %v1079_v48, %v5503_v47 }
 0x1cc   :  { %v1507_v19 = vmul.f32 %v1506_v61, %v4058_v31  ;;  %v1508_v41 = vmul.f32 %v1506_v61, %v5505_v42  ;;  %v851_v60 = vsel %vm850_vm14, %v847_v21, %v849_v20  ;;  %v852_v28 = vsel %vm850_vm14, %v849_v20, %v847_v21  ;;  %v1524_v21 = vld [vmem:[#allocation9 + $0x3] ss:$8 sm:$0x3] }
 0x1cd   :  { %v1503_v10 = vadd.f32 %v1501_v5, %v1497_v2  ;;  %v1504_v49 = vadd.f32 %v1502_v7, %v1498_v44  ;;  %v1088_v45 = vrot.slane %v1079_v48, %v5504_v43  ;;  %v1512_v0 = vstv %s4840_s5 }
 0x1ce   :  { %v1300_v15 = vpop.permute.xlu1 %1299  ;;  %vm1301_vm0 = vcmp.lt.s32.totalorder %v5501_v37, 16  ;;  %v1518_v3 = vstv %s4842_s0  ;;  %v1076_v35 = vsel %vm1075_vm15, %v1072_v16, %v1074_v25  ;;  %v1077_v57 = vsel %vm1075_vm15, %v1074_v25, %v1072_v16  ;;  %v1976_v16 = vld [vmem:[#allocation9 + $0x5] ss:$8 sm:$0x3] }
 0x1cf   :  { %v1509_v62 = vadd.f32 %v1507_v19, %v1503_v10  ;;  %v1510_v24 = vadd.f32 %v1508_v41, %v1504_v49  ;;  %v1310_v31 = vrot.slane %v1305_v50, %v5503_v47  ;;  %v1314_v63 = vrot.slane %v1305_v50, %v5504_v43 }
 0x1d0   :  { %v865_v1 = vmul.f32 %v858_v4, %v852_v28  ;;  %v866_v8 = vmul.f32 %v862_v22, %v851_v60  ;;  %v1513_v27 = vmul.f32 %v1512_v0, %v4088_v46  ;;  %v1514_v39 = vmul.f32 %v1512_v0, %v5506_v54  ;;  %v1750_v46 = vld [vmem:[#allocation9 + $0x4] ss:$8 sm:$0x3] }
 0x1d1   :  { %v1519_v51 = vmul.f32 %v1518_v3, %v4121_v55  ;;  %v1520_v56 = vmul.f32 %v1518_v3, %v5507_v9  ;;  %v1091_v33 = vmul.f32 %v1084_v17, %v1077_v57  ;;  %v1092_v30 = vmul.f32 %v1088_v45, %v1076_v35  ;;  %v2202_v17 = vld [vmem:[#allocation9 + $0x6] ss:$8 sm:$0x3] }
 0x1d2   :  { %v1515_v53 = vadd.f32 %v1513_v27, %v1509_v62  ;;  %v1516_v20 = vadd.f32 %v1514_v39, %v1510_v24  ;;  %v867_v6 = vadd.f32 %v865_v1, %v643_v11  ;;  %v868_v52 = vadd.f32 %v866_v8, %v643_v11 }
 0x1d3   :  { %v1529_v26 = vrot.slane %v1524_v21, %v5503_v47  ;;  %v1533_v59 = vrot.slane %v1524_v21, %v5504_v43  ;;  %vm1746_vm1 = vcmp.lt.s32.totalorder %v5501_v37, 112  ;;  %v1755_v25 = vrot.slane %v1750_v46, %v5503_v47 }
 0x1d4   :  { %v1298_v18 = vpop.permute.xlu0 %1297  ;;  %v1093_v55 = vadd.f32 %v1091_v33, %v867_v6  ;;  %v1094_v14 = vadd.f32 %v1092_v30, %v868_v52  ;;  %v1521_v29 = vadd.f32 %v1519_v51, %v1515_v53  ;;  %v1522_v13 = vadd.f32 %v1520_v56, %v1516_v20 }
 0x1d5   :  { %v1302_v58 = vsel %vm1301_vm0, %v1298_v18, %v1300_v15  ;;  %v1303_v23 = vsel %vm1301_vm0, %v1300_v15, %v1298_v18  ;;  %v1759_v38 = vrot.slane %v1750_v46, %v5504_v43  ;;  %vm1972_vm2 = vcmp.lt.s32.totalorder %v5501_v37, 96 }
 0x1d6   :  { %v1317_v32 = vmul.f32 %v1310_v31, %v1303_v23  ;;  %v1318_v40 = vmul.f32 %v1314_v63, %v1302_v58  ;;  %v1536_v61 = vmul.f32 %v1529_v26, %v1521_v29  ;;  %v1537_v10 = vmul.f32 %v1533_v59, %v1522_v13 }
 0x1d7   :  { %v1981_v49 = vrot.slane %v1976_v16, %v5503_v47  ;;  %v1985_v11 = vrot.slane %v1976_v16, %v5504_v43  ;;  %vm2198_vm3 = vcmp.lt.s32.totalorder %v5501_v37, 80  ;;  %v2207_v28 = vrot.slane %v2202_v17, %v5503_v47 }
 0x1d8   :  { %v1319_v2 = vadd.f32 %v1317_v32, %v1093_v55  ;;  %v1320_v44 = vadd.f32 %v1318_v40, %v1094_v14  ;;  %v2211_v45 = vrot.slane %v2202_v17, %v5504_v43 }
 0x1d9   :  { %v1745_v34 = vpop.permute.xlu1 %1744 }
 0x1da   :  { %v1538_v15 = vadd.f32 %v1536_v61, %v1319_v2  ;;  %v1539_v50 = vadd.f32 %v1537_v10, %v1320_v44 }
 0x1dc   :  { %v1743_v36 = vpop.permute.xlu0 %1742 }
 0x1dd   :  { %v1747_v7 = vsel %vm1746_vm1, %v1743_v36, %v1745_v34  ;;  %v1748_v48 = vsel %vm1746_vm1, %v1745_v34, %v1743_v36 }
 0x1de   :  { %v1762_v18 = vmul.f32 %v1755_v25, %v1747_v7  ;;  %v1763_v19 = vmul.f32 %v1759_v38, %v1748_v48 }
 0x1e0   :  { %v1764_v0 = vadd.f32 %v1762_v18, %v1538_v15  ;;  %v1765_v62 = vadd.f32 %v1763_v19, %v1539_v50 }
 0x1f3   :  { %v1971_v5 = vpop.permute.xlu1 %1970 }
 0x206   :  { %v1969_v12 = vpop.permute.xlu0 %1968 }
 0x207   :  { %v1973_v4 = vsel %vm1972_vm2, %v1969_v12, %v1971_v5  ;;  %v1974_v22 = vsel %vm1972_vm2, %v1971_v5, %v1969_v12 }
 0x208   :  { %v1988_v42 = vmul.f32 %v1981_v49, %v1973_v4  ;;  %v1989_v41 = vmul.f32 %v1985_v11, %v1974_v22 }
 0x20a   :  { %v1990_v57 = vadd.f32 %v1988_v42, %v1764_v0  ;;  %v1991_v31 = vadd.f32 %v1989_v41, %v1765_v62 }
 0x218   :  { %v2197_v60 = vpop.permute.xlu1 %2196 }
 0x22a   :  { %v2195_v24 = vpop.permute.xlu0 %2194 }
 0x22b   :  { %v2199_v3 = vsel %vm2198_vm3, %v2195_v24, %v2197_v60  ;;  %v2200_v35 = vsel %vm2198_vm3, %v2197_v60, %v2195_v24 }
 0x22c   :  { %v2214_v63 = vmul.f32 %v2207_v28, %v2199_v3  ;;  %v2215_v1 = vmul.f32 %v2211_v45, %v2200_v35 }
 0x22e   :  { %v2216_v8 = vadd.f32 %v2214_v63, %v1990_v57  ;;  %v2217_v27 = vadd.f32 %v2215_v1, %v1991_v31 }
 0x230   :  { %v2346_v54 = vmul.f32 -1.442695, %v2216_v8  ;;  %v2347_v37 = vmul.f32 -1.442695, %v2217_v27 }
 0x232   :  { %2375 = vpow2.f32 %v2346_v54 }
 0x233   :  { %2377 = vpow2.f32 %v2347_v37 }
 0x23c   :  { %v2376_v39 = vpop.eup %2375 }
 0x23d   :  { %v2378_v58 = vpop.eup %2377  ;;  %v2224_v47 = vadd.f32 1.0, %v2376_v39 }
 0x23e   :  { %v2225_v23 = vadd.f32 1.0, %v2378_v58 }
 0x23f   :  { %2379 = vrcp.f32 %v2224_v47 }
 0x240   :  { %2381 = vrcp.f32 %v2225_v23 }
 0x249   :  { %v2380_v43 = vpop.eup %2379 }
 0x24a   :  { %v2382_v51 = vpop.eup %2381  ;;  %2230 = vst [vmem:[#allocation11] sm:$0xff] %v2380_v43 }
 0x24b   :  { %2231 = vst [vmem:[#allocation11 + $0x8] sm:$0xff] %v2382_v51 }
 0x24c   :  { %2472 = shalt.err (!%p2469_p5)
}
 0x24d   :  { %s5508_s19 = sld [smem:[#allocation139_spill]] }
 0x253   :  { %s2473_s20 = scalar_lea.hbm %s5508_s19, 256 }
 0x254   :  { %p2474_p6 = scmp.ne.s32.totalorder %s5508_s19, %s2473_s20  ;;  %p2477_p7 = scmp.lt.u32.totalorder %s2473_s20, %s5508_s19 }
 0x256   :  { %p2479_p8 = pnand %p2477_p7, %p2474_p6 }
 0x258   :  { %2482 = shalt.err (!%p2479_p8)
}
 0x259   :  { %2241 = dma.vmem_to_hbm [thread:$0]  %s2239_s6, 256, %s5508_s19, [#allocation5]  }
 0x25a   :  { %2489 = dma.done.wait [#allocation5], 256  }
 0x25b   :  { %2490 = vsyncadd [#allocation5], 4294967040 }
 0x25c   :  { %2245 = vsyncpa [#allocation4], 1 }
 0x25d   :  { %2246 = vsyncpa [#allocation8], 1 }
 0x25e   :  { %2247 = vsyncpa [#allocation5], 1 }
 0x25f   :  { %2248 = vsyncpa [#allocation6], 1 }

</bundles_post_ra>
